<compile_context>
chip_gen: v6e
topology: v6e:2x2x1
jax: 0.10.0
libtpu: 0.0.40
codegen_flags: <defaults>
</compile_context>

<pallas_src>
import functools
import math

import jax
import jax.numpy as jnp
from jax.experimental import pallas as pl
from jax.experimental.pallas import tpu as pltpu


# ------------------------------ small helpers -------------------------------
def _nbytes(a):
    return int(a.size) * int(a.dtype.itemsize)


def _pick_tile(n, candidates):
    for c in candidates:
        if n % c == 0:
            return c
    return n


def _pick_batch_tile(B, T, target_rows=128):
    """Batch tile so Bt*T feeds the MXU (>=128 rows) and stays (8,128)-legal."""
    divisors = [d for d in range(1, B + 1) if B % d == 0]
    legal = [d for d in divisors if (d * T) % 8 == 0 or d == B]
    for d in legal:                      # smallest tile reaching the row target
        if d * T >= target_rows:
            return d
    for d in reversed(legal):            # else keep >=2 parallel blocks (v7x)
        if B // d >= 2:
            return d
    return legal[-1] if legal else B


def _vmem_limit_bytes(per_step_bytes, scratch_bytes=0):
    """Scoped-VMEM cap from the actual block footprint, clamped per generation."""
    need = 2 * per_step_bytes + scratch_bytes + (8 << 20)
    try:
        kind = jax.devices()[0].device_kind.lower()
    except Exception:  # pragma: no cover
        kind = ""
    cap = (48 << 20) if ("v7" in kind or "7x" in kind) else (100 << 20)
    return int(min(max(need, 32 << 20), cap))


# ----------------------------------------------------------------------------
# Kernel 1: fused n_layers x TransformerDecoderLayer (post-norm, relu FFN)
#           grid = (batch_tiles [parallel], layers [arbitrary])
# ----------------------------------------------------------------------------
def _decoder_stack_kernel(x_ref, mem_ref, mask_ref,
                          wqkv_s_ref, bqkv_s_ref, wo_s_ref, bo_s_ref,
                          wq_c_ref, bq_c_ref, wkv_c_ref, bkv_c_ref,
                          wo_c_ref, bo_c_ref,
                          w1_ref, b1_ref, w2_ref, b2_ref,
                          lnw_ref, lnb_ref,
                          o_ref,
                          act_ref, qkv_sc, qc_sc, attn_sc,
                          *, n_head):
    l = pl.program_id(1)

    # Layer 0: load this batch-tile's embeddings into the resident activation.
    @pl.when(l == 0)
    def _():
        act_ref[...] = x_ref[...]

    Bt, S, E = mem_ref.shape
    T = mask_ref.shape[0]
    dh = E // n_head
    scale = float(dh) ** -0.5
    bf16 = jnp.bfloat16

    lnw = lnw_ref[0]          # (3, E) layer-norm scales (norm1..norm3)
    lnb = lnb_ref[0]          # (3, E) layer-norm biases
    mask = mask_ref[...]      # (T, T) additive causal mask (f32)

    def layer_norm(v, i):                                  # v: (Bt*T, E) f32
        mu = jnp.mean(v, axis=-1, keepdims=True)
        vc = v - mu
        var = jnp.mean(vc * vc, axis=-1, keepdims=True)
        return vc * jax.lax.rsqrt(var + 1e-5) * lnw[i:i + 1, :] + lnb[i:i + 1, :]

    def attend_block(qb, kb, vb, wo_bf, add_mask):
        # qb: (Tq, E) f32; kb/vb: (Tk, E) f32.  Per-head attention; the output
        # projection is accumulated head by head (no lane concatenate), scores
        # and softmax stay in f32, matmul operands are bf16.
        acc = jnp.zeros((qb.shape[0], E), jnp.float32)
        for h in range(n_head):
            lo = h * dh
            s = jnp.einsum('qd,kd->qk',
                           (qb[:, lo:lo + dh] * scale).astype(bf16),
                           kb[:, lo:lo + dh].astype(bf16),
                           preferred_element_type=jnp.float32)
            if add_mask is not None:
                s = s + add_mask
            m = jnp.max(s, axis=-1, keepdims=True)
            e = jnp.exp(s - m)
            p = e / jnp.sum(e, axis=-1, keepdims=True)
            oh = jnp.dot(p.astype(bf16), vb[:, lo:lo + dh].astype(bf16),
                         preferred_element_type=jnp.float32)
            acc = acc + jnp.dot(oh.astype(bf16), wo_bf[lo:lo + dh, :],
                                preferred_element_type=jnp.float32)
        return acc

    x = act_ref[...]                                            # (Bt*T, E) f32

    # ---- 1) masked self-attention: fused (E,3E) QKV over all Bt*T tokens ----
    qkv_sc[...] = jnp.dot(x.astype(bf16), wqkv_s_ref[0],
                          preferred_element_type=jnp.float32) + bqkv_s_ref[0]
    wo_s = wo_s_ref[0]
    for b in range(Bt):
        blk = qkv_sc[pl.ds(b * T, T), :]                        # (T, 3E)
        attn_sc[pl.ds(b * T, T), :] = attend_block(
            blk[:, :E], blk[:, E:2 * E], blk[:, 2 * E:], wo_s, mask)
    x1 = layer_norm(x + attn_sc[...] + bo_s_ref[0], 0)

    # ---- 2) cross-attention over the image-feature memory ----
    qc_sc[...] = jnp.dot(x1.astype(bf16), wq_c_ref[0],
                         preferred_element_type=jnp.float32) + bq_c_ref[0]
    wo_c = wo_c_ref[0]
    wkv_c = wkv_c_ref[0]
    bkv_c = bkv_c_ref[0]
    for b in range(Bt):
        # TODO(synk): the per-image memory K/V projection runs with M=S rows;
        # for very small S this under-fills the MXU (flattened FFN/projections
        # dominate the FLOPs so the impact is bounded).
        kvb = jnp.dot(mem_ref[b], wkv_c,
                      preferred_element_type=jnp.float32) + bkv_c    # (S, 2E)
        qb = qc_sc[pl.ds(b * T, T), :]
        attn_sc[pl.ds(b * T, T), :] = attend_block(
            qb, kvb[:, :E], kvb[:, E:], wo_c, None)
    x2 = layer_norm(x1 + attn_sc[...] + bo_c_ref[0], 1)

    # ---- 3) feed-forward (relu, 4E hidden) over all Bt*T tokens ----
    hid = jnp.maximum(jnp.dot(x2.astype(bf16), w1_ref[0],
                              preferred_element_type=jnp.float32) + b1_ref[0], 0.0)
    ff = jnp.dot(hid.astype(bf16), w2_ref[0],
                 preferred_element_type=jnp.float32) + b2_ref[0]
    y = layer_norm(x2 + ff, 2)

    act_ref[...] = y

    @pl.when(l == pl.num_programs(1) - 1)
    def _():
        o_ref[...] = y.astype(o_ref.dtype)


def decoder_stack_forward(x_flat, mem_bse, causal_tt, params, batch, tgt_len,
                          n_head, n_layers, batch_tile=None):
    ntok_total, E = x_flat.shape
    B, T = batch, tgt_len
    S = mem_bse.shape[1]
    assert ntok_total == B * T
    Bt = batch_tile if batch_tile is not None else _pick_batch_tile(B, T)
    assert B % Bt == 0, (B, Bt)
    nB = B // Bt

    weight_names = ('wqkv_s', 'bqkv_s', 'wo_s', 'bo_s',
                    'wq_c', 'bq_c', 'wkv_c', 'bkv_c', 'wo_c', 'bo_c',
                    'w1', 'b1', 'w2', 'b2', 'ln_w', 'ln_b')
    weight_args = tuple(params[k] for k in weight_names)

    def wmap(b, l):                     # per-layer weight block, streamed over l
        return (l, 0, 0)

    weight_specs = [pl.BlockSpec((1,) + tuple(w.shape[1:]), wmap)
                    for w in weight_args]

    per_step = (2 * Bt * T * E * 4 + Bt * S * E * 2 + T * T * 4
                + sum(_nbytes(w) // n_layers for w in weight_args))
    scratch_bytes = Bt * T * E * 4 * 3 + Bt * T * 3 * E * 4
    vmem = _vmem_limit_bytes(per_step, scratch_bytes)

    return pl.pallas_call(
        functools.partial(_decoder_stack_kernel, n_head=n_head),
        out_shape=jax.ShapeDtypeStruct((B * T, E), jnp.float32),
        grid_spec=pltpu.PrefetchScalarGridSpec(
            num_scalar_prefetch=0,
            grid=(nB, n_layers),                       # layer axis innermost
            in_specs=[pl.BlockSpec((Bt * T, E), lambda b, l: (b, 0)),
                      pl.BlockSpec((Bt, S, E), lambda b, l: (b, 0, 0)),
                      pl.BlockSpec((T, T), lambda b, l: (0, 0))] + weight_specs,
            out_specs=pl.BlockSpec((Bt * T, E), lambda b, l: (b, 0)),
            scratch_shapes=[pltpu.VMEM((Bt * T, E), jnp.float32),      # activation
                            pltpu.VMEM((Bt * T, 3 * E), jnp.float32),  # self QKV
                            pltpu.VMEM((Bt * T, E), jnp.float32),      # cross Q
                            pltpu.VMEM((Bt * T, E), jnp.float32)],     # attn out
        ),
        compiler_params=pltpu.CompilerParams(
            dimension_semantics=("parallel", "arbitrary"),
            vmem_limit_bytes=vmem),
    )(x_flat, mem_bse, causal_tt, *weight_args)


# ----------------------------------------------------------------------------
# Kernel 2: vocab projection, token x vocab tiled over flattened tokens
# ----------------------------------------------------------------------------
def _vocab_proj_kernel(x_ref, w_ref, b_ref, o_ref):
    o_ref[...] = (jnp.dot(x_ref[...].astype(jnp.bfloat16), w_ref[...],
                          preferred_element_type=jnp.float32)
                  + b_ref[...]).astype(o_ref.dtype)


def vocab_projection(x_flat, w_ev, b_1v):
    ntok, E = x_flat.shape
    V = w_ev.shape[1]
    tile_m = _pick_tile(ntok, (512, 256, 128, 64, 32, 16, 8))
    tile_v = _pick_tile(V, (2048, 1024, 512, 256, 128))

    per_step = tile_m * E * 4 + E * tile_v * 2 + tile_v * 4 + tile_m * tile_v * 4
    vmem = _vmem_limit_bytes(per_step)

    return pl.pallas_call(
        _vocab_proj_kernel,
        out_shape=jax.ShapeDtypeStruct((ntok, V), jnp.float32),
        grid_spec=pltpu.PrefetchScalarGridSpec(
            num_scalar_prefetch=0,
            grid=(ntok // tile_m, V // tile_v),
            in_specs=[pl.BlockSpec((tile_m, E), lambda i, j: (i, 0)),
                      pl.BlockSpec((E, tile_v), lambda i, j: (0, j)),
                      pl.BlockSpec((1, tile_v), lambda i, j: (0, j))],
            out_specs=pl.BlockSpec((tile_m, tile_v), lambda i, j: (i, j)),
        ),
        compiler_params=pltpu.CompilerParams(
            dimension_semantics=("parallel", "arbitrary"),
            vmem_limit_bytes=vmem),
    )(x_flat, w_ev, b_1v)


# ----------------------------------------------------------------------------
# Module wrapper (parameters + forward glue) + pure-JAX reference
# ----------------------------------------------------------------------------
class DecoderTransformerPallas:
    def __init__(self, feature_dim, vocab_size, n_head, n_layers, dropout, key):
        E = feature_dim
        self.feature_dim = E
        self.embed_dim = E
        self.vocab_size = vocab_size
        self.n_head = n_head
        self.n_layers = n_layers
        # TODO(synk): nn.Dropout layers are treated as eval-mode identity.

        keys = jax.random.split(key, 3)
        # nn.Embedding -> uniform(-0.1, 0.1) per init_weights
        self.embedding = jax.random.uniform(keys[0], (vocab_size, E),
                                            jnp.float32, -0.1, 0.1)
        # wdc: weight uniform(-0.1, 0.1) (stored transposed + bf16), bias = 0
        self.w_dc_t = jax.random.uniform(keys[1], (E, vocab_size),
                                         jnp.float32, -0.1, 0.1).astype(jnp.bfloat16)
        self.b_dc = jnp.zeros((1, vocab_size), jnp.float32)
        self.pe = self._build_pe(E, 5000)

        def u(k, shape, a):
            return jax.random.uniform(k, shape, jnp.float32, -a, a)

        b_attn = (6.0 / (4 * E)) ** 0.5     # xavier bound for in_proj weights
        b_lin = (1.0 / E) ** 0.5
        b_lin2 = (1.0 / (4 * E)) ** 0.5
        layer_keys = jax.random.split(keys[2], n_layers)
        per_layer = []
        for li in range(n_layers):
            ks = jax.random.split(layer_keys[li], 16)
            per_layer.append(dict(
                # masked self-attention: fused QKV (stored transposed: x @ W)
                wqkv_s=u(ks[0], (E, 3 * E), b_attn), bqkv_s=u(ks[1], (1, 3 * E), 0.05),
                wo_s=u(ks[2], (E, E), b_lin), bo_s=u(ks[3], (1, E), 0.05),
                # cross-attention over memory
                wq_c=u(ks[4], (E, E), b_attn), bq_c=u(ks[5], (1, E), 0.05),
                wkv_c=u(ks[6], (E, 2 * E), b_attn), bkv_c=u(ks[7], (1, 2 * E), 0.05),
                wo_c=u(ks[8], (E, E), b_lin), bo_c=u(ks[9], (1, E), 0.05),
                # feed-forward
                w1=u(ks[10], (E, 4 * E), b_lin), b1=u(ks[11], (1, 4 * E), 0.05),
                w2=u(ks[12], (4 * E, E), b_lin2), b2=u(ks[13], (1, E), 0.05),
                # layer norms (norm1, norm2, norm3) stacked as (3, E)
                ln_w=1.0 + u(ks[14], (3, E), 0.05), ln_b=u(ks[15], (3, E), 0.05),
            ))
        # Stack per-layer weights on a leading L axis (streamed per layer inside
        # the fused kernel); matmul weights in bf16, biases / layer norms in f32.
        matmul_keys = {'wqkv_s', 'wo_s', 'wq_c', 'wkv_c', 'wo_c', 'w1', 'w2'}
        self.params = {}
        for name in per_layer[0]:
            stacked = jnp.stack([p[name] for p in per_layer], axis=0)
            if name in matmul_keys:
                stacked = stacked.astype(jnp.bfloat16)
            self.params[name] = stacked

    @staticmethod
    def _build_pe(d_model, max_len):
        pos = jnp.arange(max_len, dtype=jnp.float32)[:, None]
        div = jnp.exp(jnp.arange(0, d_model, 2, dtype=jnp.float32)
                      * (-math.log(10000.0) / d_model))
        pe = jnp.zeros((max_len, d_model), jnp.float32)
        pe = pe.at[:, 0::2].set(jnp.sin(pos * div))
        pe = pe.at[:, 1::2].set(jnp.cos(pos * div))
        return pe

    # ----------------------------- Pallas forward ---------------------------
    def forward(self, memory, encoded_captions, caption_lengths, batch_tile=None):
        B, T = encoded_captions.shape
        E = self.feature_dim
        # Embedding gather + positional encoding (XLA glue; memory-bound gather).
        x = (jnp.take(self.embedding, encoded_captions, axis=0)
             + self.pe[:T][None, :, :]).astype(jnp.float32)            # (B, T, E)
        x_flat = x.reshape(B * T, E)
        mem = jnp.transpose(memory, (1, 0, 2)).astype(jnp.bfloat16)    # (B, S, E)
        row = jnp.arange(T, dtype=jnp.int32)[:, None]
        col = jnp.arange(T, dtype=jnp.int32)[None, :]
        causal = jnp.where(row >= col, 0.0, -1e30).astype(jnp.float32)

        h_flat = decoder_stack_forward(x_flat, mem, causal, self.params, B, T,
                                       self.n_head, self.n_layers, batch_tile)
        pred = vocab_projection(h_flat, self.w_dc_t, self.b_dc).reshape(B, T, -1)

        lens = caption_lengths.reshape(B)
        sort_ind = jnp.argsort(-lens)                                  # descending
        lens_sorted = lens[sort_ind]
        caps_sorted = encoded_captions[sort_ind]
        pred = pred[sort_ind]
        # TODO(synk): torch returns decode_lengths as a Python list; array here.
        decode_lengths = lens_sorted - 1
        return pred, caps_sorted, decode_lengths, sort_ind

    # --------------------------- pure-JAX reference -------------------------
    @staticmethod
    def _ln_ref(v, w, b):
        mu = jnp.mean(v, axis=-1, keepdims=True)
        vc = v - mu
        var = jnp.mean(vc * vc, axis=-1, keepdims=True)
        return vc * jax.lax.rsqrt(var + 1e-5) * w + b

    def _attend_ref(self, q, k, v, wo, bo, mask):
        B, Tq, E = q.shape
        Tk = k.shape[1]
        nh, dh = self.n_head, E // self.n_head
        qh = q.reshape(B, Tq, nh, dh).transpose(0, 2, 1, 3) * (float(dh) ** -0.5)
        kh = k.reshape(B, Tk, nh, dh).transpose(0, 2, 1, 3)
        vh = v.reshape(B, Tk, nh, dh).transpose(0, 2, 1, 3)
        s = jnp.einsum('bhqd,bhkd->bhqk', qh, kh)
        if mask is not None:
            s = s + mask[None, None]
        p = jax.nn.softmax(s, axis=-1)
        o = jnp.einsum('bhqk,bhkd->bhqd', p, vh).transpose(0, 2, 1, 3).reshape(B, Tq, E)
        return o @ wo + bo

    def forward_ref(self, memory, encoded_captions, caption_lengths):
        B, T = encoded_captions.shape
        E = self.feature_dim
        p = {k: v.astype(jnp.float32) for k, v in self.params.items()}
        x = jnp.take(self.embedding, encoded_captions, axis=0) + self.pe[:T][None]
        mem = jnp.transpose(memory, (1, 0, 2)).astype(jnp.float32)
        row = jnp.arange(T)[:, None]
        col = jnp.arange(T)[None, :]
        causal = jnp.where(row >= col, 0.0, -1e30).astype(jnp.float32)
        for li in range(self.n_layers):
            qkv = x @ p['wqkv_s'][li] + p['bqkv_s'][li]
            q, k, v = qkv[..., :E], qkv[..., E:2 * E], qkv[..., 2 * E:]
            sa = self._attend_ref(q, k, v, p['wo_s'][li], p['bo_s'][li], causal)
            x = self._ln_ref(x + sa, p['ln_w'][li, 0], p['ln_b'][li, 0])
            qc = x @ p['wq_c'][li] + p['bq_c'][li]
            kvc = mem @ p['wkv_c'][li] + p['bkv_c'][li]
            ca = self._attend_ref(qc, kvc[..., :E], kvc[..., E:],
                                  p['wo_c'][li], p['bo_c'][li], None)
            x = self._ln_ref(x + ca, p['ln_w'][li, 1], p['ln_b'][li, 1])
            ff = (jnp.maximum(x @ p['w1'][li] + p['b1'][li], 0.0)
                  @ p['w2'][li] + p['b2'][li])
            x = self._ln_ref(x + ff, p['ln_w'][li, 2], p['ln_b'][li, 2])
        pred = x @ self.w_dc_t.astype(jnp.float32) + self.b_dc
        lens = caption_lengths.reshape(B)
        sort_ind = jnp.argsort(-lens)
        return (pred[sort_ind], encoded_captions[sort_ind],
                lens[sort_ind] - 1, sort_ind)


if __name__ == "__main__":
    key = jax.random.PRNGKey(0)
    k_model, k_mem, k_caps = jax.random.split(key, 3)

    # Small synthetic shapes
    feature_dim, vocab_size, n_head, n_layers = 32, 40, 4, 2
    batch, S_mem, T_cap = 4, 6, 8

    model = DecoderTransformerPallas(feature_dim, vocab_size, n_head, n_layers,
                                     dropout=0.1, key=k_model)

    memory = jax.random.normal(k_mem, (S_mem, batch, feature_dim), jnp.float32)
    encoded_captions = jax.random.randint(k_caps, (batch, T_cap), 0, vocab_size,
                                          dtype=jnp.int32)
    caption_lengths = jnp.array([[6], [8], [4], [7]], dtype=jnp.int32)

    pred, caps_sorted, dec_lens, sort_ind = model.forward(
        memory, encoded_captions, caption_lengths)
    jax.block_until_ready(pred)

    pred_ref, caps_ref, dec_ref, sort_ref = model.forward_ref(
        memory, encoded_captions, caption_lengths)

    assert pred.shape == (batch, T_cap, vocab_size)
    assert jnp.array_equal(caps_sorted, caps_ref)
    assert jnp.array_equal(sort_ind, sort_ref)
    assert jnp.array_equal(dec_lens, dec_ref)
    err = float(jnp.max(jnp.abs(pred - pred_ref)))
    # bf16 matmul operands (f32 accumulation) vs. the f32 reference -> loosened
    # from the previous 1e-3 as flagged in the perf review.
    assert err < 5e-2, f"max abs error {err}"

    print("KERNEL_OK")
</pallas_src>

<mosaic_0001>
module attributes {stable_mosaic.version = 11 : i64} {
  func.func @_decoder_stack_kernel(%arg0: i32, %arg1: i32, %arg2: memref<16x32xf32, #tpu.memory_space<vmem>>, %arg3: memref<2x6x32xbf16, #tpu.memory_space<vmem>>, %arg4: memref<8x8xf32, #tpu.memory_space<vmem>>, %arg5: memref<1x32x96xbf16, #tpu.memory_space<vmem>>, %arg6: memref<1x1x96xf32, #tpu.memory_space<vmem>>, %arg7: memref<1x32x32xbf16, #tpu.memory_space<vmem>>, %arg8: memref<1x1x32xf32, #tpu.memory_space<vmem>>, %arg9: memref<1x32x32xbf16, #tpu.memory_space<vmem>>, %arg10: memref<1x1x32xf32, #tpu.memory_space<vmem>>, %arg11: memref<1x32x64xbf16, #tpu.memory_space<vmem>>, %arg12: memref<1x1x64xf32, #tpu.memory_space<vmem>>, %arg13: memref<1x32x32xbf16, #tpu.memory_space<vmem>>, %arg14: memref<1x1x32xf32, #tpu.memory_space<vmem>>, %arg15: memref<1x32x128xbf16, #tpu.memory_space<vmem>>, %arg16: memref<1x1x128xf32, #tpu.memory_space<vmem>>, %arg17: memref<1x128x32xbf16, #tpu.memory_space<vmem>>, %arg18: memref<1x1x32xf32, #tpu.memory_space<vmem>>, %arg19: memref<1x3x32xf32, #tpu.memory_space<vmem>>, %arg20: memref<1x3x32xf32, #tpu.memory_space<vmem>>, %arg21: memref<16x32xf32, #tpu.memory_space<vmem>>, %arg22: memref<16x32xf32, #tpu.memory_space<vmem>>, %arg23: memref<16x96xf32, #tpu.memory_space<vmem>>, %arg24: memref<16x32xf32, #tpu.memory_space<vmem>>, %arg25: memref<16x32xf32, #tpu.memory_space<vmem>>) attributes {dimension_semantics = [#tpu.dimension_semantics<parallel>, #tpu.dimension_semantics<arbitrary>], iteration_bounds = array<i64: 2, 2>, scalar_prefetch = 0 : i64, scratch_operands = 4 : i64, tpu.core_type = #tpu.core_type<tc>, window_params = [{transform_indices = @transform_0, window_bounds = array<i64: 16, 32>}, {transform_indices = @transform_1, window_bounds = array<i64: 2, 6, 32>}, {pipeline_mode = #tpu.pipeline_mode<synchronous>, transform_indices = @transform_2, window_bounds = array<i64: 8, 8>}, {transform_indices = @transform_3, window_bounds = array<i64: 1, 32, 96>}, {transform_indices = @transform_4, window_bounds = array<i64: 1, 1, 96>}, {transform_indices = @transform_5, window_bounds = array<i64: 1, 32, 32>}, {transform_indices = @transform_6, window_bounds = array<i64: 1, 1, 32>}, {transform_indices = @transform_7, window_bounds = array<i64: 1, 32, 32>}, {transform_indices = @transform_8, window_bounds = array<i64: 1, 1, 32>}, {transform_indices = @transform_9, window_bounds = array<i64: 1, 32, 64>}, {transform_indices = @transform_10, window_bounds = array<i64: 1, 1, 64>}, {transform_indices = @transform_11, window_bounds = array<i64: 1, 32, 32>}, {transform_indices = @transform_12, window_bounds = array<i64: 1, 1, 32>}, {transform_indices = @transform_13, window_bounds = array<i64: 1, 32, 128>}, {transform_indices = @transform_14, window_bounds = array<i64: 1, 1, 128>}, {transform_indices = @transform_15, window_bounds = array<i64: 1, 128, 32>}, {transform_indices = @transform_16, window_bounds = array<i64: 1, 1, 32>}, {transform_indices = @transform_17, window_bounds = array<i64: 1, 3, 32>}, {transform_indices = @transform_18, window_bounds = array<i64: 1, 3, 32>}, {transform_indices = @transform_19, window_bounds = array<i64: 16, 32>}]} {
    %c0_i32 = arith.constant 0 : i32
    %0 = arith.cmpi eq, %arg1, %c0_i32 : i32
    %1 = arith.extui %0 : i1 to i32
    %c0_i32_0 = arith.constant 0 : i32
    %2 = arith.cmpi ne, %1, %c0_i32_0 : i32
    scf.if %2 {
      %c0_204 = arith.constant 0 : index
      %c0_205 = arith.constant 0 : index
      %560 = vector.load %arg2[%c0_204, %c0_205] : memref<16x32xf32, #tpu.memory_space<vmem>>, vector<16x32xf32>
      %c0_206 = arith.constant 0 : index
      %c0_207 = arith.constant 0 : index
      %561 = vector.load %arg22[%c0_206, %c0_207] : memref<16x32xf32, #tpu.memory_space<vmem>>, vector<16x32xf32>
      tpu.vector_store %arg22[%c0_206, %c0_207], %560 {strides = array<i32>} : memref<16x32xf32, #tpu.memory_space<vmem>>, vector<16x32xf32>,
    } else {
    }
    %c0 = arith.constant 0 : index
    %c0_1 = arith.constant 0 : index
    %c0_2 = arith.constant 0 : index
    %3 = vector.load %arg19[%c0, %c0_1, %c0_2] : memref<1x3x32xf32, #tpu.memory_space<vmem>>, vector<1x3x32xf32>
    %4 = vector.shape_cast %3 : vector<1x3x32xf32> to vector<3x32xf32>
    %c0_3 = arith.constant 0 : index
    %c0_4 = arith.constant 0 : index
    %c0_5 = arith.constant 0 : index
    %5 = vector.load %arg20[%c0_3, %c0_4, %c0_5] : memref<1x3x32xf32, #tpu.memory_space<vmem>>, vector<1x3x32xf32>
    %6 = vector.shape_cast %5 : vector<1x3x32xf32> to vector<3x32xf32>
    %c0_6 = arith.constant 0 : index
    %c0_7 = arith.constant 0 : index
    %7 = vector.load %arg4[%c0_6, %c0_7] : memref<8x8xf32, #tpu.memory_space<vmem>>, vector<8x8xf32>
    %c0_8 = arith.constant 0 : index
    %c0_9 = arith.constant 0 : index
    %8 = vector.load %arg22[%c0_8, %c0_9] : memref<16x32xf32, #tpu.memory_space<vmem>>, vector<16x32xf32>
    %9 = arith.truncf %8 : vector<16x32xf32> to vector<16x32xbf16>
    %c0_10 = arith.constant 0 : index
    %c0_11 = arith.constant 0 : index
    %c0_12 = arith.constant 0 : index
    %10 = vector.load %arg5[%c0_10, %c0_11, %c0_12] : memref<1x32x96xbf16, #tpu.memory_space<vmem>>, vector<1x32x96xbf16>
    %11 = vector.shape_cast %10 : vector<1x32x96xbf16> to vector<32x96xbf16>
    %cst = arith.constant dense<0.000000e+00> : vector<16x96xf32>
    %12 = tpu.matmul %9, %11, %cst {dimension_numbers = #tpu.dot_dimension_numbers<[1], [0], [0], [1], [0, 0, 1, 1], [], []>} : vector<16x32xbf16>, vector<32x96xbf16>, vector<16x96xf32> -> vector<16x96xf32>
    %c0_13 = arith.constant 0 : index
    %c0_14 = arith.constant 0 : index
    %c0_15 = arith.constant 0 : index
    %13 = vector.load %arg6[%c0_13, %c0_14, %c0_15] : memref<1x1x96xf32, #tpu.memory_space<vmem>>, vector<1x1x96xf32>
    %14 = vector.shape_cast %13 : vector<1x1x96xf32> to vector<1x96xf32>
    %15 = vector.broadcast %14 : vector<1x96xf32> to vector<16x96xf32>
    %16 = arith.addf %12, %15 : vector<16x96xf32>
    %c0_16 = arith.constant 0 : index
    %c0_17 = arith.constant 0 : index
    %17 = vector.load %arg23[%c0_16, %c0_17] : memref<16x96xf32, #tpu.memory_space<vmem>>, vector<16x96xf32>
    tpu.vector_store %arg23[%c0_16, %c0_17], %16 {strides = array<i32>} : memref<16x96xf32, #tpu.memory_space<vmem>>, vector<16x96xf32>,
    %c0_18 = arith.constant 0 : index
    %c0_19 = arith.constant 0 : index
    %c0_20 = arith.constant 0 : index
    %18 = vector.load %arg7[%c0_18, %c0_19, %c0_20] : memref<1x32x32xbf16, #tpu.memory_space<vmem>>, vector<1x32x32xbf16>
    %19 = vector.shape_cast %18 : vector<1x32x32xbf16> to vector<32x32xbf16>
    %c0_21 = arith.constant 0 : index
    %c0_22 = arith.constant 0 : index
    %20 = vector.load %arg23[%c0_21, %c0_22] : memref<16x96xf32, #tpu.memory_space<vmem>>, vector<8x96xf32>
    %21 = vector.extract_strided_slice %20 {offsets = [0, 0], sizes = [8, 32], strides = [1, 1]} : vector<8x96xf32> to vector<8x32xf32>
    %22 = vector.extract_strided_slice %20 {offsets = [0, 32], sizes = [8, 32], strides = [1, 1]} : vector<8x96xf32> to vector<8x32xf32>
    %23 = vector.extract_strided_slice %20 {offsets = [0, 64], sizes = [8, 32], strides = [1, 1]} : vector<8x96xf32> to vector<8x32xf32>
    %cst_23 = arith.constant 0.000000e+00 : f32
    %24 = vector.broadcast %cst_23 : f32 to vector<8x32xf32>
    %25 = vector.extract_strided_slice %21 {offsets = [0, 0], sizes = [8, 8], strides = [1, 1]} : vector<8x32xf32> to vector<8x8xf32>
    %cst_24 = arith.constant 0.353553385 : f32
    %26 = vector.broadcast %cst_24 : f32 to vector<8x8xf32>
    %27 = arith.mulf %25, %26 : vector<8x8xf32>
    %28 = arith.truncf %27 : vector<8x8xf32> to vector<8x8xbf16>
    %29 = vector.extract_strided_slice %22 {offsets = [0, 0], sizes = [8, 8], strides = [1, 1]} : vector<8x32xf32> to vector<8x8xf32>
    %30 = arith.truncf %29 : vector<8x8xf32> to vector<8x8xbf16>
    "tpu.trace_start"() <{level = 10 : i32, message = "qd,kd->qk"}> : () -> ()
    %cst_25 = arith.constant dense<0.000000e+00> : vector<8x8xf32>
    %31 = tpu.matmul %28, %30, %cst_25 {dimension_numbers = #tpu.dot_dimension_numbers<[1], [1], [0], [0], [0, 0, 1, 0], [], []>} : vector<8x8xbf16>, vector<8x8xbf16>, vector<8x8xf32> -> vector<8x8xf32>
    "tpu.trace_stop"() : () -> ()
    %32 = arith.addf %31, %7 : vector<8x8xf32>
    %cst_26 = arith.constant dense<0xFF800000> : vector<8xf32>
    %33 = vector.multi_reduction <maximumf>, %32, %cst_26 [1] : vector<8x8xf32> to vector<8xf32>
    %34 = vector.shape_cast %33 : vector<8xf32> to vector<8x1xf32>
    %35 = vector.broadcast %34 : vector<8x1xf32> to vector<8x8xf32>
    %36 = arith.subf %32, %35 : vector<8x8xf32>
    %37 = math.exp %36 : vector<8x8xf32>
    %cst_27 = arith.constant dense<0.000000e+00> : vector<8xf32>
    %38 = vector.multi_reduction <add>, %37, %cst_27 [1] : vector<8x8xf32> to vector<8xf32>
    %39 = vector.shape_cast %38 : vector<8xf32> to vector<8x1xf32>
    %40 = vector.broadcast %39 : vector<8x1xf32> to vector<8x8xf32>
    %41 = arith.divf %37, %40 : vector<8x8xf32>
    %42 = arith.truncf %41 : vector<8x8xf32> to vector<8x8xbf16>
    %43 = vector.extract_strided_slice %23 {offsets = [0, 0], sizes = [8, 8], strides = [1, 1]} : vector<8x32xf32> to vector<8x8xf32>
    %44 = arith.truncf %43 : vector<8x8xf32> to vector<8x8xbf16>
    %cst_28 = arith.constant dense<0.000000e+00> : vector<8x8xf32>
    %45 = tpu.matmul %42, %44, %cst_28 {dimension_numbers = #tpu.dot_dimension_numbers<[1], [0], [0], [1], [0, 0, 1, 1], [], []>} : vector<8x8xbf16>, vector<8x8xbf16>, vector<8x8xf32> -> vector<8x8xf32>
    %46 = arith.truncf %45 : vector<8x8xf32> to vector<8x8xbf16>
    %47 = vector.extract_strided_slice %19 {offsets = [0, 0], sizes = [8, 32], strides = [1, 1]} : vector<32x32xbf16> to vector<8x32xbf16>
    %cst_29 = arith.constant dense<0.000000e+00> : vector<8x32xf32>
    %48 = tpu.matmul %46, %47, %cst_29 {dimension_numbers = #tpu.dot_dimension_numbers<[1], [0], [0], [1], [0, 0, 1, 1], [], []>} : vector<8x8xbf16>, vector<8x32xbf16>, vector<8x32xf32> -> vector<8x32xf32>
    %49 = arith.addf %24, %48 : vector<8x32xf32>
    %50 = vector.extract_strided_slice %21 {offsets = [0, 8], sizes = [8, 8], strides = [1, 1]} : vector<8x32xf32> to vector<8x8xf32>
    %cst_30 = arith.constant 0.353553385 : f32
    %51 = vector.broadcast %cst_30 : f32 to vector<8x8xf32>
    %52 = arith.mulf %50, %51 : vector<8x8xf32>
    %53 = arith.truncf %52 : vector<8x8xf32> to vector<8x8xbf16>
    %54 = vector.extract_strided_slice %22 {offsets = [0, 8], sizes = [8, 8], strides = [1, 1]} : vector<8x32xf32> to vector<8x8xf32>
    %55 = arith.truncf %54 : vector<8x8xf32> to vector<8x8xbf16>
    "tpu.trace_start"() <{level = 10 : i32, message = "qd,kd->qk"}> : () -> ()
    %cst_31 = arith.constant dense<0.000000e+00> : vector<8x8xf32>
    %56 = tpu.matmul %53, %55, %cst_31 {dimension_numbers = #tpu.dot_dimension_numbers<[1], [1], [0], [0], [0, 0, 1, 0], [], []>} : vector<8x8xbf16>, vector<8x8xbf16>, vector<8x8xf32> -> vector<8x8xf32>
    "tpu.trace_stop"() : () -> ()
    %57 = arith.addf %56, %7 : vector<8x8xf32>
    %cst_32 = arith.constant dense<0xFF800000> : vector<8xf32>
    %58 = vector.multi_reduction <maximumf>, %57, %cst_32 [1] : vector<8x8xf32> to vector<8xf32>
    %59 = vector.shape_cast %58 : vector<8xf32> to vector<8x1xf32>
    %60 = vector.broadcast %59 : vector<8x1xf32> to vector<8x8xf32>
    %61 = arith.subf %57, %60 : vector<8x8xf32>
    %62 = math.exp %61 : vector<8x8xf32>
    %cst_33 = arith.constant dense<0.000000e+00> : vector<8xf32>
    %63 = vector.multi_reduction <add>, %62, %cst_33 [1] : vector<8x8xf32> to vector<8xf32>
    %64 = vector.shape_cast %63 : vector<8xf32> to vector<8x1xf32>
    %65 = vector.broadcast %64 : vector<8x1xf32> to vector<8x8xf32>
    %66 = arith.divf %62, %65 : vector<8x8xf32>
    %67 = arith.truncf %66 : vector<8x8xf32> to vector<8x8xbf16>
    %68 = vector.extract_strided_slice %23 {offsets = [0, 8], sizes = [8, 8], strides = [1, 1]} : vector<8x32xf32> to vector<8x8xf32>
    %69 = arith.truncf %68 : vector<8x8xf32> to vector<8x8xbf16>
    %cst_34 = arith.constant dense<0.000000e+00> : vector<8x8xf32>
    %70 = tpu.matmul %67, %69, %cst_34 {dimension_numbers = #tpu.dot_dimension_numbers<[1], [0], [0], [1], [0, 0, 1, 1], [], []>} : vector<8x8xbf16>, vector<8x8xbf16>, vector<8x8xf32> -> vector<8x8xf32>
    %71 = arith.truncf %70 : vector<8x8xf32> to vector<8x8xbf16>
    %72 = vector.extract_strided_slice %19 {offsets = [8, 0], sizes = [8, 32], strides = [1, 1]} : vector<32x32xbf16> to vector<8x32xbf16>
    %cst_35 = arith.constant dense<0.000000e+00> : vector<8x32xf32>
    %73 = tpu.matmul %71, %72, %cst_35 {dimension_numbers = #tpu.dot_dimension_numbers<[1], [0], [0], [1], [0, 0, 1, 1], [], []>} : vector<8x8xbf16>, vector<8x32xbf16>, vector<8x32xf32> -> vector<8x32xf32>
    %74 = arith.addf %49, %73 : vector<8x32xf32>
    %75 = vector.extract_strided_slice %21 {offsets = [0, 16], sizes = [8, 8], strides = [1, 1]} : vector<8x32xf32> to vector<8x8xf32>
    %cst_36 = arith.constant 0.353553385 : f32
    %76 = vector.broadcast %cst_36 : f32 to vector<8x8xf32>
    %77 = arith.mulf %75, %76 : vector<8x8xf32>
    %78 = arith.truncf %77 : vector<8x8xf32> to vector<8x8xbf16>
    %79 = vector.extract_strided_slice %22 {offsets = [0, 16], sizes = [8, 8], strides = [1, 1]} : vector<8x32xf32> to vector<8x8xf32>
    %80 = arith.truncf %79 : vector<8x8xf32> to vector<8x8xbf16>
    "tpu.trace_start"() <{level = 10 : i32, message = "qd,kd->qk"}> : () -> ()
    %cst_37 = arith.constant dense<0.000000e+00> : vector<8x8xf32>
    %81 = tpu.matmul %78, %80, %cst_37 {dimension_numbers = #tpu.dot_dimension_numbers<[1], [1], [0], [0], [0, 0, 1, 0], [], []>} : vector<8x8xbf16>, vector<8x8xbf16>, vector<8x8xf32> -> vector<8x8xf32>
    "tpu.trace_stop"() : () -> ()
    %82 = arith.addf %81, %7 : vector<8x8xf32>
    %cst_38 = arith.constant dense<0xFF800000> : vector<8xf32>
    %83 = vector.multi_reduction <maximumf>, %82, %cst_38 [1] : vector<8x8xf32> to vector<8xf32>
    %84 = vector.shape_cast %83 : vector<8xf32> to vector<8x1xf32>
    %85 = vector.broadcast %84 : vector<8x1xf32> to vector<8x8xf32>
    %86 = arith.subf %82, %85 : vector<8x8xf32>
    %87 = math.exp %86 : vector<8x8xf32>
    %cst_39 = arith.constant dense<0.000000e+00> : vector<8xf32>
    %88 = vector.multi_reduction <add>, %87, %cst_39 [1] : vector<8x8xf32> to vector<8xf32>
    %89 = vector.shape_cast %88 : vector<8xf32> to vector<8x1xf32>
    %90 = vector.broadcast %89 : vector<8x1xf32> to vector<8x8xf32>
    %91 = arith.divf %87, %90 : vector<8x8xf32>
    %92 = arith.truncf %91 : vector<8x8xf32> to vector<8x8xbf16>
    %93 = vector.extract_strided_slice %23 {offsets = [0, 16], sizes = [8, 8], strides = [1, 1]} : vector<8x32xf32> to vector<8x8xf32>
    %94 = arith.truncf %93 : vector<8x8xf32> to vector<8x8xbf16>
    %cst_40 = arith.constant dense<0.000000e+00> : vector<8x8xf32>
    %95 = tpu.matmul %92, %94, %cst_40 {dimension_numbers = #tpu.dot_dimension_numbers<[1], [0], [0], [1], [0, 0, 1, 1], [], []>} : vector<8x8xbf16>, vector<8x8xbf16>, vector<8x8xf32> -> vector<8x8xf32>
    %96 = arith.truncf %95 : vector<8x8xf32> to vector<8x8xbf16>
    %97 = vector.extract_strided_slice %19 {offsets = [16, 0], sizes = [8, 32], strides = [1, 1]} : vector<32x32xbf16> to vector<8x32xbf16>
    %cst_41 = arith.constant dense<0.000000e+00> : vector<8x32xf32>
    %98 = tpu.matmul %96, %97, %cst_41 {dimension_numbers = #tpu.dot_dimension_numbers<[1], [0], [0], [1], [0, 0, 1, 1], [], []>} : vector<8x8xbf16>, vector<8x32xbf16>, vector<8x32xf32> -> vector<8x32xf32>
    %99 = arith.addf %74, %98 : vector<8x32xf32>
    %100 = vector.extract_strided_slice %21 {offsets = [0, 24], sizes = [8, 8], strides = [1, 1]} : vector<8x32xf32> to vector<8x8xf32>
    %cst_42 = arith.constant 0.353553385 : f32
    %101 = vector.broadcast %cst_42 : f32 to vector<8x8xf32>
    %102 = arith.mulf %100, %101 : vector<8x8xf32>
    %103 = arith.truncf %102 : vector<8x8xf32> to vector<8x8xbf16>
    %104 = vector.extract_strided_slice %22 {offsets = [0, 24], sizes = [8, 8], strides = [1, 1]} : vector<8x32xf32> to vector<8x8xf32>
    %105 = arith.truncf %104 : vector<8x8xf32> to vector<8x8xbf16>
    "tpu.trace_start"() <{level = 10 : i32, message = "qd,kd->qk"}> : () -> ()
    %cst_43 = arith.constant dense<0.000000e+00> : vector<8x8xf32>
    %106 = tpu.matmul %103, %105, %cst_43 {dimension_numbers = #tpu.dot_dimension_numbers<[1], [1], [0], [0], [0, 0, 1, 0], [], []>} : vector<8x8xbf16>, vector<8x8xbf16>, vector<8x8xf32> -> vector<8x8xf32>
    "tpu.trace_stop"() : () -> ()
    %107 = arith.addf %106, %7 : vector<8x8xf32>
    %cst_44 = arith.constant dense<0xFF800000> : vector<8xf32>
    %108 = vector.multi_reduction <maximumf>, %107, %cst_44 [1] : vector<8x8xf32> to vector<8xf32>
    %109 = vector.shape_cast %108 : vector<8xf32> to vector<8x1xf32>
    %110 = vector.broadcast %109 : vector<8x1xf32> to vector<8x8xf32>
    %111 = arith.subf %107, %110 : vector<8x8xf32>
    %112 = math.exp %111 : vector<8x8xf32>
    %cst_45 = arith.constant dense<0.000000e+00> : vector<8xf32>
    %113 = vector.multi_reduction <add>, %112, %cst_45 [1] : vector<8x8xf32> to vector<8xf32>
    %114 = vector.shape_cast %113 : vector<8xf32> to vector<8x1xf32>
    %115 = vector.broadcast %114 : vector<8x1xf32> to vector<8x8xf32>
    %116 = arith.divf %112, %115 : vector<8x8xf32>
    %117 = arith.truncf %116 : vector<8x8xf32> to vector<8x8xbf16>
    %118 = vector.extract_strided_slice %23 {offsets = [0, 24], sizes = [8, 8], strides = [1, 1]} : vector<8x32xf32> to vector<8x8xf32>
    %119 = arith.truncf %118 : vector<8x8xf32> to vector<8x8xbf16>
    %cst_46 = arith.constant dense<0.000000e+00> : vector<8x8xf32>
    %120 = tpu.matmul %117, %119, %cst_46 {dimension_numbers = #tpu.dot_dimension_numbers<[1], [0], [0], [1], [0, 0, 1, 1], [], []>} : vector<8x8xbf16>, vector<8x8xbf16>, vector<8x8xf32> -> vector<8x8xf32>
    %121 = arith.truncf %120 : vector<8x8xf32> to vector<8x8xbf16>
    %122 = vector.extract_strided_slice %19 {offsets = [24, 0], sizes = [8, 32], strides = [1, 1]} : vector<32x32xbf16> to vector<8x32xbf16>
    %cst_47 = arith.constant dense<0.000000e+00> : vector<8x32xf32>
    %123 = tpu.matmul %121, %122, %cst_47 {dimension_numbers = #tpu.dot_dimension_numbers<[1], [0], [0], [1], [0, 0, 1, 1], [], []>} : vector<8x8xbf16>, vector<8x32xbf16>, vector<8x32xf32> -> vector<8x32xf32>
    %124 = arith.addf %99, %123 : vector<8x32xf32>
    %c0_48 = arith.constant 0 : index
    %c0_49 = arith.constant 0 : index
    %125 = vector.load %arg25[%c0_48, %c0_49] : memref<16x32xf32, #tpu.memory_space<vmem>>, vector<8x32xf32>
    tpu.vector_store %arg25[%c0_48, %c0_49], %124 {strides = array<i32>} : memref<16x32xf32, #tpu.memory_space<vmem>>, vector<8x32xf32>,
    %c8 = arith.constant 8 : index
    %c0_50 = arith.constant 0 : index
    %126 = vector.load %arg23[%c8, %c0_50] : memref<16x96xf32, #tpu.memory_space<vmem>>, vector<8x96xf32>
    %127 = vector.extract_strided_slice %126 {offsets = [0, 0], sizes = [8, 32], strides = [1, 1]} : vector<8x96xf32> to vector<8x32xf32>
    %128 = vector.extract_strided_slice %126 {offsets = [0, 32], sizes = [8, 32], strides = [1, 1]} : vector<8x96xf32> to vector<8x32xf32>
    %129 = vector.extract_strided_slice %126 {offsets = [0, 64], sizes = [8, 32], strides = [1, 1]} : vector<8x96xf32> to vector<8x32xf32>
    %cst_51 = arith.constant 0.000000e+00 : f32
    %130 = vector.broadcast %cst_51 : f32 to vector<8x32xf32>
    %131 = vector.extract_strided_slice %127 {offsets = [0, 0], sizes = [8, 8], strides = [1, 1]} : vector<8x32xf32> to vector<8x8xf32>
    %cst_52 = arith.constant 0.353553385 : f32
    %132 = vector.broadcast %cst_52 : f32 to vector<8x8xf32>
    %133 = arith.mulf %131, %132 : vector<8x8xf32>
    %134 = arith.truncf %133 : vector<8x8xf32> to vector<8x8xbf16>
    %135 = vector.extract_strided_slice %128 {offsets = [0, 0], sizes = [8, 8], strides = [1, 1]} : vector<8x32xf32> to vector<8x8xf32>
    %136 = arith.truncf %135 : vector<8x8xf32> to vector<8x8xbf16>
    "tpu.trace_start"() <{level = 10 : i32, message = "qd,kd->qk"}> : () -> ()
    %cst_53 = arith.constant dense<0.000000e+00> : vector<8x8xf32>
    %137 = tpu.matmul %134, %136, %cst_53 {dimension_numbers = #tpu.dot_dimension_numbers<[1], [1], [0], [0], [0, 0, 1, 0], [], []>} : vector<8x8xbf16>, vector<8x8xbf16>, vector<8x8xf32> -> vector<8x8xf32>
    "tpu.trace_stop"() : () -> ()
    %138 = arith.addf %137, %7 : vector<8x8xf32>
    %cst_54 = arith.constant dense<0xFF800000> : vector<8xf32>
    %139 = vector.multi_reduction <maximumf>, %138, %cst_54 [1] : vector<8x8xf32> to vector<8xf32>
    %140 = vector.shape_cast %139 : vector<8xf32> to vector<8x1xf32>
    %141 = vector.broadcast %140 : vector<8x1xf32> to vector<8x8xf32>
    %142 = arith.subf %138, %141 : vector<8x8xf32>
    %143 = math.exp %142 : vector<8x8xf32>
    %cst_55 = arith.constant dense<0.000000e+00> : vector<8xf32>
    %144 = vector.multi_reduction <add>, %143, %cst_55 [1] : vector<8x8xf32> to vector<8xf32>
    %145 = vector.shape_cast %144 : vector<8xf32> to vector<8x1xf32>
    %146 = vector.broadcast %145 : vector<8x1xf32> to vector<8x8xf32>
    %147 = arith.divf %143, %146 : vector<8x8xf32>
    %148 = arith.truncf %147 : vector<8x8xf32> to vector<8x8xbf16>
    %149 = vector.extract_strided_slice %129 {offsets = [0, 0], sizes = [8, 8], strides = [1, 1]} : vector<8x32xf32> to vector<8x8xf32>
    %150 = arith.truncf %149 : vector<8x8xf32> to vector<8x8xbf16>
    %cst_56 = arith.constant dense<0.000000e+00> : vector<8x8xf32>
    %151 = tpu.matmul %148, %150, %cst_56 {dimension_numbers = #tpu.dot_dimension_numbers<[1], [0], [0], [1], [0, 0, 1, 1], [], []>} : vector<8x8xbf16>, vector<8x8xbf16>, vector<8x8xf32> -> vector<8x8xf32>
    %152 = arith.truncf %151 : vector<8x8xf32> to vector<8x8xbf16>
    %153 = vector.extract_strided_slice %19 {offsets = [0, 0], sizes = [8, 32], strides = [1, 1]} : vector<32x32xbf16> to vector<8x32xbf16>
    %cst_57 = arith.constant dense<0.000000e+00> : vector<8x32xf32>
    %154 = tpu.matmul %152, %153, %cst_57 {dimension_numbers = #tpu.dot_dimension_numbers<[1], [0], [0], [1], [0, 0, 1, 1], [], []>} : vector<8x8xbf16>, vector<8x32xbf16>, vector<8x32xf32> -> vector<8x32xf32>
    %155 = arith.addf %130, %154 : vector<8x32xf32>
    %156 = vector.extract_strided_slice %127 {offsets = [0, 8], sizes = [8, 8], strides = [1, 1]} : vector<8x32xf32> to vector<8x8xf32>
    %cst_58 = arith.constant 0.353553385 : f32
    %157 = vector.broadcast %cst_58 : f32 to vector<8x8xf32>
    %158 = arith.mulf %156, %157 : vector<8x8xf32>
    %159 = arith.truncf %158 : vector<8x8xf32> to vector<8x8xbf16>
    %160 = vector.extract_strided_slice %128 {offsets = [0, 8], sizes = [8, 8], strides = [1, 1]} : vector<8x32xf32> to vector<8x8xf32>
    %161 = arith.truncf %160 : vector<8x8xf32> to vector<8x8xbf16>
    "tpu.trace_start"() <{level = 10 : i32, message = "qd,kd->qk"}> : () -> ()
    %cst_59 = arith.constant dense<0.000000e+00> : vector<8x8xf32>
    %162 = tpu.matmul %159, %161, %cst_59 {dimension_numbers = #tpu.dot_dimension_numbers<[1], [1], [0], [0], [0, 0, 1, 0], [], []>} : vector<8x8xbf16>, vector<8x8xbf16>, vector<8x8xf32> -> vector<8x8xf32>
    "tpu.trace_stop"() : () -> ()
    %163 = arith.addf %162, %7 : vector<8x8xf32>
    %cst_60 = arith.constant dense<0xFF800000> : vector<8xf32>
    %164 = vector.multi_reduction <maximumf>, %163, %cst_60 [1] : vector<8x8xf32> to vector<8xf32>
    %165 = vector.shape_cast %164 : vector<8xf32> to vector<8x1xf32>
    %166 = vector.broadcast %165 : vector<8x1xf32> to vector<8x8xf32>
    %167 = arith.subf %163, %166 : vector<8x8xf32>
    %168 = math.exp %167 : vector<8x8xf32>
    %cst_61 = arith.constant dense<0.000000e+00> : vector<8xf32>
    %169 = vector.multi_reduction <add>, %168, %cst_61 [1] : vector<8x8xf32> to vector<8xf32>
    %170 = vector.shape_cast %169 : vector<8xf32> to vector<8x1xf32>
    %171 = vector.broadcast %170 : vector<8x1xf32> to vector<8x8xf32>
    %172 = arith.divf %168, %171 : vector<8x8xf32>
    %173 = arith.truncf %172 : vector<8x8xf32> to vector<8x8xbf16>
    %174 = vector.extract_strided_slice %129 {offsets = [0, 8], sizes = [8, 8], strides = [1, 1]} : vector<8x32xf32> to vector<8x8xf32>
    %175 = arith.truncf %174 : vector<8x8xf32> to vector<8x8xbf16>
    %cst_62 = arith.constant dense<0.000000e+00> : vector<8x8xf32>
    %176 = tpu.matmul %173, %175, %cst_62 {dimension_numbers = #tpu.dot_dimension_numbers<[1], [0], [0], [1], [0, 0, 1, 1], [], []>} : vector<8x8xbf16>, vector<8x8xbf16>, vector<8x8xf32> -> vector<8x8xf32>
    %177 = arith.truncf %176 : vector<8x8xf32> to vector<8x8xbf16>
    %178 = vector.extract_strided_slice %19 {offsets = [8, 0], sizes = [8, 32], strides = [1, 1]} : vector<32x32xbf16> to vector<8x32xbf16>
    %cst_63 = arith.constant dense<0.000000e+00> : vector<8x32xf32>
    %179 = tpu.matmul %177, %178, %cst_63 {dimension_numbers = #tpu.dot_dimension_numbers<[1], [0], [0], [1], [0, 0, 1, 1], [], []>} : vector<8x8xbf16>, vector<8x32xbf16>, vector<8x32xf32> -> vector<8x32xf32>
    %180 = arith.addf %155, %179 : vector<8x32xf32>
    %181 = vector.extract_strided_slice %127 {offsets = [0, 16], sizes = [8, 8], strides = [1, 1]} : vector<8x32xf32> to vector<8x8xf32>
    %cst_64 = arith.constant 0.353553385 : f32
    %182 = vector.broadcast %cst_64 : f32 to vector<8x8xf32>
    %183 = arith.mulf %181, %182 : vector<8x8xf32>
    %184 = arith.truncf %183 : vector<8x8xf32> to vector<8x8xbf16>
    %185 = vector.extract_strided_slice %128 {offsets = [0, 16], sizes = [8, 8], strides = [1, 1]} : vector<8x32xf32> to vector<8x8xf32>
    %186 = arith.truncf %185 : vector<8x8xf32> to vector<8x8xbf16>
    "tpu.trace_start"() <{level = 10 : i32, message = "qd,kd->qk"}> : () -> ()
    %cst_65 = arith.constant dense<0.000000e+00> : vector<8x8xf32>
    %187 = tpu.matmul %184, %186, %cst_65 {dimension_numbers = #tpu.dot_dimension_numbers<[1], [1], [0], [0], [0, 0, 1, 0], [], []>} : vector<8x8xbf16>, vector<8x8xbf16>, vector<8x8xf32> -> vector<8x8xf32>
    "tpu.trace_stop"() : () -> ()
    %188 = arith.addf %187, %7 : vector<8x8xf32>
    %cst_66 = arith.constant dense<0xFF800000> : vector<8xf32>
    %189 = vector.multi_reduction <maximumf>, %188, %cst_66 [1] : vector<8x8xf32> to vector<8xf32>
    %190 = vector.shape_cast %189 : vector<8xf32> to vector<8x1xf32>
    %191 = vector.broadcast %190 : vector<8x1xf32> to vector<8x8xf32>
    %192 = arith.subf %188, %191 : vector<8x8xf32>
    %193 = math.exp %192 : vector<8x8xf32>
    %cst_67 = arith.constant dense<0.000000e+00> : vector<8xf32>
    %194 = vector.multi_reduction <add>, %193, %cst_67 [1] : vector<8x8xf32> to vector<8xf32>
    %195 = vector.shape_cast %194 : vector<8xf32> to vector<8x1xf32>
    %196 = vector.broadcast %195 : vector<8x1xf32> to vector<8x8xf32>
    %197 = arith.divf %193, %196 : vector<8x8xf32>
    %198 = arith.truncf %197 : vector<8x8xf32> to vector<8x8xbf16>
    %199 = vector.extract_strided_slice %129 {offsets = [0, 16], sizes = [8, 8], strides = [1, 1]} : vector<8x32xf32> to vector<8x8xf32>
    %200 = arith.truncf %199 : vector<8x8xf32> to vector<8x8xbf16>
    %cst_68 = arith.constant dense<0.000000e+00> : vector<8x8xf32>
    %201 = tpu.matmul %198, %200, %cst_68 {dimension_numbers = #tpu.dot_dimension_numbers<[1], [0], [0], [1], [0, 0, 1, 1], [], []>} : vector<8x8xbf16>, vector<8x8xbf16>, vector<8x8xf32> -> vector<8x8xf32>
    %202 = arith.truncf %201 : vector<8x8xf32> to vector<8x8xbf16>
    %203 = vector.extract_strided_slice %19 {offsets = [16, 0], sizes = [8, 32], strides = [1, 1]} : vector<32x32xbf16> to vector<8x32xbf16>
    %cst_69 = arith.constant dense<0.000000e+00> : vector<8x32xf32>
    %204 = tpu.matmul %202, %203, %cst_69 {dimension_numbers = #tpu.dot_dimension_numbers<[1], [0], [0], [1], [0, 0, 1, 1], [], []>} : vector<8x8xbf16>, vector<8x32xbf16>, vector<8x32xf32> -> vector<8x32xf32>
    %205 = arith.addf %180, %204 : vector<8x32xf32>
    %206 = vector.extract_strided_slice %127 {offsets = [0, 24], sizes = [8, 8], strides = [1, 1]} : vector<8x32xf32> to vector<8x8xf32>
    %cst_70 = arith.constant 0.353553385 : f32
    %207 = vector.broadcast %cst_70 : f32 to vector<8x8xf32>
    %208 = arith.mulf %206, %207 : vector<8x8xf32>
    %209 = arith.truncf %208 : vector<8x8xf32> to vector<8x8xbf16>
    %210 = vector.extract_strided_slice %128 {offsets = [0, 24], sizes = [8, 8], strides = [1, 1]} : vector<8x32xf32> to vector<8x8xf32>
    %211 = arith.truncf %210 : vector<8x8xf32> to vector<8x8xbf16>
    "tpu.trace_start"() <{level = 10 : i32, message = "qd,kd->qk"}> : () -> ()
    %cst_71 = arith.constant dense<0.000000e+00> : vector<8x8xf32>
    %212 = tpu.matmul %209, %211, %cst_71 {dimension_numbers = #tpu.dot_dimension_numbers<[1], [1], [0], [0], [0, 0, 1, 0], [], []>} : vector<8x8xbf16>, vector<8x8xbf16>, vector<8x8xf32> -> vector<8x8xf32>
    "tpu.trace_stop"() : () -> ()
    %213 = arith.addf %212, %7 : vector<8x8xf32>
    %cst_72 = arith.constant dense<0xFF800000> : vector<8xf32>
    %214 = vector.multi_reduction <maximumf>, %213, %cst_72 [1] : vector<8x8xf32> to vector<8xf32>
    %215 = vector.shape_cast %214 : vector<8xf32> to vector<8x1xf32>
    %216 = vector.broadcast %215 : vector<8x1xf32> to vector<8x8xf32>
    %217 = arith.subf %213, %216 : vector<8x8xf32>
    %218 = math.exp %217 : vector<8x8xf32>
    %cst_73 = arith.constant dense<0.000000e+00> : vector<8xf32>
    %219 = vector.multi_reduction <add>, %218, %cst_73 [1] : vector<8x8xf32> to vector<8xf32>
    %220 = vector.shape_cast %219 : vector<8xf32> to vector<8x1xf32>
    %221 = vector.broadcast %220 : vector<8x1xf32> to vector<8x8xf32>
    %222 = arith.divf %218, %221 : vector<8x8xf32>
    %223 = arith.truncf %222 : vector<8x8xf32> to vector<8x8xbf16>
    %224 = vector.extract_strided_slice %129 {offsets = [0, 24], sizes = [8, 8], strides = [1, 1]} : vector<8x32xf32> to vector<8x8xf32>
    %225 = arith.truncf %224 : vector<8x8xf32> to vector<8x8xbf16>
    %cst_74 = arith.constant dense<0.000000e+00> : vector<8x8xf32>
    %226 = tpu.matmul %223, %225, %cst_74 {dimension_numbers = #tpu.dot_dimension_numbers<[1], [0], [0], [1], [0, 0, 1, 1], [], []>} : vector<8x8xbf16>, vector<8x8xbf16>, vector<8x8xf32> -> vector<8x8xf32>
    %227 = arith.truncf %226 : vector<8x8xf32> to vector<8x8xbf16>
    %228 = vector.extract_strided_slice %19 {offsets = [24, 0], sizes = [8, 32], strides = [1, 1]} : vector<32x32xbf16> to vector<8x32xbf16>
    %cst_75 = arith.constant dense<0.000000e+00> : vector<8x32xf32>
    %229 = tpu.matmul %227, %228, %cst_75 {dimension_numbers = #tpu.dot_dimension_numbers<[1], [0], [0], [1], [0, 0, 1, 1], [], []>} : vector<8x8xbf16>, vector<8x32xbf16>, vector<8x32xf32> -> vector<8x32xf32>
    %230 = arith.addf %205, %229 : vector<8x32xf32>
    %c8_76 = arith.constant 8 : index
    %c0_77 = arith.constant 0 : index
    %231 = vector.load %arg25[%c8_76, %c0_77] : memref<16x32xf32, #tpu.memory_space<vmem>>, vector<8x32xf32>
    tpu.vector_store %arg25[%c8_76, %c0_77], %230 {strides = array<i32>} : memref<16x32xf32, #tpu.memory_space<vmem>>, vector<8x32xf32>,
    %c0_78 = arith.constant 0 : index
    %c0_79 = arith.constant 0 : index
    %232 = vector.load %arg25[%c0_78, %c0_79] : memref<16x32xf32, #tpu.memory_space<vmem>>, vector<16x32xf32>
    %233 = arith.addf %8, %232 : vector<16x32xf32>
    %c0_80 = arith.constant 0 : index
    %c0_81 = arith.constant 0 : index
    %c0_82 = arith.constant 0 : index
    %234 = vector.load %arg8[%c0_80, %c0_81, %c0_82] : memref<1x1x32xf32, #tpu.memory_space<vmem>>, vector<1x1x32xf32>
    %235 = vector.shape_cast %234 : vector<1x1x32xf32> to vector<1x32xf32>
    %236 = vector.broadcast %235 : vector<1x32xf32> to vector<16x32xf32>
    %237 = arith.addf %233, %236 : vector<16x32xf32>
    %cst_83 = arith.constant dense<0.000000e+00> : vector<16xf32>
    %238 = vector.multi_reduction <add>, %237, %cst_83 [1] : vector<16x32xf32> to vector<16xf32>
    %239 = vector.shape_cast %238 : vector<16xf32> to vector<16x1xf32>
    %cst_84 = arith.constant 3.200000e+01 : f32
    %240 = vector.broadcast %cst_84 : f32 to vector<16x1xf32>
    %241 = arith.divf %239, %240 : vector<16x1xf32>
    %242 = vector.broadcast %241 : vector<16x1xf32> to vector<16x32xf32>
    %243 = arith.subf %237, %242 : vector<16x32xf32>
    %244 = arith.mulf %243, %243 : vector<16x32xf32>
    %cst_85 = arith.constant dense<0.000000e+00> : vector<16xf32>
    %245 = vector.multi_reduction <add>, %244, %cst_85 [1] : vector<16x32xf32> to vector<16xf32>
    %246 = vector.shape_cast %245 : vector<16xf32> to vector<16x1xf32>
    %cst_86 = arith.constant 3.200000e+01 : f32
    %247 = vector.broadcast %cst_86 : f32 to vector<16x1xf32>
    %248 = arith.divf %246, %247 : vector<16x1xf32>
    %cst_87 = arith.constant 9.99999974E-6 : f32
    %249 = vector.broadcast %cst_87 : f32 to vector<16x1xf32>
    %250 = arith.addf %248, %249 : vector<16x1xf32>
    %251 = math.rsqrt %250 : vector<16x1xf32>
    %252 = vector.broadcast %251 : vector<16x1xf32> to vector<16x32xf32>
    %253 = arith.mulf %243, %252 : vector<16x32xf32>
    %254 = vector.extract_strided_slice %4 {offsets = [0, 0], sizes = [1, 32], strides = [1, 1]} : vector<3x32xf32> to vector<1x32xf32>
    %255 = vector.broadcast %254 : vector<1x32xf32> to vector<16x32xf32>
    %256 = arith.mulf %253, %255 : vector<16x32xf32>
    %257 = vector.extract_strided_slice %6 {offsets = [0, 0], sizes = [1, 32], strides = [1, 1]} : vector<3x32xf32> to vector<1x32xf32>
    %258 = vector.broadcast %257 : vector<1x32xf32> to vector<16x32xf32>
    %259 = arith.addf %256, %258 : vector<16x32xf32>
    %260 = arith.truncf %259 : vector<16x32xf32> to vector<16x32xbf16>
    %c0_88 = arith.constant 0 : index
    %c0_89 = arith.constant 0 : index
    %c0_90 = arith.constant 0 : index
    %261 = vector.load %arg9[%c0_88, %c0_89, %c0_90] : memref<1x32x32xbf16, #tpu.memory_space<vmem>>, vector<1x32x32xbf16>
    %262 = vector.shape_cast %261 : vector<1x32x32xbf16> to vector<32x32xbf16>
    %cst_91 = arith.constant dense<0.000000e+00> : vector<16x32xf32>
    %263 = tpu.matmul %260, %262, %cst_91 {dimension_numbers = #tpu.dot_dimension_numbers<[1], [0], [0], [1], [0, 0, 1, 1], [], []>} : vector<16x32xbf16>, vector<32x32xbf16>, vector<16x32xf32> -> vector<16x32xf32>
    %c0_92 = arith.constant 0 : index
    %c0_93 = arith.constant 0 : index
    %c0_94 = arith.constant 0 : index
    %264 = vector.load %arg10[%c0_92, %c0_93, %c0_94] : memref<1x1x32xf32, #tpu.memory_space<vmem>>, vector<1x1x32xf32>
    %265 = vector.shape_cast %264 : vector<1x1x32xf32> to vector<1x32xf32>
    %266 = vector.broadcast %265 : vector<1x32xf32> to vector<16x32xf32>
    %267 = arith.addf %263, %266 : vector<16x32xf32>
    %c0_95 = arith.constant 0 : index
    %c0_96 = arith.constant 0 : index
    %268 = vector.load %arg24[%c0_95, %c0_96] : memref<16x32xf32, #tpu.memory_space<vmem>>, vector<16x32xf32>
    tpu.vector_store %arg24[%c0_95, %c0_96], %267 {strides = array<i32>} : memref<16x32xf32, #tpu.memory_space<vmem>>, vector<16x32xf32>,
    %c0_97 = arith.constant 0 : index
    %c0_98 = arith.constant 0 : index
    %c0_99 = arith.constant 0 : index
    %269 = vector.load %arg13[%c0_97, %c0_98, %c0_99] : memref<1x32x32xbf16, #tpu.memory_space<vmem>>, vector<1x32x32xbf16>
    %270 = vector.shape_cast %269 : vector<1x32x32xbf16> to vector<32x32xbf16>
    %c0_100 = arith.constant 0 : index
    %c0_101 = arith.constant 0 : index
    %c0_102 = arith.constant 0 : index
    %271 = vector.load %arg11[%c0_100, %c0_101, %c0_102] : memref<1x32x64xbf16, #tpu.memory_space<vmem>>, vector<1x32x64xbf16>
    %272 = vector.shape_cast %271 : vector<1x32x64xbf16> to vector<32x64xbf16>
    %c0_103 = arith.constant 0 : index
    %c0_104 = arith.constant 0 : index
    %c0_105 = arith.constant 0 : index
    %273 = vector.load %arg12[%c0_103, %c0_104, %c0_105] : memref<1x1x64xf32, #tpu.memory_space<vmem>>, vector<1x1x64xf32>
    %274 = vector.shape_cast %273 : vector<1x1x64xf32> to vector<1x64xf32>
    %c0_106 = arith.constant 0 : index
    %c0_107 = arith.constant 0 : index
    %c0_108 = arith.constant 0 : index
    %275 = vector.load %arg3[%c0_106, %c0_107, %c0_108] : memref<2x6x32xbf16, #tpu.memory_space<vmem>>, vector<1x6x32xbf16>
    %276 = vector.shape_cast %275 : vector<1x6x32xbf16> to vector<6x32xbf16>
    %cst_109 = arith.constant dense<0.000000e+00> : vector<6x64xf32>
    %277 = tpu.matmul %276, %272, %cst_109 {dimension_numbers = #tpu.dot_dimension_numbers<[1], [0], [0], [1], [0, 0, 1, 1], [], []>} : vector<6x32xbf16>, vector<32x64xbf16>, vector<6x64xf32> -> vector<6x64xf32>
    %278 = vector.broadcast %274 : vector<1x64xf32> to vector<6x64xf32>
    %279 = arith.addf %277, %278 : vector<6x64xf32>
    %c0_110 = arith.constant 0 : index
    %c0_111 = arith.constant 0 : index
    %280 = vector.load %arg24[%c0_110, %c0_111] : memref<16x32xf32, #tpu.memory_space<vmem>>, vector<8x32xf32>
    %281 = vector.extract_strided_slice %279 {offsets = [0, 0], sizes = [6, 32], strides = [1, 1]} : vector<6x64xf32> to vector<6x32xf32>
    %282 = vector.extract_strided_slice %279 {offsets = [0, 32], sizes = [6, 32], strides = [1, 1]} : vector<6x64xf32> to vector<6x32xf32>
    %cst_112 = arith.constant 0.000000e+00 : f32
    %283 = vector.broadcast %cst_112 : f32 to vector<8x32xf32>
    %284 = vector.extract_strided_slice %280 {offsets = [0, 0], sizes = [8, 8], strides = [1, 1]} : vector<8x32xf32> to vector<8x8xf32>
    %cst_113 = arith.constant 0.353553385 : f32
    %285 = vector.broadcast %cst_113 : f32 to vector<8x8xf32>
    %286 = arith.mulf %284, %285 : vector<8x8xf32>
    %287 = arith.truncf %286 : vector<8x8xf32> to vector<8x8xbf16>
    %288 = vector.extract_strided_slice %281 {offsets = [0, 0], sizes = [6, 8], strides = [1, 1]} : vector<6x32xf32> to vector<6x8xf32>
    %289 = arith.truncf %288 : vector<6x8xf32> to vector<6x8xbf16>
    "tpu.trace_start"() <{level = 10 : i32, message = "qd,kd->qk"}> : () -> ()
    %cst_114 = arith.constant dense<0.000000e+00> : vector<8x6xf32>
    %290 = tpu.matmul %287, %289, %cst_114 {dimension_numbers = #tpu.dot_dimension_numbers<[1], [1], [0], [0], [0, 0, 1, 0], [], []>} : vector<8x8xbf16>, vector<6x8xbf16>, vector<8x6xf32> -> vector<8x6xf32>
    "tpu.trace_stop"() : () -> ()
    %cst_115 = arith.constant dense<0xFF800000> : vector<8xf32>
    %291 = vector.multi_reduction <maximumf>, %290, %cst_115 [1] : vector<8x6xf32> to vector<8xf32>
    %292 = vector.shape_cast %291 : vector<8xf32> to vector<8x1xf32>
    %293 = vector.broadcast %292 : vector<8x1xf32> to vector<8x6xf32>
    %294 = arith.subf %290, %293 : vector<8x6xf32>
    %295 = math.exp %294 : vector<8x6xf32>
    %cst_116 = arith.constant dense<0.000000e+00> : vector<8xf32>
    %296 = vector.multi_reduction <add>, %295, %cst_116 [1] : vector<8x6xf32> to vector<8xf32>
    %297 = vector.shape_cast %296 : vector<8xf32> to vector<8x1xf32>
    %298 = vector.broadcast %297 : vector<8x1xf32> to vector<8x6xf32>
    %299 = arith.divf %295, %298 : vector<8x6xf32>
    %300 = arith.truncf %299 : vector<8x6xf32> to vector<8x6xbf16>
    %301 = vector.extract_strided_slice %282 {offsets = [0, 0], sizes = [6, 8], strides = [1, 1]} : vector<6x32xf32> to vector<6x8xf32>
    %302 = arith.truncf %301 : vector<6x8xf32> to vector<6x8xbf16>
    %cst_117 = arith.constant dense<0.000000e+00> : vector<8x8xf32>
    %303 = tpu.matmul %300, %302, %cst_117 {dimension_numbers = #tpu.dot_dimension_numbers<[1], [0], [0], [1], [0, 0, 1, 1], [], []>} : vector<8x6xbf16>, vector<6x8xbf16>, vector<8x8xf32> -> vector<8x8xf32>
    %304 = arith.truncf %303 : vector<8x8xf32> to vector<8x8xbf16>
    %305 = vector.extract_strided_slice %270 {offsets = [0, 0], sizes = [8, 32], strides = [1, 1]} : vector<32x32xbf16> to vector<8x32xbf16>
    %cst_118 = arith.constant dense<0.000000e+00> : vector<8x32xf32>
    %306 = tpu.matmul %304, %305, %cst_118 {dimension_numbers = #tpu.dot_dimension_numbers<[1], [0], [0], [1], [0, 0, 1, 1], [], []>} : vector<8x8xbf16>, vector<8x32xbf16>, vector<8x32xf32> -> vector<8x32xf32>
    %307 = arith.addf %283, %306 : vector<8x32xf32>
    %308 = vector.extract_strided_slice %280 {offsets = [0, 8], sizes = [8, 8], strides = [1, 1]} : vector<8x32xf32> to vector<8x8xf32>
    %cst_119 = arith.constant 0.353553385 : f32
    %309 = vector.broadcast %cst_119 : f32 to vector<8x8xf32>
    %310 = arith.mulf %308, %309 : vector<8x8xf32>
    %311 = arith.truncf %310 : vector<8x8xf32> to vector<8x8xbf16>
    %312 = vector.extract_strided_slice %281 {offsets = [0, 8], sizes = [6, 8], strides = [1, 1]} : vector<6x32xf32> to vector<6x8xf32>
    %313 = arith.truncf %312 : vector<6x8xf32> to vector<6x8xbf16>
    "tpu.trace_start"() <{level = 10 : i32, message = "qd,kd->qk"}> : () -> ()
    %cst_120 = arith.constant dense<0.000000e+00> : vector<8x6xf32>
    %314 = tpu.matmul %311, %313, %cst_120 {dimension_numbers = #tpu.dot_dimension_numbers<[1], [1], [0], [0], [0, 0, 1, 0], [], []>} : vector<8x8xbf16>, vector<6x8xbf16>, vector<8x6xf32> -> vector<8x6xf32>
    "tpu.trace_stop"() : () -> ()
    %cst_121 = arith.constant dense<0xFF800000> : vector<8xf32>
    %315 = vector.multi_reduction <maximumf>, %314, %cst_121 [1] : vector<8x6xf32> to vector<8xf32>
    %316 = vector.shape_cast %315 : vector<8xf32> to vector<8x1xf32>
    %317 = vector.broadcast %316 : vector<8x1xf32> to vector<8x6xf32>
    %318 = arith.subf %314, %317 : vector<8x6xf32>
    %319 = math.exp %318 : vector<8x6xf32>
    %cst_122 = arith.constant dense<0.000000e+00> : vector<8xf32>
    %320 = vector.multi_reduction <add>, %319, %cst_122 [1] : vector<8x6xf32> to vector<8xf32>
    %321 = vector.shape_cast %320 : vector<8xf32> to vector<8x1xf32>
    %322 = vector.broadcast %321 : vector<8x1xf32> to vector<8x6xf32>
    %323 = arith.divf %319, %322 : vector<8x6xf32>
    %324 = arith.truncf %323 : vector<8x6xf32> to vector<8x6xbf16>
    %325 = vector.extract_strided_slice %282 {offsets = [0, 8], sizes = [6, 8], strides = [1, 1]} : vector<6x32xf32> to vector<6x8xf32>
    %326 = arith.truncf %325 : vector<6x8xf32> to vector<6x8xbf16>
    %cst_123 = arith.constant dense<0.000000e+00> : vector<8x8xf32>
    %327 = tpu.matmul %324, %326, %cst_123 {dimension_numbers = #tpu.dot_dimension_numbers<[1], [0], [0], [1], [0, 0, 1, 1], [], []>} : vector<8x6xbf16>, vector<6x8xbf16>, vector<8x8xf32> -> vector<8x8xf32>
    %328 = arith.truncf %327 : vector<8x8xf32> to vector<8x8xbf16>
    %329 = vector.extract_strided_slice %270 {offsets = [8, 0], sizes = [8, 32], strides = [1, 1]} : vector<32x32xbf16> to vector<8x32xbf16>
    %cst_124 = arith.constant dense<0.000000e+00> : vector<8x32xf32>
    %330 = tpu.matmul %328, %329, %cst_124 {dimension_numbers = #tpu.dot_dimension_numbers<[1], [0], [0], [1], [0, 0, 1, 1], [], []>} : vector<8x8xbf16>, vector<8x32xbf16>, vector<8x32xf32> -> vector<8x32xf32>
    %331 = arith.addf %307, %330 : vector<8x32xf32>
    %332 = vector.extract_strided_slice %280 {offsets = [0, 16], sizes = [8, 8], strides = [1, 1]} : vector<8x32xf32> to vector<8x8xf32>
    %cst_125 = arith.constant 0.353553385 : f32
    %333 = vector.broadcast %cst_125 : f32 to vector<8x8xf32>
    %334 = arith.mulf %332, %333 : vector<8x8xf32>
    %335 = arith.truncf %334 : vector<8x8xf32> to vector<8x8xbf16>
    %336 = vector.extract_strided_slice %281 {offsets = [0, 16], sizes = [6, 8], strides = [1, 1]} : vector<6x32xf32> to vector<6x8xf32>
    %337 = arith.truncf %336 : vector<6x8xf32> to vector<6x8xbf16>
    "tpu.trace_start"() <{level = 10 : i32, message = "qd,kd->qk"}> : () -> ()
    %cst_126 = arith.constant dense<0.000000e+00> : vector<8x6xf32>
    %338 = tpu.matmul %335, %337, %cst_126 {dimension_numbers = #tpu.dot_dimension_numbers<[1], [1], [0], [0], [0, 0, 1, 0], [], []>} : vector<8x8xbf16>, vector<6x8xbf16>, vector<8x6xf32> -> vector<8x6xf32>
    "tpu.trace_stop"() : () -> ()
    %cst_127 = arith.constant dense<0xFF800000> : vector<8xf32>
    %339 = vector.multi_reduction <maximumf>, %338, %cst_127 [1] : vector<8x6xf32> to vector<8xf32>
    %340 = vector.shape_cast %339 : vector<8xf32> to vector<8x1xf32>
    %341 = vector.broadcast %340 : vector<8x1xf32> to vector<8x6xf32>
    %342 = arith.subf %338, %341 : vector<8x6xf32>
    %343 = math.exp %342 : vector<8x6xf32>
    %cst_128 = arith.constant dense<0.000000e+00> : vector<8xf32>
    %344 = vector.multi_reduction <add>, %343, %cst_128 [1] : vector<8x6xf32> to vector<8xf32>
    %345 = vector.shape_cast %344 : vector<8xf32> to vector<8x1xf32>
    %346 = vector.broadcast %345 : vector<8x1xf32> to vector<8x6xf32>
    %347 = arith.divf %343, %346 : vector<8x6xf32>
    %348 = arith.truncf %347 : vector<8x6xf32> to vector<8x6xbf16>
    %349 = vector.extract_strided_slice %282 {offsets = [0, 16], sizes = [6, 8], strides = [1, 1]} : vector<6x32xf32> to vector<6x8xf32>
    %350 = arith.truncf %349 : vector<6x8xf32> to vector<6x8xbf16>
    %cst_129 = arith.constant dense<0.000000e+00> : vector<8x8xf32>
    %351 = tpu.matmul %348, %350, %cst_129 {dimension_numbers = #tpu.dot_dimension_numbers<[1], [0], [0], [1], [0, 0, 1, 1], [], []>} : vector<8x6xbf16>, vector<6x8xbf16>, vector<8x8xf32> -> vector<8x8xf32>
    %352 = arith.truncf %351 : vector<8x8xf32> to vector<8x8xbf16>
    %353 = vector.extract_strided_slice %270 {offsets = [16, 0], sizes = [8, 32], strides = [1, 1]} : vector<32x32xbf16> to vector<8x32xbf16>
    %cst_130 = arith.constant dense<0.000000e+00> : vector<8x32xf32>
    %354 = tpu.matmul %352, %353, %cst_130 {dimension_numbers = #tpu.dot_dimension_numbers<[1], [0], [0], [1], [0, 0, 1, 1], [], []>} : vector<8x8xbf16>, vector<8x32xbf16>, vector<8x32xf32> -> vector<8x32xf32>
    %355 = arith.addf %331, %354 : vector<8x32xf32>
    %356 = vector.extract_strided_slice %280 {offsets = [0, 24], sizes = [8, 8], strides = [1, 1]} : vector<8x32xf32> to vector<8x8xf32>
    %cst_131 = arith.constant 0.353553385 : f32
    %357 = vector.broadcast %cst_131 : f32 to vector<8x8xf32>
    %358 = arith.mulf %356, %357 : vector<8x8xf32>
    %359 = arith.truncf %358 : vector<8x8xf32> to vector<8x8xbf16>
    %360 = vector.extract_strided_slice %281 {offsets = [0, 24], sizes = [6, 8], strides = [1, 1]} : vector<6x32xf32> to vector<6x8xf32>
    %361 = arith.truncf %360 : vector<6x8xf32> to vector<6x8xbf16>
    "tpu.trace_start"() <{level = 10 : i32, message = "qd,kd->qk"}> : () -> ()
    %cst_132 = arith.constant dense<0.000000e+00> : vector<8x6xf32>
    %362 = tpu.matmul %359, %361, %cst_132 {dimension_numbers = #tpu.dot_dimension_numbers<[1], [1], [0], [0], [0, 0, 1, 0], [], []>} : vector<8x8xbf16>, vector<6x8xbf16>, vector<8x6xf32> -> vector<8x6xf32>
    "tpu.trace_stop"() : () -> ()
    %cst_133 = arith.constant dense<0xFF800000> : vector<8xf32>
    %363 = vector.multi_reduction <maximumf>, %362, %cst_133 [1] : vector<8x6xf32> to vector<8xf32>
    %364 = vector.shape_cast %363 : vector<8xf32> to vector<8x1xf32>
    %365 = vector.broadcast %364 : vector<8x1xf32> to vector<8x6xf32>
    %366 = arith.subf %362, %365 : vector<8x6xf32>
    %367 = math.exp %366 : vector<8x6xf32>
    %cst_134 = arith.constant dense<0.000000e+00> : vector<8xf32>
    %368 = vector.multi_reduction <add>, %367, %cst_134 [1] : vector<8x6xf32> to vector<8xf32>
    %369 = vector.shape_cast %368 : vector<8xf32> to vector<8x1xf32>
    %370 = vector.broadcast %369 : vector<8x1xf32> to vector<8x6xf32>
    %371 = arith.divf %367, %370 : vector<8x6xf32>
    %372 = arith.truncf %371 : vector<8x6xf32> to vector<8x6xbf16>
    %373 = vector.extract_strided_slice %282 {offsets = [0, 24], sizes = [6, 8], strides = [1, 1]} : vector<6x32xf32> to vector<6x8xf32>
    %374 = arith.truncf %373 : vector<6x8xf32> to vector<6x8xbf16>
    %cst_135 = arith.constant dense<0.000000e+00> : vector<8x8xf32>
    %375 = tpu.matmul %372, %374, %cst_135 {dimension_numbers = #tpu.dot_dimension_numbers<[1], [0], [0], [1], [0, 0, 1, 1], [], []>} : vector<8x6xbf16>, vector<6x8xbf16>, vector<8x8xf32> -> vector<8x8xf32>
    %376 = arith.truncf %375 : vector<8x8xf32> to vector<8x8xbf16>
    %377 = vector.extract_strided_slice %270 {offsets = [24, 0], sizes = [8, 32], strides = [1, 1]} : vector<32x32xbf16> to vector<8x32xbf16>
    %cst_136 = arith.constant dense<0.000000e+00> : vector<8x32xf32>
    %378 = tpu.matmul %376, %377, %cst_136 {dimension_numbers = #tpu.dot_dimension_numbers<[1], [0], [0], [1], [0, 0, 1, 1], [], []>} : vector<8x8xbf16>, vector<8x32xbf16>, vector<8x32xf32> -> vector<8x32xf32>
    %379 = arith.addf %355, %378 : vector<8x32xf32>
    %c0_137 = arith.constant 0 : index
    %c0_138 = arith.constant 0 : index
    %380 = vector.load %arg25[%c0_137, %c0_138] : memref<16x32xf32, #tpu.memory_space<vmem>>, vector<8x32xf32>
    tpu.vector_store %arg25[%c0_137, %c0_138], %379 {strides = array<i32>} : memref<16x32xf32, #tpu.memory_space<vmem>>, vector<8x32xf32>,
    %c1 = arith.constant 1 : index
    %c0_139 = arith.constant 0 : index
    %c0_140 = arith.constant 0 : index
    %381 = vector.load %arg3[%c1, %c0_139, %c0_140] : memref<2x6x32xbf16, #tpu.memory_space<vmem>>, vector<1x6x32xbf16>
    %382 = vector.shape_cast %381 : vector<1x6x32xbf16> to vector<6x32xbf16>
    %cst_141 = arith.constant dense<0.000000e+00> : vector<6x64xf32>
    %383 = tpu.matmul %382, %272, %cst_141 {dimension_numbers = #tpu.dot_dimension_numbers<[1], [0], [0], [1], [0, 0, 1, 1], [], []>} : vector<6x32xbf16>, vector<32x64xbf16>, vector<6x64xf32> -> vector<6x64xf32>
    %384 = vector.broadcast %274 : vector<1x64xf32> to vector<6x64xf32>
    %385 = arith.addf %383, %384 : vector<6x64xf32>
    %c8_142 = arith.constant 8 : index
    %c0_143 = arith.constant 0 : index
    %386 = vector.load %arg24[%c8_142, %c0_143] : memref<16x32xf32, #tpu.memory_space<vmem>>, vector<8x32xf32>
    %387 = vector.extract_strided_slice %385 {offsets = [0, 0], sizes = [6, 32], strides = [1, 1]} : vector<6x64xf32> to vector<6x32xf32>
    %388 = vector.extract_strided_slice %385 {offsets = [0, 32], sizes = [6, 32], strides = [1, 1]} : vector<6x64xf32> to vector<6x32xf32>
    %cst_144 = arith.constant 0.000000e+00 : f32
    %389 = vector.broadcast %cst_144 : f32 to vector<8x32xf32>
    %390 = vector.extract_strided_slice %386 {offsets = [0, 0], sizes = [8, 8], strides = [1, 1]} : vector<8x32xf32> to vector<8x8xf32>
    %cst_145 = arith.constant 0.353553385 : f32
    %391 = vector.broadcast %cst_145 : f32 to vector<8x8xf32>
    %392 = arith.mulf %390, %391 : vector<8x8xf32>
    %393 = arith.truncf %392 : vector<8x8xf32> to vector<8x8xbf16>
    %394 = vector.extract_strided_slice %387 {offsets = [0, 0], sizes = [6, 8], strides = [1, 1]} : vector<6x32xf32> to vector<6x8xf32>
    %395 = arith.truncf %394 : vector<6x8xf32> to vector<6x8xbf16>
    "tpu.trace_start"() <{level = 10 : i32, message = "qd,kd->qk"}> : () -> ()
    %cst_146 = arith.constant dense<0.000000e+00> : vector<8x6xf32>
    %396 = tpu.matmul %393, %395, %cst_146 {dimension_numbers = #tpu.dot_dimension_numbers<[1], [1], [0], [0], [0, 0, 1, 0], [], []>} : vector<8x8xbf16>, vector<6x8xbf16>, vector<8x6xf32> -> vector<8x6xf32>
    "tpu.trace_stop"() : () -> ()
    %cst_147 = arith.constant dense<0xFF800000> : vector<8xf32>
    %397 = vector.multi_reduction <maximumf>, %396, %cst_147 [1] : vector<8x6xf32> to vector<8xf32>
    %398 = vector.shape_cast %397 : vector<8xf32> to vector<8x1xf32>
    %399 = vector.broadcast %398 : vector<8x1xf32> to vector<8x6xf32>
    %400 = arith.subf %396, %399 : vector<8x6xf32>
    %401 = math.exp %400 : vector<8x6xf32>
    %cst_148 = arith.constant dense<0.000000e+00> : vector<8xf32>
    %402 = vector.multi_reduction <add>, %401, %cst_148 [1] : vector<8x6xf32> to vector<8xf32>
    %403 = vector.shape_cast %402 : vector<8xf32> to vector<8x1xf32>
    %404 = vector.broadcast %403 : vector<8x1xf32> to vector<8x6xf32>
    %405 = arith.divf %401, %404 : vector<8x6xf32>
    %406 = arith.truncf %405 : vector<8x6xf32> to vector<8x6xbf16>
    %407 = vector.extract_strided_slice %388 {offsets = [0, 0], sizes = [6, 8], strides = [1, 1]} : vector<6x32xf32> to vector<6x8xf32>
    %408 = arith.truncf %407 : vector<6x8xf32> to vector<6x8xbf16>
    %cst_149 = arith.constant dense<0.000000e+00> : vector<8x8xf32>
    %409 = tpu.matmul %406, %408, %cst_149 {dimension_numbers = #tpu.dot_dimension_numbers<[1], [0], [0], [1], [0, 0, 1, 1], [], []>} : vector<8x6xbf16>, vector<6x8xbf16>, vector<8x8xf32> -> vector<8x8xf32>
    %410 = arith.truncf %409 : vector<8x8xf32> to vector<8x8xbf16>
    %411 = vector.extract_strided_slice %270 {offsets = [0, 0], sizes = [8, 32], strides = [1, 1]} : vector<32x32xbf16> to vector<8x32xbf16>
    %cst_150 = arith.constant dense<0.000000e+00> : vector<8x32xf32>
    %412 = tpu.matmul %410, %411, %cst_150 {dimension_numbers = #tpu.dot_dimension_numbers<[1], [0], [0], [1], [0, 0, 1, 1], [], []>} : vector<8x8xbf16>, vector<8x32xbf16>, vector<8x32xf32> -> vector<8x32xf32>
    %413 = arith.addf %389, %412 : vector<8x32xf32>
    %414 = vector.extract_strided_slice %386 {offsets = [0, 8], sizes = [8, 8], strides = [1, 1]} : vector<8x32xf32> to vector<8x8xf32>
    %cst_151 = arith.constant 0.353553385 : f32
    %415 = vector.broadcast %cst_151 : f32 to vector<8x8xf32>
    %416 = arith.mulf %414, %415 : vector<8x8xf32>
    %417 = arith.truncf %416 : vector<8x8xf32> to vector<8x8xbf16>
    %418 = vector.extract_strided_slice %387 {offsets = [0, 8], sizes = [6, 8], strides = [1, 1]} : vector<6x32xf32> to vector<6x8xf32>
    %419 = arith.truncf %418 : vector<6x8xf32> to vector<6x8xbf16>
    "tpu.trace_start"() <{level = 10 : i32, message = "qd,kd->qk"}> : () -> ()
    %cst_152 = arith.constant dense<0.000000e+00> : vector<8x6xf32>
    %420 = tpu.matmul %417, %419, %cst_152 {dimension_numbers = #tpu.dot_dimension_numbers<[1], [1], [0], [0], [0, 0, 1, 0], [], []>} : vector<8x8xbf16>, vector<6x8xbf16>, vector<8x6xf32> -> vector<8x6xf32>
    "tpu.trace_stop"() : () -> ()
    %cst_153 = arith.constant dense<0xFF800000> : vector<8xf32>
    %421 = vector.multi_reduction <maximumf>, %420, %cst_153 [1] : vector<8x6xf32> to vector<8xf32>
    %422 = vector.shape_cast %421 : vector<8xf32> to vector<8x1xf32>
    %423 = vector.broadcast %422 : vector<8x1xf32> to vector<8x6xf32>
    %424 = arith.subf %420, %423 : vector<8x6xf32>
    %425 = math.exp %424 : vector<8x6xf32>
    %cst_154 = arith.constant dense<0.000000e+00> : vector<8xf32>
    %426 = vector.multi_reduction <add>, %425, %cst_154 [1] : vector<8x6xf32> to vector<8xf32>
    %427 = vector.shape_cast %426 : vector<8xf32> to vector<8x1xf32>
    %428 = vector.broadcast %427 : vector<8x1xf32> to vector<8x6xf32>
    %429 = arith.divf %425, %428 : vector<8x6xf32>
    %430 = arith.truncf %429 : vector<8x6xf32> to vector<8x6xbf16>
    %431 = vector.extract_strided_slice %388 {offsets = [0, 8], sizes = [6, 8], strides = [1, 1]} : vector<6x32xf32> to vector<6x8xf32>
    %432 = arith.truncf %431 : vector<6x8xf32> to vector<6x8xbf16>
    %cst_155 = arith.constant dense<0.000000e+00> : vector<8x8xf32>
    %433 = tpu.matmul %430, %432, %cst_155 {dimension_numbers = #tpu.dot_dimension_numbers<[1], [0], [0], [1], [0, 0, 1, 1], [], []>} : vector<8x6xbf16>, vector<6x8xbf16>, vector<8x8xf32> -> vector<8x8xf32>
    %434 = arith.truncf %433 : vector<8x8xf32> to vector<8x8xbf16>
    %435 = vector.extract_strided_slice %270 {offsets = [8, 0], sizes = [8, 32], strides = [1, 1]} : vector<32x32xbf16> to vector<8x32xbf16>
    %cst_156 = arith.constant dense<0.000000e+00> : vector<8x32xf32>
    %436 = tpu.matmul %434, %435, %cst_156 {dimension_numbers = #tpu.dot_dimension_numbers<[1], [0], [0], [1], [0, 0, 1, 1], [], []>} : vector<8x8xbf16>, vector<8x32xbf16>, vector<8x32xf32> -> vector<8x32xf32>
    %437 = arith.addf %413, %436 : vector<8x32xf32>
    %438 = vector.extract_strided_slice %386 {offsets = [0, 16], sizes = [8, 8], strides = [1, 1]} : vector<8x32xf32> to vector<8x8xf32>
    %cst_157 = arith.constant 0.353553385 : f32
    %439 = vector.broadcast %cst_157 : f32 to vector<8x8xf32>
    %440 = arith.mulf %438, %439 : vector<8x8xf32>
    %441 = arith.truncf %440 : vector<8x8xf32> to vector<8x8xbf16>
    %442 = vector.extract_strided_slice %387 {offsets = [0, 16], sizes = [6, 8], strides = [1, 1]} : vector<6x32xf32> to vector<6x8xf32>
    %443 = arith.truncf %442 : vector<6x8xf32> to vector<6x8xbf16>
    "tpu.trace_start"() <{level = 10 : i32, message = "qd,kd->qk"}> : () -> ()
    %cst_158 = arith.constant dense<0.000000e+00> : vector<8x6xf32>
    %444 = tpu.matmul %441, %443, %cst_158 {dimension_numbers = #tpu.dot_dimension_numbers<[1], [1], [0], [0], [0, 0, 1, 0], [], []>} : vector<8x8xbf16>, vector<6x8xbf16>, vector<8x6xf32> -> vector<8x6xf32>
    "tpu.trace_stop"() : () -> ()
    %cst_159 = arith.constant dense<0xFF800000> : vector<8xf32>
    %445 = vector.multi_reduction <maximumf>, %444, %cst_159 [1] : vector<8x6xf32> to vector<8xf32>
    %446 = vector.shape_cast %445 : vector<8xf32> to vector<8x1xf32>
    %447 = vector.broadcast %446 : vector<8x1xf32> to vector<8x6xf32>
    %448 = arith.subf %444, %447 : vector<8x6xf32>
    %449 = math.exp %448 : vector<8x6xf32>
    %cst_160 = arith.constant dense<0.000000e+00> : vector<8xf32>
    %450 = vector.multi_reduction <add>, %449, %cst_160 [1] : vector<8x6xf32> to vector<8xf32>
    %451 = vector.shape_cast %450 : vector<8xf32> to vector<8x1xf32>
    %452 = vector.broadcast %451 : vector<8x1xf32> to vector<8x6xf32>
    %453 = arith.divf %449, %452 : vector<8x6xf32>
    %454 = arith.truncf %453 : vector<8x6xf32> to vector<8x6xbf16>
    %455 = vector.extract_strided_slice %388 {offsets = [0, 16], sizes = [6, 8], strides = [1, 1]} : vector<6x32xf32> to vector<6x8xf32>
    %456 = arith.truncf %455 : vector<6x8xf32> to vector<6x8xbf16>
    %cst_161 = arith.constant dense<0.000000e+00> : vector<8x8xf32>
    %457 = tpu.matmul %454, %456, %cst_161 {dimension_numbers = #tpu.dot_dimension_numbers<[1], [0], [0], [1], [0, 0, 1, 1], [], []>} : vector<8x6xbf16>, vector<6x8xbf16>, vector<8x8xf32> -> vector<8x8xf32>
    %458 = arith.truncf %457 : vector<8x8xf32> to vector<8x8xbf16>
    %459 = vector.extract_strided_slice %270 {offsets = [16, 0], sizes = [8, 32], strides = [1, 1]} : vector<32x32xbf16> to vector<8x32xbf16>
    %cst_162 = arith.constant dense<0.000000e+00> : vector<8x32xf32>
    %460 = tpu.matmul %458, %459, %cst_162 {dimension_numbers = #tpu.dot_dimension_numbers<[1], [0], [0], [1], [0, 0, 1, 1], [], []>} : vector<8x8xbf16>, vector<8x32xbf16>, vector<8x32xf32> -> vector<8x32xf32>
    %461 = arith.addf %437, %460 : vector<8x32xf32>
    %462 = vector.extract_strided_slice %386 {offsets = [0, 24], sizes = [8, 8], strides = [1, 1]} : vector<8x32xf32> to vector<8x8xf32>
    %cst_163 = arith.constant 0.353553385 : f32
    %463 = vector.broadcast %cst_163 : f32 to vector<8x8xf32>
    %464 = arith.mulf %462, %463 : vector<8x8xf32>
    %465 = arith.truncf %464 : vector<8x8xf32> to vector<8x8xbf16>
    %466 = vector.extract_strided_slice %387 {offsets = [0, 24], sizes = [6, 8], strides = [1, 1]} : vector<6x32xf32> to vector<6x8xf32>
    %467 = arith.truncf %466 : vector<6x8xf32> to vector<6x8xbf16>
    "tpu.trace_start"() <{level = 10 : i32, message = "qd,kd->qk"}> : () -> ()
    %cst_164 = arith.constant dense<0.000000e+00> : vector<8x6xf32>
    %468 = tpu.matmul %465, %467, %cst_164 {dimension_numbers = #tpu.dot_dimension_numbers<[1], [1], [0], [0], [0, 0, 1, 0], [], []>} : vector<8x8xbf16>, vector<6x8xbf16>, vector<8x6xf32> -> vector<8x6xf32>
    "tpu.trace_stop"() : () -> ()
    %cst_165 = arith.constant dense<0xFF800000> : vector<8xf32>
    %469 = vector.multi_reduction <maximumf>, %468, %cst_165 [1] : vector<8x6xf32> to vector<8xf32>
    %470 = vector.shape_cast %469 : vector<8xf32> to vector<8x1xf32>
    %471 = vector.broadcast %470 : vector<8x1xf32> to vector<8x6xf32>
    %472 = arith.subf %468, %471 : vector<8x6xf32>
    %473 = math.exp %472 : vector<8x6xf32>
    %cst_166 = arith.constant dense<0.000000e+00> : vector<8xf32>
    %474 = vector.multi_reduction <add>, %473, %cst_166 [1] : vector<8x6xf32> to vector<8xf32>
    %475 = vector.shape_cast %474 : vector<8xf32> to vector<8x1xf32>
    %476 = vector.broadcast %475 : vector<8x1xf32> to vector<8x6xf32>
    %477 = arith.divf %473, %476 : vector<8x6xf32>
    %478 = arith.truncf %477 : vector<8x6xf32> to vector<8x6xbf16>
    %479 = vector.extract_strided_slice %388 {offsets = [0, 24], sizes = [6, 8], strides = [1, 1]} : vector<6x32xf32> to vector<6x8xf32>
    %480 = arith.truncf %479 : vector<6x8xf32> to vector<6x8xbf16>
    %cst_167 = arith.constant dense<0.000000e+00> : vector<8x8xf32>
    %481 = tpu.matmul %478, %480, %cst_167 {dimension_numbers = #tpu.dot_dimension_numbers<[1], [0], [0], [1], [0, 0, 1, 1], [], []>} : vector<8x6xbf16>, vector<6x8xbf16>, vector<8x8xf32> -> vector<8x8xf32>
    %482 = arith.truncf %481 : vector<8x8xf32> to vector<8x8xbf16>
    %483 = vector.extract_strided_slice %270 {offsets = [24, 0], sizes = [8, 32], strides = [1, 1]} : vector<32x32xbf16> to vector<8x32xbf16>
    %cst_168 = arith.constant dense<0.000000e+00> : vector<8x32xf32>
    %484 = tpu.matmul %482, %483, %cst_168 {dimension_numbers = #tpu.dot_dimension_numbers<[1], [0], [0], [1], [0, 0, 1, 1], [], []>} : vector<8x8xbf16>, vector<8x32xbf16>, vector<8x32xf32> -> vector<8x32xf32>
    %485 = arith.addf %461, %484 : vector<8x32xf32>
    %c8_169 = arith.constant 8 : index
    %c0_170 = arith.constant 0 : index
    %486 = vector.load %arg25[%c8_169, %c0_170] : memref<16x32xf32, #tpu.memory_space<vmem>>, vector<8x32xf32>
    tpu.vector_store %arg25[%c8_169, %c0_170], %485 {strides = array<i32>} : memref<16x32xf32, #tpu.memory_space<vmem>>, vector<8x32xf32>,
    %c0_171 = arith.constant 0 : index
    %c0_172 = arith.constant 0 : index
    %487 = vector.load %arg25[%c0_171, %c0_172] : memref<16x32xf32, #tpu.memory_space<vmem>>, vector<16x32xf32>
    %488 = arith.addf %259, %487 : vector<16x32xf32>
    %c0_173 = arith.constant 0 : index
    %c0_174 = arith.constant 0 : index
    %c0_175 = arith.constant 0 : index
    %489 = vector.load %arg14[%c0_173, %c0_174, %c0_175] : memref<1x1x32xf32, #tpu.memory_space<vmem>>, vector<1x1x32xf32>
    %490 = vector.shape_cast %489 : vector<1x1x32xf32> to vector<1x32xf32>
    %491 = vector.broadcast %490 : vector<1x32xf32> to vector<16x32xf32>
    %492 = arith.addf %488, %491 : vector<16x32xf32>
    %cst_176 = arith.constant dense<0.000000e+00> : vector<16xf32>
    %493 = vector.multi_reduction <add>, %492, %cst_176 [1] : vector<16x32xf32> to vector<16xf32>
    %494 = vector.shape_cast %493 : vector<16xf32> to vector<16x1xf32>
    %cst_177 = arith.constant 3.200000e+01 : f32
    %495 = vector.broadcast %cst_177 : f32 to vector<16x1xf32>
    %496 = arith.divf %494, %495 : vector<16x1xf32>
    %497 = vector.broadcast %496 : vector<16x1xf32> to vector<16x32xf32>
    %498 = arith.subf %492, %497 : vector<16x32xf32>
    %499 = arith.mulf %498, %498 : vector<16x32xf32>
    %cst_178 = arith.constant dense<0.000000e+00> : vector<16xf32>
    %500 = vector.multi_reduction <add>, %499, %cst_178 [1] : vector<16x32xf32> to vector<16xf32>
    %501 = vector.shape_cast %500 : vector<16xf32> to vector<16x1xf32>
    %cst_179 = arith.constant 3.200000e+01 : f32
    %502 = vector.broadcast %cst_179 : f32 to vector<16x1xf32>
    %503 = arith.divf %501, %502 : vector<16x1xf32>
    %cst_180 = arith.constant 9.99999974E-6 : f32
    %504 = vector.broadcast %cst_180 : f32 to vector<16x1xf32>
    %505 = arith.addf %503, %504 : vector<16x1xf32>
    %506 = math.rsqrt %505 : vector<16x1xf32>
    %507 = vector.broadcast %506 : vector<16x1xf32> to vector<16x32xf32>
    %508 = arith.mulf %498, %507 : vector<16x32xf32>
    %509 = vector.extract_strided_slice %4 {offsets = [1, 0], sizes = [1, 32], strides = [1, 1]} : vector<3x32xf32> to vector<1x32xf32>
    %510 = vector.broadcast %509 : vector<1x32xf32> to vector<16x32xf32>
    %511 = arith.mulf %508, %510 : vector<16x32xf32>
    %512 = vector.extract_strided_slice %6 {offsets = [1, 0], sizes = [1, 32], strides = [1, 1]} : vector<3x32xf32> to vector<1x32xf32>
    %513 = vector.broadcast %512 : vector<1x32xf32> to vector<16x32xf32>
    %514 = arith.addf %511, %513 : vector<16x32xf32>
    %515 = arith.truncf %514 : vector<16x32xf32> to vector<16x32xbf16>
    %c0_181 = arith.constant 0 : index
    %c0_182 = arith.constant 0 : index
    %c0_183 = arith.constant 0 : index
    %516 = vector.load %arg15[%c0_181, %c0_182, %c0_183] : memref<1x32x128xbf16, #tpu.memory_space<vmem>>, vector<1x32x128xbf16>
    %517 = vector.shape_cast %516 : vector<1x32x128xbf16> to vector<32x128xbf16>
    %cst_184 = arith.constant dense<0.000000e+00> : vector<16x128xf32>
    %518 = tpu.matmul %515, %517, %cst_184 {dimension_numbers = #tpu.dot_dimension_numbers<[1], [0], [0], [1], [0, 0, 1, 1], [], []>} : vector<16x32xbf16>, vector<32x128xbf16>, vector<16x128xf32> -> vector<16x128xf32>
    %c0_185 = arith.constant 0 : index
    %c0_186 = arith.constant 0 : index
    %c0_187 = arith.constant 0 : index
    %519 = vector.load %arg16[%c0_185, %c0_186, %c0_187] : memref<1x1x128xf32, #tpu.memory_space<vmem>>, vector<1x1x128xf32>
    %520 = vector.shape_cast %519 : vector<1x1x128xf32> to vector<1x128xf32>
    %521 = vector.broadcast %520 : vector<1x128xf32> to vector<16x128xf32>
    %522 = arith.addf %518, %521 : vector<16x128xf32>
    %cst_188 = arith.constant 0.000000e+00 : f32
    %523 = vector.broadcast %cst_188 : f32 to vector<16x128xf32>
    %524 = arith.maximumf %522, %523 : vector<16x128xf32>
    %525 = arith.truncf %524 : vector<16x128xf32> to vector<16x128xbf16>
    %c0_189 = arith.constant 0 : index
    %c0_190 = arith.constant 0 : index
    %c0_191 = arith.constant 0 : index
    %526 = vector.load %arg17[%c0_189, %c0_190, %c0_191] : memref<1x128x32xbf16, #tpu.memory_space<vmem>>, vector<1x128x32xbf16>
    %527 = vector.shape_cast %526 : vector<1x128x32xbf16> to vector<128x32xbf16>
    %cst_192 = arith.constant dense<0.000000e+00> : vector<16x32xf32>
    %528 = tpu.matmul %525, %527, %cst_192 {dimension_numbers = #tpu.dot_dimension_numbers<[1], [0], [0], [1], [0, 0, 1, 1], [], []>} : vector<16x128xbf16>, vector<128x32xbf16>, vector<16x32xf32> -> vector<16x32xf32>
    %c0_193 = arith.constant 0 : index
    %c0_194 = arith.constant 0 : index
    %c0_195 = arith.constant 0 : index
    %529 = vector.load %arg18[%c0_193, %c0_194, %c0_195] : memref<1x1x32xf32, #tpu.memory_space<vmem>>, vector<1x1x32xf32>
    %530 = vector.shape_cast %529 : vector<1x1x32xf32> to vector<1x32xf32>
    %531 = vector.broadcast %530 : vector<1x32xf32> to vector<16x32xf32>
    %532 = arith.addf %528, %531 : vector<16x32xf32>
    %533 = arith.addf %514, %532 : vector<16x32xf32>
    %cst_196 = arith.constant dense<0.000000e+00> : vector<16xf32>
    %534 = vector.multi_reduction <add>, %533, %cst_196 [1] : vector<16x32xf32> to vector<16xf32>
    %535 = vector.shape_cast %534 : vector<16xf32> to vector<16x1xf32>
    %cst_197 = arith.constant 3.200000e+01 : f32
    %536 = vector.broadcast %cst_197 : f32 to vector<16x1xf32>
    %537 = arith.divf %535, %536 : vector<16x1xf32>
    %538 = vector.broadcast %537 : vector<16x1xf32> to vector<16x32xf32>
    %539 = arith.subf %533, %538 : vector<16x32xf32>
    %540 = arith.mulf %539, %539 : vector<16x32xf32>
    %cst_198 = arith.constant dense<0.000000e+00> : vector<16xf32>
    %541 = vector.multi_reduction <add>, %540, %cst_198 [1] : vector<16x32xf32> to vector<16xf32>
    %542 = vector.shape_cast %541 : vector<16xf32> to vector<16x1xf32>
    %cst_199 = arith.constant 3.200000e+01 : f32
    %543 = vector.broadcast %cst_199 : f32 to vector<16x1xf32>
    %544 = arith.divf %542, %543 : vector<16x1xf32>
    %cst_200 = arith.constant 9.99999974E-6 : f32
    %545 = vector.broadcast %cst_200 : f32 to vector<16x1xf32>
    %546 = arith.addf %544, %545 : vector<16x1xf32>
    %547 = math.rsqrt %546 : vector<16x1xf32>
    %548 = vector.broadcast %547 : vector<16x1xf32> to vector<16x32xf32>
    %549 = arith.mulf %539, %548 : vector<16x32xf32>
    %550 = vector.extract_strided_slice %4 {offsets = [2, 0], sizes = [1, 32], strides = [1, 1]} : vector<3x32xf32> to vector<1x32xf32>
    %551 = vector.broadcast %550 : vector<1x32xf32> to vector<16x32xf32>
    %552 = arith.mulf %549, %551 : vector<16x32xf32>
    %553 = vector.extract_strided_slice %6 {offsets = [2, 0], sizes = [1, 32], strides = [1, 1]} : vector<3x32xf32> to vector<1x32xf32>
    %554 = vector.broadcast %553 : vector<1x32xf32> to vector<16x32xf32>
    %555 = arith.addf %552, %554 : vector<16x32xf32>
    %c0_201 = arith.constant 0 : index
    %c0_202 = arith.constant 0 : index
    %556 = vector.load %arg22[%c0_201, %c0_202] : memref<16x32xf32, #tpu.memory_space<vmem>>, vector<16x32xf32>
    tpu.vector_store %arg22[%c0_201, %c0_202], %555 {strides = array<i32>} : memref<16x32xf32, #tpu.memory_space<vmem>>, vector<16x32xf32>,
    %c1_i32 = arith.constant 1 : i32
    %557 = arith.cmpi eq, %arg1, %c1_i32 : i32
    %558 = arith.extui %557 : i1 to i32
    %c0_i32_203 = arith.constant 0 : i32
    %559 = arith.cmpi ne, %558, %c0_i32_203 : i32
    scf.if %559 {
      %c0_204 = arith.constant 0 : index
      %c0_205 = arith.constant 0 : index
      %560 = vector.load %arg21[%c0_204, %c0_205] : memref<16x32xf32, #tpu.memory_space<vmem>>, vector<16x32xf32>
      tpu.vector_store %arg21[%c0_204, %c0_205], %555 {strides = array<i32>} : memref<16x32xf32, #tpu.memory_space<vmem>>, vector<16x32xf32>,
    } else {
    }
    return
  }
  func.func @transform_0(%arg0: i32, %arg1: i32) -> (i32, i32) {
    %c0_i32 = arith.constant 0 : i32
    %c0_i32_0 = arith.constant 0 : i32
    return %arg0, %c0_i32 : i32, i32
  }
  func.func @transform_1(%arg0: i32, %arg1: i32) -> (i32, i32, i32) {
    %c0_i32 = arith.constant 0 : i32
    %c0_i32_0 = arith.constant 0 : i32
    %c0_i32_1 = arith.constant 0 : i32
    return %arg0, %c0_i32, %c0_i32_0 : i32, i32, i32
  }
  func.func @transform_2(%arg0: i32, %arg1: i32) -> (i32, i32) {
    %c0_i32 = arith.constant 0 : i32
    %c0_i32_0 = arith.constant 0 : i32
    %c0_i32_1 = arith.constant 0 : i32
    return %c0_i32, %c0_i32_0 : i32, i32
  }
  func.func @transform_3(%arg0: i32, %arg1: i32) -> (i32, i32, i32) {
    %c0_i32 = arith.constant 0 : i32
    %c0_i32_0 = arith.constant 0 : i32
    %c0_i32_1 = arith.constant 0 : i32
    return %arg1, %c0_i32, %c0_i32_0 : i32, i32, i32
  }
  func.func @transform_4(%arg0: i32, %arg1: i32) -> (i32, i32, i32) {
    %c0_i32 = arith.constant 0 : i32
    %c0_i32_0 = arith.constant 0 : i32
    %c0_i32_1 = arith.constant 0 : i32
    return %arg1, %c0_i32, %c0_i32_0 : i32, i32, i32
  }
  func.func @transform_5(%arg0: i32, %arg1: i32) -> (i32, i32, i32) {
    %c0_i32 = arith.constant 0 : i32
    %c0_i32_0 = arith.constant 0 : i32
    %c0_i32_1 = arith.constant 0 : i32
    return %arg1, %c0_i32, %c0_i32_0 : i32, i32, i32
  }
  func.func @transform_6(%arg0: i32, %arg1: i32) -> (i32, i32, i32) {
    %c0_i32 = arith.constant 0 : i32
    %c0_i32_0 = arith.constant 0 : i32
    %c0_i32_1 = arith.constant 0 : i32
    return %arg1, %c0_i32, %c0_i32_0 : i32, i32, i32
  }
  func.func @transform_7(%arg0: i32, %arg1: i32) -> (i32, i32, i32) {
    %c0_i32 = arith.constant 0 : i32
    %c0_i32_0 = arith.constant 0 : i32
    %c0_i32_1 = arith.constant 0 : i32
    return %arg1, %c0_i32, %c0_i32_0 : i32, i32, i32
  }
  func.func @transform_8(%arg0: i32, %arg1: i32) -> (i32, i32, i32) {
    %c0_i32 = arith.constant 0 : i32
    %c0_i32_0 = arith.constant 0 : i32
    %c0_i32_1 = arith.constant 0 : i32
    return %arg1, %c0_i32, %c0_i32_0 : i32, i32, i32
  }
  func.func @transform_9(%arg0: i32, %arg1: i32) -> (i32, i32, i32) {
    %c0_i32 = arith.constant 0 : i32
    %c0_i32_0 = arith.constant 0 : i32
    %c0_i32_1 = arith.constant 0 : i32
    return %arg1, %c0_i32, %c0_i32_0 : i32, i32, i32
  }
  func.func @transform_10(%arg0: i32, %arg1: i32) -> (i32, i32, i32) {
    %c0_i32 = arith.constant 0 : i32
    %c0_i32_0 = arith.constant 0 : i32
    %c0_i32_1 = arith.constant 0 : i32
    return %arg1, %c0_i32, %c0_i32_0 : i32, i32, i32
  }
  func.func @transform_11(%arg0: i32, %arg1: i32) -> (i32, i32, i32) {
    %c0_i32 = arith.constant 0 : i32
    %c0_i32_0 = arith.constant 0 : i32
    %c0_i32_1 = arith.constant 0 : i32
    return %arg1, %c0_i32, %c0_i32_0 : i32, i32, i32
  }
  func.func @transform_12(%arg0: i32, %arg1: i32) -> (i32, i32, i32) {
    %c0_i32 = arith.constant 0 : i32
    %c0_i32_0 = arith.constant 0 : i32
    %c0_i32_1 = arith.constant 0 : i32
    return %arg1, %c0_i32, %c0_i32_0 : i32, i32, i32
  }
  func.func @transform_13(%arg0: i32, %arg1: i32) -> (i32, i32, i32) {
    %c0_i32 = arith.constant 0 : i32
    %c0_i32_0 = arith.constant 0 : i32
    %c0_i32_1 = arith.constant 0 : i32
    return %arg1, %c0_i32, %c0_i32_0 : i32, i32, i32
  }
  func.func @transform_14(%arg0: i32, %arg1: i32) -> (i32, i32, i32) {
    %c0_i32 = arith.constant 0 : i32
    %c0_i32_0 = arith.constant 0 : i32
    %c0_i32_1 = arith.constant 0 : i32
    return %arg1, %c0_i32, %c0_i32_0 : i32, i32, i32
  }
  func.func @transform_15(%arg0: i32, %arg1: i32) -> (i32, i32, i32) {
    %c0_i32 = arith.constant 0 : i32
    %c0_i32_0 = arith.constant 0 : i32
    %c0_i32_1 = arith.constant 0 : i32
    return %arg1, %c0_i32, %c0_i32_0 : i32, i32, i32
  }
  func.func @transform_16(%arg0: i32, %arg1: i32) -> (i32, i32, i32) {
    %c0_i32 = arith.constant 0 : i32
    %c0_i32_0 = arith.constant 0 : i32
    %c0_i32_1 = arith.constant 0 : i32
    return %arg1, %c0_i32, %c0_i32_0 : i32, i32, i32
  }
  func.func @transform_17(%arg0: i32, %arg1: i32) -> (i32, i32, i32) {
    %c0_i32 = arith.constant 0 : i32
    %c0_i32_0 = arith.constant 0 : i32
    %c0_i32_1 = arith.constant 0 : i32
    return %arg1, %c0_i32, %c0_i32_0 : i32, i32, i32
  }
  func.func @transform_18(%arg0: i32, %arg1: i32) -> (i32, i32, i32) {
    %c0_i32 = arith.constant 0 : i32
    %c0_i32_0 = arith.constant 0 : i32
    %c0_i32_1 = arith.constant 0 : i32
    return %arg1, %c0_i32, %c0_i32_0 : i32, i32, i32
  }
  func.func @transform_19(%arg0: i32, %arg1: i32) -> (i32, i32) {
    %c0_i32 = arith.constant 0 : i32
    %c0_i32_0 = arith.constant 0 : i32
    return %arg0, %c0_i32 : i32, i32
  }
}

</mosaic_0001>

<bundles_post_ra>
// kernel: tpu_custom_call.1
= control target key start
LH: loop header
LB: loop body
LE: loop exit
PB: predicated region body
PF: predicated region fallthrough
CT: control target
= control target key end

     0   :  { %s6779_s0 = inlined_call_operand.vmem [shape: f32[32,32], index: 0, kind: input, shape index: {}]   ;;  %s6780_s1 = inlined_call_operand.vmem [shape: bf16[4,6,32], index: 1, kind: input, shape index: {}]   ;;  %s6781_s2 = inlined_call_operand.hbm [shape: f32[8,8], index: 2, kind: input, shape index: {}]   ;;  %s6782_s3 = inlined_call_operand.vmem [shape: bf16[2,32,96], index: 3, kind: input, shape index: {}]   ;;  %s6783_s4 = inlined_call_operand.hbm [shape: f32[2,1,96], index: 4, kind: input, shape index: {}]   ;;  %s6784_s5 = inlined_call_operand.vmem [shape: bf16[2,32,32], index: 5, kind: input, shape index: {}]   ;;  %s6785_s6 = inlined_call_operand.hbm [shape: f32[2,1,32], index: 6, kind: input, shape index: {}]   ;;  %s6786_s7 = inlined_call_operand.vmem [shape: bf16[2,32,32], index: 7, kind: input, shape index: {}]   ;;  %s6787_s8 = inlined_call_operand.hbm [shape: f32[2,1,32], index: 8, kind: input, shape index: {}]   ;;  %s6788_s9 = inlined_call_operand.vmem [shape: bf16[2,32,64], index: 9, kind: input, shape index: {}]   ;;  %s6789_s10 = inlined_call_operand.hbm [shape: f32[2,1,64], index: 10, kind: input, shape index: {}]   ;;  %s6790_s11 = inlined_call_operand.vmem [shape: bf16[2,32,32], index: 11, kind: input, shape index: {}]   ;;  %s6791_s12 = inlined_call_operand.hbm [shape: f32[2,1,32], index: 12, kind: input, shape index: {}]   ;;  %s6792_s13 = inlined_call_operand.hbm [shape: bf16[2,32,128], index: 13, kind: input, shape index: {}]   ;;  %s6793_s14 = inlined_call_operand.vmem [shape: f32[2,1,128], index: 14, kind: input, shape index: {}]   ;;  %s6794_s15 = inlined_call_operand.vmem [shape: bf16[2,128,32], index: 15, kind: input, shape index: {}]   ;;  %s6795_s16 = inlined_call_operand.vmem [shape: f32[2,1,32], index: 16, kind: input, shape index: {}]   ;;  %s6796_s17 = inlined_call_operand.vmem [shape: f32[2,3,32], index: 17, kind: input, shape index: {}]   ;;  %s6797_s18 = inlined_call_operand.vmem [shape: f32[2,3,32], index: 18, kind: input, shape index: {}]   ;;  %s6798_s19 = inlined_call_operand.hbm [shape: f32[32,32], index: 19, kind: output, shape index: {}]  }
   0x1   :  { %6820 = sst [smem:[#allocation40_spill]] %s6779_s0 }
   0x2   :  { %6821 = sst [smem:[#allocation41_spill]] %s6780_s1 }
   0x3   :  { %6822 = sst [smem:[#allocation42_spill]] %s6781_s2 }
   0x4   :  { %6823 = sst [smem:[#allocation43_spill]] %s6782_s3 }
   0x5   :  { %6824 = sst [smem:[#allocation44_spill]] %s6783_s4 }
   0x6   :  { %6825 = sst [smem:[#allocation45_spill]] %s6784_s5 }
   0x7   :  { %6826 = sst [smem:[#allocation46_spill]] %s6785_s6 }
   0x8   :  { %6827 = sst [smem:[#allocation47_spill]] %s6786_s7 }
   0x9   :  { %6828 = sst [smem:[#allocation48_spill]] %s6787_s8 }
   0xa   :  { %6829 = sst [smem:[#allocation49_spill]] %s6788_s9 }
   0xb   :  { %6830 = sst [smem:[#allocation50_spill]] %s6789_s10 }
   0xc   :  { %6831 = sst [smem:[#allocation51_spill]] %s6790_s11 }
   0xd   :  { %6832 = sst [smem:[#allocation52_spill]] %s6791_s12 }
   0xe   :  { %6833 = sst [smem:[#allocation53_spill]] %s6792_s13 }
   0xf   :  { %6834 = sst [smem:[#allocation54_spill]] %s6793_s14 }
  0x10   :  { %6835 = sst [smem:[#allocation55_spill]] %s6794_s15 }
  0x11   :  { %6836 = sst [smem:[#allocation56_spill]] %s6795_s16 }
  0x12   :  { %6837 = sst [smem:[#allocation57_spill]] %s6796_s17 }
  0x13   :  { %6838 = sst [smem:[#allocation58_spill]] %s6797_s18 }
  0x14   :  { %6839 = sst [smem:[#allocation59_spill]] %s6798_s19 }
  0x15   :  { %24 = vsyncpa [#allocation7], 0 }
  0x16   :  { %25 = vsyncpa [#allocation10], 0 }
  0x17   :  { %27 = vsyncpa [#allocation10 + $0x1], 0 }
  0x18   :  { %28 = vsyncpa [#allocation13], 0 }
  0x19   :  { %30 = vsyncpa [#allocation13 + $0x1], 0 }
  0x1a   :  { %31 = vsyncpa [#allocation16], 0 }
  0x1b   :  { %33 = vsyncpa [#allocation16 + $0x1], 0 }
  0x1c   :  { %34 = vsyncpa [#allocation8], 0 }
  0x1d   :  { %36 = vsyncpa [#allocation8 + $0x1], 0  ;;  %s5797_s0 = smov 0   ;;  %s5799_s30 = smov 0  }
  0x1e   :  { %s5801_s20 = smov 0   ;;  %s5803_s21 = smov 0  }
  0x1f   :  { %s5805_s1 = smov 0   ;;  %s5807_s22 = smov 0  }
  0x20   :  { %s5809_s2 = smov 0   ;;  %s5811_s23 = smov 0  }
  0x21   :  { %s5813_s24 = smov 0   ;;  %s5815_s25 = smov 0  }
  0x22   :  { %s5817_s3 = smov 0  }
  0x23 LB: > { %6840 = sst [smem:[#allocation24_spill]] %s5630_s0  ;;  %s51_s26 = sadd.s32 1, %s5662_s24  ;;  %s5670_s3 = sphi %s5817_s3, %s42_s3   ;;  %s5666_s25 = sphi %s5815_s25, %s6918_s25   ;;  %s5662_s24 = sphi %s5813_s24, %s6917_s24   ;;  %s5658_s23 = sphi %s5811_s23, %s6916_s23   ;;  %s5654_s2 = sphi %s5809_s2, %s6915_s2   ;;  %s5650_s22 = sphi %s5807_s22, %s6914_s22   ;;  %s5646_s1 = sphi %s5805_s1, %s6913_s1   ;;  %s5642_s21 = sphi %s5803_s21, %s6912_s21   ;;  %s5638_s20 = sphi %s5801_s20, %s6911_s20   ;;  %s5634_s30 = sphi %s5799_s30, %s6910_s30   ;;  %s5630_s0 = sphi %s5797_s0, %s6909_s0  }
  0x24   : > { %6841 = sst [smem:[#allocation25_spill]] %s5634_s30  ;;  %s54_s27 = sadd.s32 1, %s5666_s25 }
  0x25   : > { %6842 = sst [smem:[#allocation26_spill]] %s5638_s20  ;;  %p52_p0 = scmp.ge.s32.totalorder %s51_s26, 2 }
  0x26   : > { %6843 = sst [smem:[#allocation27_spill]] %s5646_s1  ;;  %s160_s28 = sadd.s32 1, %s5650_s22 }
  0x27   : > { %6844 = sst [smem:[#allocation28_spill]] %s5650_s22  ;;  %p167_p1 = scmp.ne.s32.totalorder %s5650_s22, %s5646_s1 }
  0x28   : > { %6845 = sst [smem:[#allocation29_spill]] %s5654_s2  ;;  %p168_p2 = scmp.eq.s32.totalorder %s5670_s3, 0 }
  0x29   : > { %6846 = sst [smem:[#allocation30_spill]] %s5658_s23  ;;  %s6920_s26 = smov (%p52_p0, %s51_s26), 0 }
  0x2a   : > { %6847 = sst [smem:[#allocation31_spill]] %s5662_s24  ;;  %s6922_s27 = smov (!%p52_p0, %s54_s27), %s5666_s25 }
  0x2b   : > { %6848 = sst [smem:[#allocation32_spill]] %s5666_s25  ;;  %s157_s29 = ssub.s32 %s5662_s24, %s6920_s26 }
  0x2c   : > { %6849 = sst [smem:[#allocation33_spill]] %s5670_s3  ;;  %p169_p3 = por %p168_p2, %p167_p1 }
  0x2d   : > { %6850 = sst [smem:[#allocation34_spill]] %s6920_s26  ;;  %p158_p4 = scmp.eq.s32.totalorder %s157_s29, 0 }
  0x2e   : > { %p5141_p5 = scmp.lt.s32.totalorder %s5670_s3, 4  ;;  %s5867_s19 = sand.u32 1, %s5670_s3  }
  0x2f   : > { %s5870_s18 = scalar_select %p158_p4, %s5650_s22, %s160_s28  }
  0x30   : > { %s5873_s17 = sand.u32 1, %s5650_s22   ;;  %s5876_s16 = sshll.u32 %s5662_s24, 4 }
  0x31   : > { %6851 = sst [smem:[#allocation35_spill]] %s5870_s18  ;;  %s627_s26 = scalar_lea.vmem [#allocation9], %s5873_s17 }
  0x32   : > { %s6852_s4 = sld [smem:[#allocation44_spill]]  ;;  %s634_s7 = sshll.u32 %s627_s26, 4  ;;  %s635_s7 = int_to_ptr.vmem [resolvable:$true] %s634_s7 }
  0x33   : > { %p5883_p6 = pnand %p5141_p5, %p169_p3  ;;  %s6854_s8 = sld [smem:[#allocation48_spill]] }
  0x34   : > { %s6802_s5 = scalar_lea.sflag [#allocation10], %s5867_s19  ;;  %s5357_s11 = scalar_lea.vmem %s635_s7, 16 }
  0x35   : > { %p5894_p7 = pneg %p5883_p6  ;;  %p5358_p8 = scmp.ne.s32.totalorder %s635_s7, %s5357_s11 }
  0x36   : > { %s5672_s15 = smov [#allocation9]  }
  0x37   : > { %p5360_p9 = pnand %p5358_p8, %p5894_p7  ;;  %s5362_s26 = sshll.u32 %s5672_s15, 4  ;;  %s5363_s26 = int_to_ptr.vmem [resolvable:$false] %s5362_s26 }
  0x38   : > { %s632_s9 = scalar_lea.hbm %s6852_s4, %s5876_s16  ;;  %s5364_s4 = scalar_lea.vmem %s5363_s26, 32 }
  0x39   : > { %p5361_p10 = pneg %p5360_p9  ;;  %p5365_p11 = scmp.lt.s32.totalorder %s635_s7, %s5363_s26 }
  0x3a   : > { %p5366_p12 = scmp.lt.s32.totalorder %s5364_s4, %s5357_s11 }
  0x3c   : > { %p5367_p13 = por %p5366_p12, %p5365_p11 }
  0x3e   : > { %p5368_p0 = pnand %p5367_p13, %p5361_p10 }
  0x40   : > { %5371 = shalt.err (!%p5368_p0)
}
  0x41   : > { %5120 = dma.hbm_to_vmem [thread:$0]  (!%p5883_p6), %s632_s9, 16, %s635_s7, %s6802_s5  }
  0x42   : > { %s677_s18 = scalar_lea.vmem [#allocation12], %s5873_s17  ;;  %s6805_s22 = scalar_lea.sflag [#allocation13], %s5867_s19 }
  0x43   : > { %s684_s28 = sshll.u32 %s677_s18, 4  ;;  %s5673_s4 = smov [#allocation12]   ;;  %s685_s28 = int_to_ptr.vmem [resolvable:$true] %s684_s28 }
  0x44   : > { %s5385_s15 = scalar_lea.vmem %s685_s28, 16  ;;  %s5390_s11 = sshll.u32 %s5673_s4, 4  ;;  %s5391_s11 = int_to_ptr.vmem [resolvable:$false] %s5390_s11 }
  0x45   : > { %p5386_p1 = scmp.ne.s32.totalorder %s685_s28, %s5385_s15  ;;  %s5392_s26 = scalar_lea.vmem %s5391_s11, 32 }
  0x46   : > { %p5393_p4 = scmp.lt.s32.totalorder %s685_s28, %s5391_s11  ;;  %p5394_p5 = scmp.lt.s32.totalorder %s5392_s26, %s5385_s15 }
  0x47   : > { %p5388_p2 = pnand %p5386_p1, %p5894_p7 }
  0x48   : > { %p5395_p8 = por %p5394_p5, %p5393_p4 }
  0x49   : > { %p5389_p3 = pneg %p5388_p2 }
  0x4b   : > { %p5396_p9 = pnand %p5395_p8, %p5389_p3 }
  0x4d   : > { %5399 = shalt.err (!%p5396_p9)
}
  0x4e   : > { %s6856_s18 = scalar_lea.hbm %s6854_s8, %s5876_s16  ;;  %s6857_s12 = sld [smem:[#allocation52_spill]] }
  0x4f   : > { %5126 = dma.hbm_to_vmem [thread:$0]  (!%p5883_p6), %s6856_s18, 16, %s685_s28, %s6805_s22  }
  0x50   : > { %s727_s26 = scalar_lea.vmem [#allocation15], %s5873_s17  ;;  %s6804_s2 = scalar_lea.sflag [#allocation16], %s5867_s19 }
  0x51   : > { %s734_s5 = sshll.u32 %s727_s26, 4  ;;  %s5674_s7 = smov [#allocation15]   ;;  %s735_s5 = int_to_ptr.vmem [resolvable:$true] %s734_s5 }
  0x52   : > { %s5413_s23 = scalar_lea.vmem %s735_s5, 16  ;;  %s5418_s9 = sshll.u32 %s5674_s7, 4  ;;  %s5419_s9 = int_to_ptr.vmem [resolvable:$false] %s5418_s9 }
  0x53   : > { %p5414_p10 = scmp.ne.s32.totalorder %s735_s5, %s5413_s23  ;;  %s5420_s8 = scalar_lea.vmem %s5419_s9, 32 }
  0x54   : > { %s732_s15 = scalar_lea.hbm %s6857_s12, %s5876_s16  ;;  %p5421_p13 = scmp.lt.s32.totalorder %s735_s5, %s5419_s9 }
  0x55   : > { %p5416_p11 = pnand %p5414_p10, %p5894_p7  ;;  %p5422_p0 = scmp.lt.s32.totalorder %s5420_s8, %s5413_s23 }
  0x57   : > { %p5417_p12 = pneg %p5416_p11  ;;  %p5423_p1 = por %p5422_p0, %p5421_p13 }
  0x59   : > { %p5424_p2 = pnand %p5423_p1, %p5417_p12 }
  0x5b   : > { %5427 = shalt.err (!%p5424_p2)
}
  0x5c   : > { %5132 = dma.hbm_to_vmem [thread:$0]  (!%p5883_p6), %s732_s15, 16, %s735_s5, %s6804_s2  }
  0x5d   : > { %s5930_s8 = sadd.s32 4294967295, %s5670_s3   ;;  %s4501_s23 = sadd.s32 4294967294, %s5670_s3  }
  0x5e   : > { %p56_p3 = scmp.ge.s32.totalorder %s6922_s27, 2  ;;  %p173_p4 = scmp.ne.s32.totalorder %s5646_s1, %s5642_s21 }
  0x5f   : > { %p174_p5 = scmp.eq.s32.totalorder %s5930_s8, 0  ;;  %s550_s5 = sadd.s32 1, %s5638_s20 }
  0x60   : > { %s6924_s27 = smov (%p56_p3, %s6922_s27), 0  ;;  %p560_p9 = scmp.ne.s32.totalorder %s5638_s20, %s5634_s30 }
  0x61   : > { %6858 = sst [smem:[#allocation36_spill]] %s6924_s27  ;;  %p5942_p8 = por %p174_p5, %p173_p4 }
  0x62   : > { %s547_s18 = ssub.s32 %s5666_s25, %s6924_s27  ;;  %p561_p11 = scmp.eq.s32.totalorder %s5930_s8, 3 }
  0x63   : > { %p548_p10 = scmp.eq.s32.totalorder %s547_s18, 0  ;;  %p566_p12 = scmp.ne.s32.totalorder %s5634_s30, %s5630_s0 }
  0x64   : > { %p567_p13 = scmp.eq.s32.totalorder %s4501_s23, 3  ;;  %p5957_p0 = por %p561_p11, %p560_p9 }
  0x65   : > { %s5955_s21 = scalar_select %p548_p10, %s5638_s20, %s550_s5  }
  0x66   : > { %s6861_s4 = scalar_select %p5957_p0, 1, 0 }
  0x67   : > { %6860 = sst [smem:[#allocation37_spill]] %s5955_s21  ;;  %p5961_p1 = por %p567_p13, %p566_p12 }
  0x68   : > { %6862 = sst [smem:[#allocation38_spill]] %s6861_s4  ;;  %p4502_p2 = scmp.ge.s32.totalorder %s5670_s3, 1 }
  0x69   : > { %s6863_s11 = scalar_select %p5961_p1, 1, 0 }
  0x6a   : > { %p574_p3 = scmp.lt.s32.totalorder %s5670_s3, 5  ;;  %s5675_s26 = smov [#allocation6]  }
  0x6b   : > { %6864 = sst [smem:[#allocation39_spill]] %s6863_s11  ;;  %s587_s7 = sshll.u32 %s5675_s26, 4  ;;  %s5971_s7 = int_to_ptr.vmem [resolvable:$true] %s587_s7 }
  0x6c   : > { %p5967_p4 = pnand %p4502_p2, %p574_p3  ;;  %s6866_s6 = sld [smem:[#allocation46_spill]] }
  0x6d   : > { %s652_s18 = scalar_lea.vmem [#allocation11], %s5873_s17  ;;  %s5676_s26 = smov [#allocation11]  }
  0x6e   : > { %p5113_p9 = pneg %p5967_p4  ;;  %s659_s2 = sshll.u32 %s652_s18, 4  ;;  %s660_s2 = int_to_ptr.vmem [resolvable:$true] %s659_s2 }
  0x6f   : > { %s5441_s12 = scalar_lea.vmem %s660_s2, 16  ;;  %s5446_s27 = sshll.u32 %s5676_s26, 4  ;;  %s5447_s27 = int_to_ptr.vmem [resolvable:$false] %s5446_s27 }
  0x70   : > { %p5982_p10 = pnand %p5113_p9, %p174_p5  ;;  %p5442_p11 = scmp.ne.s32.totalorder %s660_s2, %s5441_s12 }
  0x71   : > { %s5448_s25 = scalar_lea.vmem %s5447_s27, 32  ;;  %p5449_p2 = scmp.lt.s32.totalorder %s660_s2, %s5447_s27 }
  0x72   : > { %s657_s5 = scalar_lea.hbm %s6866_s6, %s5876_s16  ;;  %p5444_p12 = pnand %p5442_p11, %p5894_p7 }
  0x73   : > { %p5450_p3 = scmp.lt.s32.totalorder %s5448_s25, %s5441_s12 }
  0x74   : > { %p5445_p13 = pneg %p5444_p12 }
  0x75   : > { %p5451_p1 = por %p5450_p3, %p5449_p2 }
  0x77   : > { %p5452_p0 = pnand %p5451_p1, %p5445_p13 }
  0x79   : > { %5455 = shalt.err (!%p5452_p0)
}
  0x7a   : > { %s6868_s9 = scalar_lea.sflag [#allocation10], %s5867_s19  ;;  %s6869_s10 = sld [smem:[#allocation50_spill]] }
  0x7b   : > { %5123 = dma.hbm_to_vmem [thread:$0]  (!%p5883_p6), %s657_s5, 16, %s660_s2, %s6868_s9  }
  0x7c   : > { %p5458_p9 = pneg %p5982_p10  ;;  %s5467_s12 = scalar_lea.vmem %s5971_s7, 128 }
  0x7d   : > { %p5468_p11 = scmp.ne.s32.totalorder %s5971_s7, %s5467_s12  ;;  %p5475_p12 = scmp.lt.s32.totalorder %s5971_s7, %s5971_s7 }
  0x7e   : > { %p5476_p13 = scmp.lt.s32.totalorder %s5467_s12, %s5467_s12 }
  0x7f   : > { %p5470_p1 = pnand %p5468_p11, %p5458_p9 }
  0x80   : > { %p5477_p2 = por %p5476_p13, %p5475_p12 }
  0x81   : > { %p5471_p0 = pneg %p5470_p1 }
  0x83   : > { %p5478_p3 = pnand %p5477_p2, %p5471_p0 }
  0x85   : > { %5481 = shalt.err (!%p5478_p3)
}
  0x86   : > { %s6870_s27 = sld [smem:[#allocation42_spill]]  ;;  %s702_s5 = scalar_lea.vmem [#allocation14], %s5873_s17 }
  0x87   : > { %s709_s9 = sshll.u32 %s702_s5, 4  ;;  %s4510_s23 = sshll.u32 %s5873_s17, 4  ;;  %s710_s9 = int_to_ptr.vmem [resolvable:$true] %s709_s9 }
  0x88   : > { %s5495_s18 = scalar_lea.vmem %s710_s9, 16  ;;  %s5677_s12 = smov [#allocation14]  }
  0x89   : > { %p5496_p9 = scmp.ne.s32.totalorder %s710_s9, %s5495_s18  ;;  %s5500_s26 = sshll.u32 %s5677_s12, 4  ;;  %s5501_s26 = int_to_ptr.vmem [resolvable:$false] %s5500_s26 }
  0x8a   : > { %s5502_s22 = scalar_lea.vmem %s5501_s26, 32  ;;  %p5503_p0 = scmp.lt.s32.totalorder %s710_s9, %s5501_s26 }
  0x8b   : > { %p5498_p11 = pnand %p5496_p9, %p5894_p7  ;;  %p5504_p12 = scmp.lt.s32.totalorder %s5502_s22, %s5495_s18 }
  0x8c   : > { %5116 = dma.hbm_to_vmem [thread:$0]  (!%p5982_p10), %s6870_s27, 128, %s5971_s7, [#allocation7]  }
  0x8d   : > { %p5499_p1 = pneg %p5498_p11  ;;  %p5505_p13 = por %p5504_p12, %p5503_p0 }
  0x8f   : > { %p5506_p2 = pnand %p5505_p13, %p5499_p1 }
  0x91   : > { %5509 = shalt.err (!%p5506_p2)
}
  0x92   : > { %s6871_s7 = scalar_lea.sflag [#allocation13], %s5867_s19  ;;  %s6872_s25 = scalar_lea.hbm %s6869_s10, %s5876_s16 }
  0x93   : > { %5129 = dma.hbm_to_vmem [thread:$0]  (!%p5883_p6), %s6872_s25, 16, %s710_s9, %s6871_s7  }
  0x94   : > { %s4619_s27 = sshll.u32 %s5662_s24, 8  ;;  %s745_s5 = scalar_lea.vmem [#allocation17], %s4510_s23 }
  0x95   : > { %s752_s12 = sshll.u32 %s745_s5, 4  ;;  %s6873_s13 = sld [smem:[#allocation53_spill]]  ;;  %s753_s12 = int_to_ptr.vmem [resolvable:$true] %s752_s12 }
  0x96   : > { %s5523_s6 = scalar_lea.vmem %s753_s12, 256  ;;  %s5678_s21 = smov [#allocation17]  }
  0x97   : > { %p5524_p10 = scmp.ne.s32.totalorder %s753_s12, %s5523_s6  ;;  %s5528_s17 = sshll.u32 %s5678_s21, 4  ;;  %s5529_s17 = int_to_ptr.vmem [resolvable:$false] %s5528_s17 }
  0x98   : > { %s5530_s16 = scalar_lea.vmem %s5529_s17, 512  ;;  %p5531_p11 = scmp.lt.s32.totalorder %s753_s12, %s5529_s17 }
  0x99   : > { %p5526_p3 = pnand %p5524_p10, %p5894_p7  ;;  %p5532_p1 = scmp.lt.s32.totalorder %s5530_s16, %s5523_s6 }
  0x9b   : > { %s751_s22 = scalar_lea.hbm %s6873_s13, %s4619_s27  ;;  %p5527_p9 = pneg %p5526_p3 }
  0x9c   : > { %p5533_p0 = por %p5532_p1, %p5531_p11 }
  0x9e   : > { %p5534_p12 = pnand %p5533_p0, %p5527_p9 }
  0xa0   : > { %5537 = shalt.err (!%p5534_p12)
}
  0xa1   : > { %s5679_s9 = smov 64   ;;  %s5680_s23 = smov 4  }
  0xa2   : > { %s6874_s7 = scalar_lea.sflag [#allocation16], %s5867_s19  ;;  %798 = sbr.rel (%p5967_p4) target bundleno = 10321 (0x2851), region = 96 }
  0xa3   : > { %5135 = dma.hbm_to_vmem [thread:$0]  (!%p5883_p6), %s751_s22, 256, %s753_s12, %s6874_s7, %s5679_s9, %s5679_s9, %s5680_s23  }
  0xa7   : > { %5609 = dma.done.wait (%p174_p5), [#allocation7], 128  }
  0xa8   : > { %5611 = vsyncadd (%p174_p5), [#allocation7], 4294967168  ;;  %s804_s6 = sand.u32 1, %s5930_s8   ;;  %s6039_s14 = sand.u32 1, %s5646_s1  }
  0xa9   : > { %s805_s21 = scalar_lea.sflag [#allocation10], %s804_s6 }
  0xaa   : > { %5613 = dma.done.wait (%p5942_p8), %s805_s21, 32  }
  0xab   : > { %5615 = vsyncadd (%p5942_p8), %s805_s21, 4294967264  ;;  %s821_s15 = scalar_lea.sflag [#allocation13], %s804_s6 }
  0xac   : > { %5617 = dma.done.wait (%p5942_p8), %s821_s15, 32  }
  0xad   : > { %5619 = vsyncadd (%p5942_p8), %s821_s15, 4294967264  ;;  %s837_s25 = scalar_lea.sflag [#allocation16], %s804_s6 }
  0xae   : > { %5621 = dma.done.wait (%p5942_p8), %s837_s25, 272  }
  0xaf   : > { %5623 = vsyncadd (%p5942_p8), %s837_s25, 4294967024  ;;  %s6875_s5 = sld [smem:[#allocation30_spill]]  ;;  %s4515_s26 = sshll.u32 %s6039_s14, 4 }
  0xb0   : > { %s6876_s12 = sld [smem:[#allocation29_spill]]  ;;  %s6809_s18 = sand.u32 1, %s5634_s30  }
  0xb1   : > { %s4516_s22 = sshll.u32 %s6809_s18, 4  ;;  %s6877_s6 = sld [smem:[#allocation40_spill]] }
  0xb2   : > { %s6878_s18 = sld [smem:[#allocation41_spill]] }
  0xb3   : > { %s6880_s24 = sld [smem:[#allocation43_spill]] }
  0xb4   : > { %s6881_s11 = sld [smem:[#allocation45_spill]] }
  0xb5   : > { %s4517_s17 = sshll.u32 %s6875_s5, 1  ;;  %s6882_s7 = sld [smem:[#allocation47_spill]] }
  0xb6   : > { %p978_p6 = scmp.lt.s32.totalorder %s4517_s17, 3  ;;  %p989_p7 = scmp.lt.s32.totalorder %s6876_s12, 1 }
  0xb7   : > { %s6883_s15 = sld [smem:[#allocation49_spill]]  ;;  %p4535_p5 = scmp.ne.s32.totalorder %s6876_s12, 0 }
  0xb8   : > { %s6926_s17 = smov (!%p978_p6, %s4517_s17), 3  ;;  %s6884_s8 = sld [smem:[#allocation51_spill]] }
  0xb9   : > { %s6065_s16 = scalar_select %p989_p7, %s6876_s12, 1 }
  0xba   : > { %s4518_s28 = sshll.u32 %s6926_s17, 3  ;;  %s4520_s9 = sshll.u32 %s6926_s17, 2 }
  0xbb   : > { %s981_s21 = scalar_lea.vmem %s6877_s6, %s4518_s28  ;;  %s6073_s5 = scalar_lea.vmem %s6878_s18, %s4520_s9 }
  0xbc   : > { %s4620_s27 = sshll.u32 %s6065_s16, 4  ;;  %s4625_s13 = sshll.u32 %s6065_s16, 6 }
  0xbd   : > { %s993_s1 = scalar_lea.vmem %s6880_s24, %s4620_s27  ;;  %s6086_s0 = scalar_lea.vmem %s6881_s11, %s4620_s27 }
  0xbe   : > { %s6091_s6 = scalar_lea.vmem %s6882_s7, %s4620_s27  ;;  %s6096_s25 = scalar_lea.vmem %s6883_s15, %s4620_s27 }
  0xbf   : > { %s6101_s10 = scalar_lea.vmem %s6884_s8, %s4620_s27  ;;  %s6885_s11 = sld [smem:[#allocation55_spill]] }
  0xc0   : > { %s6886_s23 = sld [smem:[#allocation56_spill]]  ;;  %s4533_s3 = sshll.u32 %s6065_s16, 2 }
  0xc1   : > { %s6887_s9 = sld [smem:[#allocation57_spill]]  ;;  %s6124_s8 = scalar_lea.vmem [#allocation17], %s4515_s26 }
  0xc2   : > { %s6888_s27 = sld [smem:[#allocation58_spill]]  ;;  %s6126_s24 = scalar_lea.vmem [#allocation18], %s4516_s22 }
  0xc4   : > { %1038 = sbr.rel (%p4535_p5) target bundleno = 203 (0xcb), region = 128 }
  0xc5   : > { %s6107_s17 = scalar_lea.vmem %s6885_s11, %s4625_s13 }
  0xc6   : > { %s1024_s7 = scalar_lea.vmem %s6886_s23, %s6065_s16 }
  0xc7   : > { %s6117_s15 = scalar_lea.vmem %s6887_s9, %s4533_s3 }
  0xc8   : > { %s6122_s2 = scalar_lea.vmem %s6888_s27, %s4533_s3 }
  0xc9   : > { %v1039_v0 = vld [vmem:[%s981_s21] sm:$0xff]  ;;  %vm1041_vm0 = vcmask 261120   ;;  %v1040_v1 = vld [vmem:[%s981_s21 + $0x8] sm:$0xff] }
  0xca   : > { %1042 = vst.msk [vmem:[#allocation2] sm:$0xff] %vm1041_vm0, %v1039_v0  ;;  %1043 = vst.msk [vmem:[#allocation2 + $0x8] sm:$0xff] %vm1041_vm0, %v1040_v1 }
  0xcb PF: > { %v5250_v2 = vld [vmem:[%s993_s1 + $0x8] sm:$0xff]   ;;  %v5681_v3 = vmov 0.0   ;;  %v5251_v4 = vld [vmem:[%s993_s1] sm:$0xff]   ;;  %vm5682_vm1 = vmmov 0   ;;  %vm1073_vm2 = vcmask 261120   ;;  %s6889_s30 = scalar_lea.vmem [#allocation9], %s6039_s14 }
  0xcc   : > { %4747 = vmatprep.subr.bf16.mxu0 %v5681_v3  ;;  %4767 = vmatprep.subr.bf16.mxu1 %v5681_v3  ;;  %v4536_v8 = vld [vmem:[%s6889_s30] ss:$0 sm:$0xff]  ;;  %vm1118_vm3 = vcmask 785408   ;;  %s5683_s1 = smov 96   ;;  %s5684_s3 = smov 120   ;;  %vm1132_vm4 = vcmask 64512  }
  0xcd   : > { %4748 = vmatpush3.bf16.msra.mxu0 %v5250_v2  ;;  %4751 = vmatprep.mubr.msk.bf16.mxu0 %vm5682_vm1, %v5681_v3  ;;  %s5685_s4 = smov 88   ;;  %v6169_v24 = vld [vmem:[#allocation6] sm:$0xff]  ;;  %s5686_s29 = smov 56   ;;  %vm1196_vm5 = vcmask 1043456   ;;  %vm2628_vm6 = vcmask 48128   ;;  %vm2647_vm7 = vcmask 1042432  }
  0xce   : > { %4749 = vmatprep.subr.bf16.mxu0 %v5681_v3  ;;  %4769 = vmatprep.mubr.msk.bf16.mxu1 %vm5682_vm1, %v5681_v3  ;;  %s5687_s12 = smov 64   ;;  %s5688_s26 = smov 80   ;;  %v1121_v59 = vld [vmem:[%s6086_s0] sm:$0xf]  ;;  %v1122_v61 = vld [vmem:[%s6086_s0 + $0x4] sm:$0xf] }
  0xcf   : > { %s5689_s22 = smov 112   ;;  %v6197_v60 = vsel %vm1196_vm5, %v1121_v59, 0  ;;  %v6203_v62 = vsel %vm1196_vm5, %v1122_v61, 0  ;;  %s5690_s21 = smov 72  }
  0xd0   : > { %s5691_s13 = smov 104   ;;  %s5692_s20 = smov 48  }
  0xd1   : > { %v6133_v5 = vld [vmem:[#allocation2] sm:$0xff]  ;;  %v6135_v6 = vld [vmem:[#allocation2 + $0x8] sm:$0xff]  ;;  %4750 = vmatpush3.bf16.msra.mxu0 %v5251_v4  ;;  %s5693_s11 = smov 40   ;;  %s6894_s28 = sld [smem:[#allocation54_spill]] }
  0xd2   : > { %v1049_v7 = vpack.c.bf16 %v6135_v6, %v6133_v5  ;;  %4755 = vmatprep.subr.bf16.mxu0 %v5681_v3 }
  0xd4   : > { %4752 = vmatmul.mubr.msk.bf16.vlgmr.msra.gmra.mxu0 %vm1073_vm2, %v1049_v7 }
  0xd5   : > { %4757 = vmatprep.mubr.msk.bf16.mxu0 %vm5682_vm1, %v5681_v3 }
  0xd7   : > { %s6895_s23 = scalar_lea.vmem %s6894_s28, %s6065_s16  ;;  %s6897_s16 = sld [smem:[#allocation29_spill]] }
  0xdd   : > { %p4613_p8 = scmp.ne.s32.totalorder %s6897_s16, 1 }
 0x194   : > { %v1111_v9 = vpop.f32.mrf.mxu0 }
 0x195   : > { %v1112_v10 = vadd.f32 %v4536_v8, %v1111_v9 }
 0x196   : > { %v4753_v11 = vpop.f32.mrf.mxu0 }
 0x197   : > { %1119 = vst.msk [vmem:[#allocation3] sm:$0xff] %vm1118_vm3, %v1112_v10 }
 0x198   : > { %v1114_v12 = vpop.f32.mrf.mxu0 }
 0x199   : > { %v1115_v13 = vadd.f32 %v4536_v8, %v1114_v12 }
 0x19a   : > { %v4754_v14 = vpop.f32.mrf.mxu0 }
 0x19b   : > { %1120 = vst.msk [vmem:[#allocation3 + $0x8] sm:$0xff] %vm1118_vm3, %v1115_v13 }
 0x19e   : > { %v1125_v15 = vld [vmem:[#allocation3] sm:$0xff] }
 0x19f   : > { %v6148_v16 = vpack.c.bf16 %v1125_v15, %v1125_v15  ;;  %v1126_v17 = vmul.f32 0.35355338, %v1125_v15 }
 0x1a1   : > { %1130 = vrot.lane.b32.xlu0 %v6148_v16, %s5683_s1  ;;  %v6152_v18 = vpack.c.bf16 %v1126_v17, %v1126_v17 }
 0x1a2   : > { %v1762_v59 = vld [vmem:[#allocation3 + $0x8] sm:$0xff] }
 0x1a3   : > { %1242 = vrot.lane.b32.xlu1 %v6152_v18, %s5684_s3  ;;  %v6252_v61 = vpack.c.bf16 %v1762_v59, %v1762_v59 }
 0x1a5   : > { %1244 = vrot.lane.b32.xlu0 %v6148_v16, %s5685_s4 }
 0x213   : > { %v1131_v19 = vpop.permute.xlu0 %1130 }
 0x214   : > { %v1137_v20 = vsel %vm1132_vm4, %v1131_v19, 0 }
 0x215   : > { %4756 = vmatpush3.bf16.xpose.msra.mxu0 %v1137_v20  ;;  %v1243_v23 = vpop.permute.xlu1 %1242 }
 0x216   : > { %4761 = vmatprep.subr.bf16.mxu0 %v5681_v3 }
 0x217   : > { %v1245_v21 = vpop.permute.xlu0 %1244 }
 0x218   : > { %v1250_v22 = vsel %vm1132_vm4, %v1245_v21, 0 }
 0x219   : > { %4768 = vmatpush3.bf16.xpose.msra.mxu1 %v1250_v22 }
 0x21a   : > { %4779 = vmatprep.subr.bf16.mxu1 %v5681_v3 }
 0x21c   : > { %4758 = vmatmul.mubr.msk.bf16.vlgmr.msra.gmra.mxu0 %vm1132_vm4, %v6152_v18 }
 0x21d   : > { %4763 = vmatprep.mubr.msk.bf16.mxu0 %vm5682_vm1, %v5681_v3 }
 0x220   : > { %4770 = vmatmul.mubr.msk.bf16.vlgmr.msra.gmra.mxu1 %vm1132_vm4, %v1243_v23 }
 0x221   : > { %4781 = vmatprep.mubr.msk.bf16.mxu1 %vm5682_vm1, %v5681_v3  ;;  %4780 = vmatpush3.bf16.msra.mxu1 %v6203_v62 }
 0x222   : > { %4791 = vmatprep.subr.bf16.mxu1 %v5681_v3 }
 0x2dc   : > { %v1173_v25 = vpop.f32.mrf.mxu0 }
 0x2dd   : > { %v1174_v26 = vadd.f32 %v1173_v25, %v6169_v24 }
 0x2de   : > { %v4759_v27 = vpop.f32.mrf.mxu0 }
 0x2df   : > { %v1179_v28 = vsel %vm1132_vm4, %v1174_v26, -inf }
 0x2e0   : > { %v1176_v29 = vpop.f32.mrf.mxu0  ;;  %v1286_v30 = vpop.f32.mrf.mxu1  ;;  %1180 = vmax.xlane.f32.xlu1 %v1179_v28 }
 0x2e1   : > { %v1287_v31 = vadd.f32 %v1286_v30, %v6169_v24 }
 0x2e2   : > { %v4760_v32 = vpop.f32.mrf.mxu0  ;;  %v4771_v33 = vpop.f32.mrf.mxu1 }
 0x2e3   : > { %v1292_v34 = vsel %vm1132_vm4, %v1287_v31, -inf }
 0x2e4   : > { %v1289_v35 = vpop.f32.mrf.mxu1  ;;  %1293 = vmax.xlane.f32.xlu0 %v1292_v34 }
 0x2e6   : > { %v4772_v36 = vpop.f32.mrf.mxu1 }
 0x369   : > { %v1181_v37 = vpop.xlane.xlu1 %1180 }
 0x36a   : > { %v1182_v38 = vsub.f32 %v1174_v26, %v1181_v37 }
 0x36c   : > { %v1183_v39 = vmul.f32 1.442695, %v1182_v38 }
 0x36d   : > { %v1294_v40 = vpop.xlane.xlu0 %1293 }
 0x36e   : > { %5266 = vpow2.f32 %v1183_v39  ;;  %v1295_v41 = vsub.f32 %v1287_v31, %v1294_v40 }
 0x370   : > { %v1296_v42 = vmul.f32 1.442695, %v1295_v41 }
 0x372   : > { %5268 = vpow2.f32 %v1296_v42 }
 0x37b   : > { %v5267_v43 = vpop.eup %5266 }
 0x37c   : > { %v1185_v44 = vsel %vm1132_vm4, %v5267_v43, 0.0 }
 0x37d   : > { %1186 = vadd.xlane.f32.xlu0 %v1185_v44 }
 0x37f   : > { %v5269_v45 = vpop.eup %5268 }
 0x380   : > { %v1298_v46 = vsel %vm1132_vm4, %v5269_v45, 0.0 }
 0x381   : > { %1299 = vadd.xlane.f32.xlu1 %v1298_v46  ;;  %v1123_v46 = vld [vmem:[%s6086_s0 + $0x8] sm:$0xf] }
 0x392   : > { %1304 = vrot.lane.b32.xlu1 %v6148_v16, %s5686_s29 }
 0x393   : > { %1191 = vrot.lane.b32.xlu0 %v6148_v16, %s5687_s12 }
 0x396   : > { %1447 = vrot.lane.b32.xlu1 %v6148_v16, %s5688_s26 }
 0x397   : > { %1445 = vrot.lane.b32.xlu0 %v6152_v18, %s5689_s22 }
 0x406   : > { %v1187_v47 = vpop.xlane.xlu0 %1186 }
 0x407   : > { %5270 = vrcp.f32 %v1187_v47  ;;  %v6241_v47 = vsel %vm1196_vm5, %v1123_v46, 0 }
 0x40a   : > { %v1192_v48 = vpop.permute.xlu0 %1191  ;;  %v1300_v49 = vpop.xlane.xlu1 %1299 }
 0x40b   : > { %v1198_v50 = vsel %vm1196_vm5, %v1192_v48, 0  ;;  %5272 = vrcp.f32 %v1300_v49 }
 0x40c   : > { %4762 = vmatpush3.bf16.msra.mxu0 %v1198_v50 }
 0x40d   : > { %4773 = vmatprep.subr.bf16.mxu0 %v5681_v3 }
 0x40e   : > { %v1305_v53 = vpop.permute.xlu1 %1304  ;;  %v1446_v14 = vpop.permute.xlu0 %1445 }
 0x40f   : > { %v1310_v56 = vsel %vm1196_vm5, %v1305_v53, 0 }
 0x412   : > { %v1448_v7 = vpop.permute.xlu1 %1447 }
 0x413   : > { %v1453_v11 = vsel %vm1132_vm4, %v1448_v7, 0 }
 0x414   : > { %v5271_v51 = vpop.eup %5270 }
 0x415   : > { %v1189_v52 = vmul.f32 %v5271_v51, %v5267_v43 }
 0x417   : > { %v1190_v54 = vpack.c.bf16 %v1189_v52, %v1189_v52 }
 0x418   : > { %v5273_v55 = vpop.eup %5272 }
 0x419   : > { %4764 = vmatmul.mubr.msk.bf16.vlgmr.msra.gmra.mxu0 %vm1132_vm4, %v1190_v54  ;;  %v1302_v57 = vmul.f32 %v5273_v55, %v5269_v45 }
 0x41a   : > { %4774 = vmatpush3.bf16.msra.mxu0 %v1310_v56  ;;  %4775 = vmatprep.mubr.msk.bf16.mxu0 %vm5682_vm1, %v5681_v3 }
 0x41b   : > { %4785 = vmatprep.subr.bf16.mxu0 %v5681_v3  ;;  %v1303_v58 = vpack.c.bf16 %v1302_v57, %v1302_v57 }
 0x421   : > { %4776 = vmatmul.mubr.msk.bf16.vlgmr.msra.gmra.mxu0 %vm1132_vm4, %v1303_v58 }
 0x422   : > { %4787 = vmatprep.mubr.msk.bf16.mxu0 %vm5682_vm1, %v5681_v3  ;;  %4786 = vmatpush3.bf16.msra.mxu0 %v6197_v60 }
 0x423   : > { %4797 = vmatprep.subr.bf16.mxu0 %v5681_v3 }
 0x4d9   : > { %v1234_v63 = vpop.f32.mrf.mxu0 }
 0x4da   : > { %v1240_v0 = vpack.c.bf16 %v1234_v63, %v1234_v63 }
 0x4db   : > { %v4765_v1 = vpop.f32.mrf.mxu0 }
 0x4dc   : > { %4788 = vmatmul.mubr.msk.bf16.vlgmr.msra.gmra.mxu0 %vm1132_vm4, %v1240_v0 }
 0x4dd   : > { %v1237_v2 = vpop.f32.mrf.mxu0  ;;  %4799 = vmatprep.mubr.msk.bf16.mxu0 %vm5682_vm1, %v5681_v3 }
 0x4df   : > { %v4766_v4 = vpop.f32.mrf.mxu0 }
 0x4e1   : > { %v1346_v8 = vpop.f32.mrf.mxu0 }
 0x4e2   : > { %v1352_v9 = vpack.c.bf16 %v1346_v8, %v1346_v8 }
 0x4e3   : > { %v4777_v10 = vpop.f32.mrf.mxu0 }
 0x4e4   : > { %4782 = vmatmul.mubr.msk.bf16.vlgmr.msra.gmra.mxu1 %vm1132_vm4, %v1352_v9 }
 0x4e5   : > { %4792 = vmatpush3.bf16.xpose.msra.mxu1 %v1453_v11  ;;  %v1349_v12 = vpop.f32.mrf.mxu0  ;;  %4793 = vmatprep.mubr.msk.bf16.mxu1 %vm5682_vm1, %v5681_v3 }
 0x4e6   : > { %4803 = vmatprep.subr.bf16.mxu1 %v5681_v3 }
 0x4e7   : > { %v4778_v13 = vpop.f32.mrf.mxu0 }
 0x4ec   : > { %4794 = vmatmul.mubr.msk.bf16.vlgmr.msra.gmra.mxu1 %vm1132_vm4, %v1446_v14 }
 0x4ed   : > { %4805 = vmatprep.mubr.msk.bf16.mxu1 %vm5682_vm1, %v5681_v3  ;;  %4804 = vmatpush3.bf16.msra.mxu1 %v6241_v47 }
 0x4ee   : > { %4815 = vmatprep.subr.bf16.mxu1 %v5681_v3 }
 0x59c   : > { %v1439_v15 = vpop.f32.mrf.mxu0 }
 0x59e   : > { %v4789_v17 = vpop.f32.mrf.mxu0 }
 0x5a0   : > { %v1442_v19 = vpop.f32.mrf.mxu0 }
 0x5a2   : > { %v4790_v20 = vpop.f32.mrf.mxu0 }
 0x5a4   : > { %v1393_v21 = vpop.f32.mrf.mxu1 }
 0x5a5   : > { %v6218_v22 = vadd.f32 %v1439_v15, %v1393_v21 }
 0x5a6   : > { %v4783_v23 = vpop.f32.mrf.mxu1 }
 0x5a8   : > { %v1396_v25 = vpop.f32.mrf.mxu1 }
 0x5aa   : > { %v4784_v26 = vpop.f32.mrf.mxu1 }
 0x5ac   : > { %v1489_v27 = vpop.f32.mrf.mxu1 }
 0x5ad   : > { %v1490_v28 = vadd.f32 %v1489_v27, %v6169_v24  ;;  %v1124_v27 = vld [vmem:[%s6086_s0 + $0xc] sm:$0xf]  ;;  %s6890_s0 = scalar_lea.vmem [#allocation11], %s6039_s14 }
 0x5ae   : > { %v4795_v29 = vpop.f32.mrf.mxu1 }
 0x5af   : > { %v1495_v30 = vsel %vm1132_vm4, %v1490_v28, -inf }
 0x5b0   : > { %1496 = vmax.xlane.f32.xlu1 %v1495_v30  ;;  %v1492_v31 = vpop.f32.mrf.mxu1 }
 0x5b2   : > { %v4796_v32 = vpop.f32.mrf.mxu1 }
 0x5c1   : > { %1605 = vrot.lane.b32.xlu1 %v6148_v16, %s5690_s21 }
 0x5c5   : > { %1603 = vrot.lane.b32.xlu1 %v6152_v18, %s5691_s13 }
 0x639   : > { %v1497_v33 = vpop.xlane.xlu1 %1496 }
 0x63a   : > { %v1498_v34 = vsub.f32 %v1490_v28, %v1497_v33  ;;  %v6286_v28 = vsel %vm1196_vm5, %v1124_v27, 0 }
 0x63c   : > { %v1499_v35 = vmul.f32 1.442695, %v1498_v34 }
 0x63d   : > { %v1606_v42 = vpop.permute.xlu1 %1605 }
 0x63e   : > { %5274 = vpow2.f32 %v1499_v35  ;;  %v1611_v44 = vsel %vm1132_vm4, %v1606_v42, 0 }
 0x641   : > { %v1604_v45 = vpop.permute.xlu1 %1603 }
 0x64b   : > { %v5275_v36 = vpop.eup %5274 }
 0x64c   : > { %v1501_v37 = vsel %vm1132_vm4, %v5275_v36, 0.0 }
 0x64d   : > { %1502 = vadd.xlane.f32.xlu0 %v1501_v37 }
 0x663   : > { %1507 = vrot.lane.b32.xlu0 %v6148_v16, %s5692_s20 }
 0x6d6   : > { %v1503_v38 = vpop.xlane.xlu0 %1502 }
 0x6d7   : > { %5276 = vrcp.f32 %v1503_v38 }
 0x6da   : > { %v1508_v39 = vpop.permute.xlu0 %1507 }
 0x6db   : > { %v1513_v40 = vsel %vm1196_vm5, %v1508_v39, 0 }
 0x6dc   : > { %4798 = vmatpush3.bf16.msra.mxu0 %v1513_v40 }
 0x6dd   : > { %4809 = vmatprep.subr.bf16.mxu0 %v5681_v3 }
 0x6e4   : > { %v5277_v18 = vpop.eup %5276 }
 0x6e5   : > { %v1505_v41 = vmul.f32 %v5277_v18, %v5275_v36 }
 0x6e7   : > { %v1506_v43 = vpack.c.bf16 %v1505_v41, %v1505_v41 }
 0x6e9   : > { %4800 = vmatmul.mubr.msk.bf16.vlgmr.msra.gmra.mxu0 %vm1132_vm4, %v1506_v43 }
 0x6ea   : > { %4810 = vmatpush3.bf16.xpose.msra.mxu0 %v1611_v44  ;;  %4811 = vmatprep.mubr.msk.bf16.mxu0 %vm5682_vm1, %v5681_v3 }
 0x6eb   : > { %4821 = vmatprep.subr.bf16.mxu0 %v5681_v3 }
 0x6f1   : > { %4812 = vmatmul.mubr.msk.bf16.vlgmr.msra.gmra.mxu0 %vm1132_vm4, %v1604_v45 }
 0x6f2   : > { %4823 = vmatprep.mubr.msk.bf16.mxu0 %vm5682_vm1, %v5681_v3  ;;  %4822 = vmatpush3.bf16.msra.mxu0 %v6286_v28 }
 0x6f3   : > { %4833 = vmatprep.subr.bf16.mxu0 %v5681_v3 }
 0x7a9   : > { %v1549_v48 = vpop.f32.mrf.mxu0 }
 0x7aa   : > { %v1555_v49 = vpack.c.bf16 %v1549_v48, %v1549_v48 }
 0x7ab   : > { %v4801_v50 = vpop.f32.mrf.mxu0 }
 0x7ac   : > { %4806 = vmatmul.mubr.msk.bf16.vlgmr.msra.gmra.mxu1 %vm1132_vm4, %v1555_v49 }
 0x7ad   : > { %v1552_v51 = vpop.f32.mrf.mxu0  ;;  %4817 = vmatprep.mubr.msk.bf16.mxu1 %vm5682_vm1, %v5681_v3 }
 0x7af   : > { %v4802_v52 = vpop.f32.mrf.mxu0 }
 0x7b1   : > { %v1647_v53 = vpop.f32.mrf.mxu0 }
 0x7b2   : > { %v1648_v54 = vadd.f32 %v1647_v53, %v6169_v24 }
 0x7b3   : > { %v4813_v55 = vpop.f32.mrf.mxu0 }
 0x7b4   : > { %v1653_v56 = vsel %vm1132_vm4, %v1648_v54, -inf }
 0x7b5   : > { %1654 = vmax.xlane.f32.xlu0 %v1653_v56  ;;  %v1650_v57 = vpop.f32.mrf.mxu0 }
 0x7b7   : > { %v4814_v58 = vpop.f32.mrf.mxu0 }
 0x7cb   : > { %1665 = vrot.lane.b32.xlu0 %v6148_v16, %s5693_s11  ;;  %v1763_v16 = vmul.f32 0.35355338, %v1762_v59 }
 0x7cd   : > { %v6261_v9 = vpack.c.bf16 %v1763_v16, %v1763_v16 }
 0x7cf   : > { %1879 = vrot.lane.b32.xlu0 %v6252_v61, %s5685_s4 }
 0x83e   : > { %v1655_v63 = vpop.xlane.xlu0 %1654 }
 0x83f   : > { %v1656_v0 = vsub.f32 %v1648_v54, %v1655_v63 }
 0x841   : > { %v1657_v1 = vmul.f32 1.442695, %v1656_v0 }
 0x842   : > { %v1666_v2 = vpop.permute.xlu0 %1665 }
 0x843   : > { %5278 = vpow2.f32 %v1657_v1  ;;  %v1671_v4 = vsel %vm1196_vm5, %v1666_v2, 0 }
 0x844   : > { %4816 = vmatpush3.bf16.msra.mxu1 %v1671_v4 }
 0x845   : > { %4827 = vmatprep.subr.bf16.mxu1 %v5681_v3 }
 0x850   : > { %v5279_v7 = vpop.eup %5278 }
 0x851   : > { %v1659_v8 = vsel %vm1132_vm4, %v5279_v7, 0.0 }
 0x852   : > { %1660 = vadd.xlane.f32.xlu1 %v1659_v8 }
 0x863   : > { %1767 = vrot.lane.b32.xlu1 %v6252_v61, %s5683_s1 }
 0x867   : > { %1877 = vrot.lane.b32.xlu1 %v6261_v9, %s5684_s3 }
 0x86c   : > { %v1596_v10 = vpop.f32.mrf.mxu1 }
 0x86d   : > { %v6266_v11 = vadd.f32 %v1596_v10, %v6218_v22  ;;  %v1880_v22 = vpop.permute.xlu0 %1879 }
 0x86e   : > { %v4807_v12 = vpop.f32.mrf.mxu1  ;;  %v1885_v25 = vsel %vm1132_vm4, %v1880_v22, 0 }
 0x870   : > { %v1599_v13 = vpop.f32.mrf.mxu1 }
 0x872   : > { %v4808_v14 = vpop.f32.mrf.mxu1 }
 0x8db   : > { %v1661_v15 = vpop.xlane.xlu1 %1660 }
 0x8dc   : > { %5280 = vrcp.f32 %v1661_v15 }
 0x8df   : > { %v1768_v20 = vpop.permute.xlu1 %1767 }
 0x8e0   : > { %v1773_v23 = vsel %vm1132_vm4, %v1768_v20, 0 }
 0x8e3   : > { %v1878_v26 = vpop.permute.xlu1 %1877 }
 0x8e9   : > { %v5281_v17 = vpop.eup %5280 }
 0x8ea   : > { %v1663_v19 = vmul.f32 %v5281_v17, %v5279_v7 }
 0x8ec   : > { %v1664_v21 = vpack.c.bf16 %v1663_v19, %v1663_v19 }
 0x8ee   : > { %4818 = vmatmul.mubr.msk.bf16.vlgmr.msra.gmra.mxu1 %vm1132_vm4, %v1664_v21 }
 0x8ef   : > { %4828 = vmatpush3.bf16.xpose.msra.mxu1 %v1773_v23  ;;  %4829 = vmatprep.mubr.msk.bf16.mxu1 %vm5682_vm1, %v5681_v3 }
 0x8f0   : > { %4839 = vmatprep.subr.bf16.mxu1 %v5681_v3 }
 0x8f6   : > { %4830 = vmatmul.mubr.msk.bf16.vlgmr.msra.gmra.mxu1 %vm1132_vm4, %v6261_v9 }
 0x8f7   : > { %4840 = vmatpush3.bf16.xpose.msra.mxu1 %v1885_v25  ;;  %4841 = vmatprep.mubr.msk.bf16.mxu1 %vm5682_vm1, %v5681_v3 }
 0x8f8   : > { %4851 = vmatprep.subr.bf16.mxu1 %v5681_v3 }
 0x8fe   : > { %4842 = vmatmul.mubr.msk.bf16.vlgmr.msra.gmra.mxu1 %vm1132_vm4, %v1878_v26 }
 0x8ff   : > { %4852 = vmatpush3.bf16.msra.mxu1 %v6203_v62  ;;  %4853 = vmatprep.mubr.msk.bf16.mxu1 %vm5682_vm1, %v5681_v3 }
 0x900   : > { %4863 = vmatprep.subr.bf16.mxu1 %v5681_v3 }
 0x9ae   : > { %v1707_v29 = vpop.f32.mrf.mxu1 }
 0x9af   : > { %v1713_v30 = vpack.c.bf16 %v1707_v29, %v1707_v29 }
 0x9b0   : > { %v4819_v31 = vpop.f32.mrf.mxu1 }
 0x9b1   : > { %4824 = vmatmul.mubr.msk.bf16.vlgmr.msra.gmra.mxu0 %vm1132_vm4, %v1713_v30 }
 0x9b2   : > { %v1710_v32 = vpop.f32.mrf.mxu1  ;;  %4835 = vmatprep.mubr.msk.bf16.mxu0 %vm5682_vm1, %v5681_v3 }
 0x9b4   : > { %v4820_v62 = vpop.f32.mrf.mxu1 }
 0x9b6   : > { %v1809_v33 = vpop.f32.mrf.mxu1 }
 0x9b7   : > { %v1810_v34 = vadd.f32 %v1809_v33, %v6169_v24 }
 0x9b8   : > { %v4831_v35 = vpop.f32.mrf.mxu1 }
 0x9b9   : > { %v1815_v36 = vsel %vm1132_vm4, %v1810_v34, -inf }
 0x9ba   : > { %1816 = vmax.xlane.f32.xlu0 %v1815_v36  ;;  %v1812_v37 = vpop.f32.mrf.mxu1 }
 0x9bc   : > { %v4832_v38 = vpop.f32.mrf.mxu1 }
 0x9be   : > { %v1921_v39 = vpop.f32.mrf.mxu1 }
 0x9bf   : > { %v1922_v40 = vadd.f32 %v1921_v39, %v6169_v24 }
 0x9c0   : > { %v4843_v18 = vpop.f32.mrf.mxu1 }
 0x9c1   : > { %v1927_v41 = vsel %vm1132_vm4, %v1922_v40, -inf }
 0x9c2   : > { %1928 = vmax.xlane.f32.xlu1 %v1927_v41  ;;  %v1924_v42 = vpop.f32.mrf.mxu1 }
 0x9c4   : > { %v4844_v43 = vpop.f32.mrf.mxu1 }
 0x9d3   : > { %1827 = vrot.lane.b32.xlu1 %v6252_v61, %s5687_s12 }
 0x9d7   : > { %2076 = vrot.lane.b32.xlu1 %v6252_v61, %s5688_s26 }
 0x9db   : > { %2074 = vrot.lane.b32.xlu1 %v6261_v9, %s5689_s22 }
 0xa43   : > { %v1817_v44 = vpop.xlane.xlu0 %1816 }
 0xa44   : > { %v1818_v45 = vsub.f32 %v1810_v34, %v1817_v44 }
 0xa46   : > { %v1819_v46 = vmul.f32 1.442695, %v1818_v45 }
 0xa48   : > { %5282 = vpow2.f32 %v1819_v46 }
 0xa4b   : > { %v1929_v48 = vpop.xlane.xlu1 %1928 }
 0xa4c   : > { %v1930_v49 = vsub.f32 %v1922_v40, %v1929_v48 }
 0xa4e   : > { %v1931_v50 = vmul.f32 1.442695, %v1930_v49 }
 0xa4f   : > { %v1828_v51 = vpop.permute.xlu1 %1827 }
 0xa50   : > { %5284 = vpow2.f32 %v1931_v50  ;;  %v1833_v52 = vsel %vm1196_vm5, %v1828_v51, 0 }
 0xa51   : > { %4834 = vmatpush3.bf16.msra.mxu0 %v1833_v52 }
 0xa52   : > { %4845 = vmatprep.subr.bf16.mxu0 %v5681_v3 }
 0xa53   : > { %v2077_v21 = vpop.permute.xlu1 %2076 }
 0xa55   : > { %v5283_v53 = vpop.eup %5282 }
 0xa56   : > { %v1821_v54 = vsel %vm1132_vm4, %v5283_v53, 0.0 }
 0xa57   : > { %1822 = vadd.xlane.f32.xlu0 %v1821_v54  ;;  %v2075_v29 = vpop.permute.xlu1 %2074 }
 0xa5d   : > { %v5285_v55 = vpop.eup %5284 }
 0xa5e   : > { %v1933_v56 = vsel %vm1132_vm4, %v5285_v55, 0.0 }
 0xa5f   : > { %1934 = vadd.xlane.f32.xlu0 %v1933_v56 }
 0xa71   : > { %v1754_v57 = vpop.f32.mrf.mxu0 }
 0xa72   : > { %v1760_v58 = vadd.f32 %v1754_v57, %v6266_v11 }
 0xa73   : > { %v4825_v59 = vpop.f32.mrf.mxu0 }
 0xa74   : > { %1761 = vst.msk [vmem:[#allocation5] sm:$0xff] %vm1073_vm2, %v1760_v58 }
 0xa75   : > { %v1757_v63 = vpop.f32.mrf.mxu0  ;;  %1939 = vrot.lane.b32.xlu0 %v6252_v61, %s5686_s29 }
 0xa77   : > { %v4826_v0 = vpop.f32.mrf.mxu0 }
 0xa7b   : > { %v2385_v63 = vld [vmem:[#allocation5] sm:$0xff] }
 0xae0   : > { %v1823_v1 = vpop.xlane.xlu0 %1822 }
 0xae1   : > { %5286 = vrcp.f32 %v1823_v1  ;;  %v2387_v1 = vadd.f32 %v2385_v63, %v6133_v5  ;;  %v2425_v63 = vlaneseq }
 0xae8   : > { %v1935_v2 = vpop.xlane.xlu0 %1934 }
 0xae9   : > { %5288 = vrcp.f32 %v1935_v2 }
 0xaec   : > { %v1940_v8 = vpop.permute.xlu0 %1939 }
 0xaed   : > { %v1945_v10 = vsel %vm1196_vm5, %v1940_v8, 0 }
 0xaee   : > { %v5287_v4 = vpop.eup %5286 }
 0xaef   : > { %v1825_v7 = vmul.f32 %v5287_v4, %v5283_v53 }
 0xaf1   : > { %v1826_v16 = vpack.c.bf16 %v1825_v7, %v1825_v7 }
 0xaf3   : > { %4836 = vmatmul.mubr.msk.bf16.vlgmr.msra.gmra.mxu0 %vm1132_vm4, %v1826_v16 }
 0xaf4   : > { %4846 = vmatpush3.bf16.msra.mxu0 %v1945_v10  ;;  %4847 = vmatprep.mubr.msk.bf16.mxu0 %vm5682_vm1, %v5681_v3 }
 0xaf5   : > { %4857 = vmatprep.subr.bf16.mxu0 %v5681_v3 }
 0xaf6   : > { %v5289_v11 = vpop.eup %5288 }
 0xaf7   : > { %v1937_v12 = vmul.f32 %v5289_v11, %v5285_v55 }
 0xaf9   : > { %v1938_v13 = vpack.c.bf16 %v1937_v12, %v1937_v12 }
 0xafb   : > { %4848 = vmatmul.mubr.msk.bf16.vlgmr.msra.gmra.mxu0 %vm1132_vm4, %v1938_v13 }
 0xafc   : > { %4858 = vmatpush3.bf16.msra.mxu0 %v6197_v60  ;;  %4859 = vmatprep.mubr.msk.bf16.mxu0 %vm5682_vm1, %v5681_v3  ;;  %v2082_v60 = vsel %vm1132_vm4, %v2077_v21, 0 }
 0xafd   : > { %4869 = vmatprep.subr.bf16.mxu0 %v5681_v3 }
 0xbb3   : > { %v1869_v14 = vpop.f32.mrf.mxu0 }
 0xbb4   : > { %v1875_v15 = vpack.c.bf16 %v1869_v14, %v1869_v14 }
 0xbb5   : > { %v4837_v17 = vpop.f32.mrf.mxu0 }
 0xbb6   : > { %4860 = vmatmul.mubr.msk.bf16.vlgmr.msra.gmra.mxu0 %vm1132_vm4, %v1875_v15 }
 0xbb7   : > { %v1872_v19 = vpop.f32.mrf.mxu0  ;;  %4871 = vmatprep.mubr.msk.bf16.mxu0 %vm5682_vm1, %v5681_v3 }
 0xbb9   : > { %v4838_v20 = vpop.f32.mrf.mxu0 }
 0xbbb   : > { %v1981_v23 = vpop.f32.mrf.mxu0 }
 0xbbc   : > { %v1987_v22 = vpack.c.bf16 %v1981_v23, %v1981_v23 }
 0xbbd   : > { %v4849_v25 = vpop.f32.mrf.mxu0 }
 0xbbe   : > { %4854 = vmatmul.mubr.msk.bf16.vlgmr.msra.gmra.mxu1 %vm1132_vm4, %v1987_v22 }
 0xbbf   : > { %4864 = vmatpush3.bf16.xpose.msra.mxu1 %v2082_v60  ;;  %v1984_v26 = vpop.f32.mrf.mxu0  ;;  %4865 = vmatprep.mubr.msk.bf16.mxu1 %vm5682_vm1, %v5681_v3 }
 0xbc0   : > { %4875 = vmatprep.subr.bf16.mxu1 %v5681_v3 }
 0xbc1   : > { %v4850_v27 = vpop.f32.mrf.mxu0 }
 0xbc6   : > { %4866 = vmatmul.mubr.msk.bf16.vlgmr.msra.gmra.mxu1 %vm1132_vm4, %v2075_v29 }
 0xbc7   : > { %4876 = vmatpush3.bf16.msra.mxu1 %v6241_v47  ;;  %4877 = vmatprep.mubr.msk.bf16.mxu1 %vm5682_vm1, %v5681_v3 }
 0xbc8   : > { %4887 = vmatprep.subr.bf16.mxu1 %v5681_v3 }
 0xc76   : > { %v2068_v30 = vpop.f32.mrf.mxu0 }
 0xc78   : > { %v4861_v31 = vpop.f32.mrf.mxu0 }
 0xc7a   : > { %v2071_v32 = vpop.f32.mrf.mxu0 }
 0xc7c   : > { %v4862_v62 = vpop.f32.mrf.mxu0 }
 0xc7e   : > { %v2025_v33 = vpop.f32.mrf.mxu1 }
 0xc7f   : > { %v6334_v34 = vadd.f32 %v2068_v30, %v2025_v33 }
 0xc80   : > { %v4855_v35 = vpop.f32.mrf.mxu1 }
 0xc82   : > { %v2028_v36 = vpop.f32.mrf.mxu1 }
 0xc84   : > { %v4856_v37 = vpop.f32.mrf.mxu1 }
 0xc86   : > { %v2118_v38 = vpop.f32.mrf.mxu1 }
 0xc87   : > { %v2119_v39 = vadd.f32 %v2118_v38, %v6169_v24 }
 0xc88   : > { %v4867_v40 = vpop.f32.mrf.mxu1 }
 0xc89   : > { %v2124_v47 = vsel %vm1132_vm4, %v2119_v39, -inf }
 0xc8a   : > { %2125 = vmax.xlane.f32.xlu0 %v2124_v47  ;;  %v2121_v18 = vpop.f32.mrf.mxu1 }
 0xc8c   : > { %v4868_v41 = vpop.f32.mrf.mxu1 }
 0xca0   : > { %2136 = vrot.lane.b32.xlu0 %v6252_v61, %s5692_s20 }
 0xca4   : > { %2229 = vrot.lane.b32.xlu0 %v6261_v9, %s5691_s13 }
 0xd13   : > { %v2126_v42 = vpop.xlane.xlu0 %2125 }
 0xd14   : > { %v2127_v43 = vsub.f32 %v2119_v39, %v2126_v42 }
 0xd16   : > { %v2128_v44 = vmul.f32 1.442695, %v2127_v43 }
 0xd17   : > { %v2137_v45 = vpop.permute.xlu0 %2136 }
 0xd18   : > { %5290 = vpow2.f32 %v2128_v44  ;;  %v2142_v46 = vsel %vm1196_vm5, %v2137_v45, 0 }
 0xd19   : > { %4870 = vmatpush3.bf16.msra.mxu0 %v2142_v46 }
 0xd1a   : > { %4881 = vmatprep.subr.bf16.mxu0 %v5681_v3 }
 0xd1b   : > { %v2230_v55 = vpop.permute.xlu0 %2229 }
 0xd25   : > { %v5291_v48 = vpop.eup %5290 }
 0xd26   : > { %v2130_v49 = vsel %vm1132_vm4, %v5291_v48, 0.0 }
 0xd27   : > { %2131 = vadd.xlane.f32.xlu1 %v2130_v49 }
 0xd38   : > { %2231 = vrot.lane.b32.xlu1 %v6252_v61, %s5690_s21 }
 0xdb0   : > { %v2132_v50 = vpop.xlane.xlu1 %2131 }
 0xdb1   : > { %5292 = vrcp.f32 %v2132_v50 }
 0xdb4   : > { %v2232_v52 = vpop.permute.xlu1 %2231 }
 0xdb5   : > { %v2237_v54 = vsel %vm1132_vm4, %v2232_v52, 0  ;;  %v2516_v52 = vld [vmem:[%s6073_s5] sm:$0x7] }
 0xdbe   : > { %v5293_v9 = vpop.eup %5292 }
 0xdbf   : > { %v2134_v51 = vmul.f32 %v5293_v9, %v5291_v48  ;;  %v5253_v9 = vld [vmem:[%s6091_s6 + $0x8] sm:$0xff]  }
 0xdc1   : > { %v2135_v53 = vpack.c.bf16 %v2134_v51, %v2134_v51  ;;  %v6390_v51 = vld [vmem:[%s6096_s25] sm:$0xff]  }
 0xdc3   : > { %4872 = vmatmul.mubr.msk.bf16.vlgmr.msra.gmra.mxu0 %vm1132_vm4, %v2135_v53  ;;  %v5255_v53 = vld [vmem:[%s6091_s6] sm:$0xff]   ;;  %s6891_s6 = scalar_lea.vmem [#allocation14], %s6039_s14 }
 0xdc4   : > { %4882 = vmatpush3.bf16.xpose.msra.mxu0 %v2237_v54  ;;  %4883 = vmatprep.mubr.msk.bf16.mxu0 %vm5682_vm1, %v5681_v3 }
 0xdc5   : > { %4893 = vmatprep.subr.bf16.mxu0 %v5681_v3 }
 0xdcb   : > { %4884 = vmatmul.mubr.msk.bf16.vlgmr.msra.gmra.mxu0 %vm1132_vm4, %v2230_v55 }
 0xdcc   : > { %4894 = vmatpush3.bf16.msra.mxu0 %v6286_v28  ;;  %4895 = vmatprep.mubr.msk.bf16.mxu0 %vm5682_vm1, %v5681_v3  ;;  %v4564_v28 = vld [vmem:[%s6890_s0] ss:$0 sm:$0xff] }
 0xdcd   : > { %4907 = vmatprep.subr.bf16.mxu0 %v5681_v3  ;;  %v2396_v16 = vadd.f32 %v4564_v28, %v2387_v1 }
 0xdcf   : > { %v2398_v12 = vsel %vm1073_vm2, %v2396_v16, 0.0 }
 0xe83   : > { %v2178_v56 = vpop.f32.mrf.mxu0 }
 0xe84   : > { %v2184_v57 = vpack.c.bf16 %v2178_v56, %v2178_v56 }
 0xe85   : > { %v4873_v58 = vpop.f32.mrf.mxu0 }
 0xe86   : > { %4878 = vmatmul.mubr.msk.bf16.vlgmr.msra.gmra.mxu1 %vm1132_vm4, %v2184_v57 }
 0xe87   : > { %v2181_v59 = vpop.f32.mrf.mxu0  ;;  %4889 = vmatprep.mubr.msk.bf16.mxu1 %vm5682_vm1, %v5681_v3 }
 0xe89   : > { %v4874_v0 = vpop.f32.mrf.mxu0 }
 0xe8a   : > { %v6401_v0 = vshrl.u32 %v2425_v63, 7 }
 0xe8b   : > { %v2273_v2 = vpop.f32.mrf.mxu0 }
 0xe8c   : > { %v2274_v4 = vadd.f32 %v2273_v2, %v6169_v24  ;;  %v2427_v1 = vsub.s32 0, %v6401_v0 }
 0xe8d   : > { %v4885_v7 = vpop.f32.mrf.mxu0 }
 0xe8e   : > { %v2279_v8 = vsel %vm1132_vm4, %v2274_v4, -inf }
 0xe8f   : > { %2280 = vmax.xlane.f32.xlu1 %v2279_v8  ;;  %v2276_v10 = vpop.f32.mrf.mxu0  ;;  %v6409_v8 = vld [vmem:[%s6122_s2] sm:$0x7] }
 0xe91   : > { %v4886_v11 = vpop.f32.mrf.mxu0 }
 0xe93   : > { %2399 = vadd.xlane.f32.xlu1 %v2398_v12  ;;  %v2434_v12 = vrot.slane %v6409_v8, %v2427_v1 }
 0xf18   : > { %v2281_v13 = vpop.xlane.xlu1 %2280 }
 0xf19   : > { %v2282_v14 = vsub.f32 %v2274_v4, %v2281_v13 }
 0xf1b   : > { %v2283_v15 = vmul.f32 1.442695, %v2282_v14 }
 0xf1c   : > { %v2400_v36 = vpop.xlane.xlu1 %2399 }
 0xf1d   : > { %5294 = vpow2.f32 %v2283_v15  ;;  %v2405_v39 = vmul.f32 0.03125, %v2400_v36 }
 0xf1f   : > { %v2407_v47 = vsub.f32 %v2396_v16, %v2405_v39 }
 0xf21   : > { %v2409_v43 = vmul.f32 %v2407_v47, %v2407_v47 }
 0xf23   : > { %v2411_v44 = vsel %vm1073_vm2, %v2409_v43, 0.0 }
 0xf2a   : > { %v5295_v5 = vpop.eup %5294 }
 0xf2b   : > { %v2285_v17 = vsel %vm1132_vm4, %v5295_v5, 0.0 }
 0xf2c   : > { %2286 = vadd.xlane.f32.xlu0 %v2285_v17  ;;  %v6423_v17 = vld [vmem:[%s6891_s6] ss:$0 sm:$0xff] }
 0xf42   : > { %2291 = vrot.lane.b32.xlu0 %v6252_v61, %s5693_s11 }
 0xf46   : > { %v2222_v24 = vpop.f32.mrf.mxu1 }
 0xf47   : > { %v2228_v19 = vadd.f32 %v2222_v24, %v6334_v34 }
 0xf48   : > { %v4879_v20 = vpop.f32.mrf.mxu1 }
 0xf4a   : > { %v2225_v21 = vpop.f32.mrf.mxu1 }
 0xf4c   : > { %v4880_v23 = vpop.f32.mrf.mxu1 }
 0xfb5   : > { %v2287_v22 = vpop.xlane.xlu0 %2286 }
 0xfb6   : > { %5296 = vrcp.f32 %v2287_v22 }
 0xfb9   : > { %v2292_v25 = vpop.permute.xlu0 %2291 }
 0xfba   : > { %v2297_v60 = vsel %vm1196_vm5, %v2292_v25, 0 }
 0xfbb   : > { %4888 = vmatpush3.bf16.msra.mxu1 %v2297_v60 }
 0xfbc   : > { %4899 = vmatprep.subr.bf16.mxu1 %v5681_v3 }
 0xfc3   : > { %v5297_v26 = vpop.eup %5296 }
 0xfc4   : > { %v2289_v27 = vmul.f32 %v5297_v26, %v5295_v5 }
 0xfc6   : > { %v2290_v29 = vpack.c.bf16 %v2289_v27, %v2289_v27 }
 0xfc8   : > { %4890 = vmatmul.mubr.msk.bf16.vlgmr.msra.gmra.mxu1 %vm1132_vm4, %v2290_v29 }
 0xfc9   : > { %4903 = vmatprep.mubr.msk.bf16.mxu1 %vm5682_vm1, %v5681_v3  ;;  %4900 = vmatpush3.bf16.msra.mxu1 %v5253_v9 }
 0xfca   : > { %4901 = vmatprep.subr.bf16.mxu1 %v5681_v3 }
 0xfcd   : > { %4902 = vmatpush3.bf16.msra.mxu1 %v5255_v53 }
 0xfce   : > { %4915 = vmatprep.subr.bf16.mxu1 %v5681_v3 }
0x1088   : > { %v2333_v61 = vpop.f32.mrf.mxu1 }
0x1089   : > { %v2339_v30 = vpack.c.bf16 %v2333_v61, %v2333_v61 }
0x108a   : > { %v4891_v31 = vpop.f32.mrf.mxu1 }
0x108b   : > { %4896 = vmatmul.mubr.msk.bf16.vlgmr.msra.gmra.mxu0 %vm1132_vm4, %v2339_v30 }
0x108c   : > { %v2336_v32 = vpop.f32.mrf.mxu1  ;;  %4911 = vmatprep.mubr.msk.bf16.mxu0 %vm5682_vm1, %v5681_v3 }
0x108e   : > { %v4892_v62 = vpop.f32.mrf.mxu1 }
0x114b   : > { %v2377_v33 = vpop.f32.mrf.mxu0 }
0x114c   : > { %v2383_v34 = vadd.f32 %v2377_v33, %v2228_v19 }
0x114d   : > { %v4897_v35 = vpop.f32.mrf.mxu0 }
0x114e   : > { %2384 = vst.msk [vmem:[#allocation5 + $0x8] sm:$0xff] %vm1073_vm2, %v2383_v34 }
0x114f   : > { %v2380_v37 = vpop.f32.mrf.mxu0 }
0x1151   : > { %v4898_v38 = vpop.f32.mrf.mxu0 }
0x1155   : > { %v2386_v40 = vld [vmem:[#allocation5 + $0x8] sm:$0xff] }
0x1156   : > { %v2388_v18 = vadd.f32 %v2386_v40, %v6135_v6  ;;  %v6384_v6 = vld [vmem:[%s6096_s25 + $0x8] sm:$0xff]   ;;  %s6892_s25 = scalar_lea.vmem [#allocation12], %s6039_s14 }
0x1157   : > { %4908 = vmatpush3.bf16.msra.mxu0 %v6384_v6  ;;  %v4565_v60 = vld [vmem:[%s6892_s25] ss:$0 sm:$0xff] }
0x1158   : > { %v2397_v41 = vadd.f32 %v4564_v28, %v2388_v18  ;;  %4909 = vmatprep.subr.bf16.mxu0 %v5681_v3  ;;  %v6405_v28 = vld [vmem:[%s6117_s15] sm:$0x7] }
0x1159   : > { %v2428_v7 = vrot.slane %v6405_v28, %v2427_v1 }
0x115a   : > { %v2401_v42 = vsel %vm1073_vm2, %v2397_v41, 0.0 }
0x115b   : > { %2402 = vadd.xlane.f32.xlu1 %v2401_v42  ;;  %4910 = vmatpush3.bf16.msra.mxu0 %v6390_v51 }
0x115c   : > { %4921 = vmatprep.subr.bf16.mxu0 %v5681_v3 }
0x115e   : > { %4912 = vmatmul.mubr.msk.bf16.vlgmr.msra.gmra.mxu0 %vm1073_vm2, %v2516_v52 }
0x115f   : > { %2412 = vadd.xlane.f32.xlu1 %v2411_v44  ;;  %4923 = vmatprep.mubr.msk.bf16.mxu0 %vm5682_vm1, %v5681_v3 }
0x11e4   : > { %v2403_v45 = vpop.xlane.xlu1 %2402 }
0x11e5   : > { %v2406_v46 = vmul.f32 0.03125, %v2403_v45 }
0x11e7   : > { %v2408_v48 = vsub.f32 %v2397_v41, %v2406_v46 }
0x11e8   : > { %v2413_v54 = vpop.xlane.xlu1 %2412 }
0x11e9   : > { %v2410_v49 = vmul.f32 %v2408_v48, %v2408_v48  ;;  %v2417_v55 = vmul.f32 0.03125, %v2413_v54 }
0x11eb   : > { %v2414_v50 = vsel %vm1073_vm2, %v2410_v49, 0.0  ;;  %v2419_v56 = vadd.f32 1e-05, %v2417_v55 }
0x11ec   : > { %2415 = vadd.xlane.f32.xlu1 %v2414_v50 }
0x11ed   : > { %5298 = vrsqrt.f32 %v2419_v56 }
0x11fa   : > { %v5299_v2 = vpop.eup %5298 }
0x11fb   : > { %v2423_v4 = vmul.f32 %v5299_v2, %v2407_v47 }
0x11fd   : > { %v2429_v11 = vmul.f32 %v2428_v7, %v2423_v4 }
0x11ff   : > { %v6412_v14 = vadd.f32 %v2434_v12, %v2429_v11 }
0x121e   : > { %v2572_v24 = vpop.f32.mrf.mxu0 }
0x121f   : > { %v2573_v19 = vadd.f32 %v6423_v17, %v2572_v24 }
0x1220   : > { %v4913_v20 = vpop.f32.mrf.mxu0 }
0x1221   : > { %v6426_v21 = vpack.c.bf16 %v2573_v19, %v2573_v19 }
0x1222   : > { %v2575_v23 = vpop.f32.mrf.mxu0 }
0x1223   : > { %2695 = vrot.lane.b32.xlu1 %v6426_v21, %s5684_s3  ;;  %v2586_v25 = vsel %vm1132_vm4, %v6426_v21, 0 }
0x1224   : > { %v4914_v22 = vpop.f32.mrf.mxu0 }
0x1275   : > { %v2416_v57 = vpop.xlane.xlu1 %2415 }
0x1276   : > { %v2418_v58 = vmul.f32 0.03125, %v2416_v57 }
0x1278   : > { %v2420_v59 = vadd.f32 1e-05, %v2418_v58 }
0x127a   : > { %5300 = vrsqrt.f32 %v2420_v59 }
0x1287   : > { %v5301_v16 = vpop.eup %5300 }
0x1288   : > { %v2424_v10 = vmul.f32 %v5301_v16, %v2408_v48 }
0x128a   : > { %v2430_v13 = vmul.f32 %v2428_v7, %v2424_v10 }
0x128c   : > { %v6414_v15 = vadd.f32 %v2434_v12, %v2430_v13  ;;  %v2507_v12 = vld [vmem:[%s6101_s10] sm:$0xf] }
0x128d   : > { %v6474_v13 = vsel %vm1196_vm5, %v2507_v12, 0 }
0x128e   : > { %v2437_v5 = vpack.c.bf16 %v6414_v15, %v6412_v14 }
0x1290   : > { %4904 = vmatmul.mubr.msk.bf16.vlgmr.msra.gmra.mxu1 %vm1073_vm2, %v2437_v5  ;;  %v2508_v5 = vld [vmem:[%s6101_s10 + $0x4] sm:$0xf] }
0x1291   : > { %4917 = vmatprep.mubr.msk.bf16.mxu1 %vm5682_vm1, %v5681_v3  ;;  %4916 = vmatpush3.bf16.xpose.msra.mxu1 %v2586_v25  ;;  %v6480_v24 = vsel %vm1196_vm5, %v2508_v5, 0 }
0x1292   : > { %4927 = vmatprep.subr.bf16.mxu1 %v5681_v3 }
0x1295   : > { %v2696_v62 = vpop.permute.xlu1 %2695 }
0x1296   : > { %v2701_v35 = vsel %vm1132_vm4, %v2696_v62, 0 }
0x1350   : > { %v2498_v26 = vpop.f32.mrf.mxu1 }
0x1351   : > { %v2499_v27 = vadd.f32 %v4565_v60, %v2498_v26 }
0x1352   : > { %v4905_v29 = vpop.f32.mrf.mxu1 }
0x1353   : > { %2505 = vst.msk [vmem:[#allocation4] sm:$0xff] %vm1073_vm2, %v2499_v27 }
0x1354   : > { %v2501_v61 = vpop.f32.mrf.mxu1 }
0x1355   : > { %v2502_v30 = vadd.f32 %v4565_v60, %v2501_v61 }
0x1356   : > { %v4906_v31 = vpop.f32.mrf.mxu1 }
0x1357   : > { %2506 = vst.msk [vmem:[#allocation4 + $0x8] sm:$0xff] %vm1073_vm2, %v2502_v30 }
0x135a   : > { %v2578_v32 = vld [vmem:[#allocation4] sm:$0xff] }
0x135b   : > { %v2579_v33 = vmul.f32 0.35355338, %v2578_v32 }
0x135d   : > { %v6437_v34 = vpack.c.bf16 %v2579_v33, %v2579_v33 }
0x135f   : > { %2693 = vrot.lane.b32.xlu0 %v6437_v34, %s5684_s3  ;;  %4918 = vmatmul.mubr.msk.bf16.vlgmr.msra.gmra.mxu1 %vm1132_vm4, %v6437_v34 }
0x1360   : > { %4928 = vmatpush3.bf16.xpose.msra.mxu1 %v2701_v35  ;;  %4929 = vmatprep.mubr.msk.bf16.mxu1 %vm5682_vm1, %v5681_v3 }
0x1361   : > { %4939 = vmatprep.subr.bf16.mxu1 %v5681_v3 }
0x13d1   : > { %v2694_v36 = vpop.permute.xlu0 %2693 }
0x13d2   : > { %4930 = vmatmul.mubr.msk.bf16.vlgmr.msra.gmra.mxu1 %vm1132_vm4, %v2694_v36 }
0x13d3   : > { %4941 = vmatprep.mubr.msk.bf16.mxu1 %vm5682_vm1, %v5681_v3  ;;  %4940 = vmatpush3.bf16.msra.mxu1 %v6480_v24 }
0x13d4   : > { %4951 = vmatprep.subr.bf16.mxu1 %v5681_v3 }
0x141f   : > { %v2622_v37 = vpop.f32.mrf.mxu1 }
0x1420   : > { %v2629_v38 = vsel %vm2628_vm6, %v2622_v37, -inf }
0x1421   : > { %2630 = vmax.xlane.f32.xlu0 %v2629_v38  ;;  %v4919_v39 = vpop.f32.mrf.mxu1 }
0x1423   : > { %v2625_v40 = vpop.f32.mrf.mxu1 }
0x1425   : > { %v4920_v47 = vpop.f32.mrf.mxu1 }
0x1492   : > { %v2737_v18 = vpop.f32.mrf.mxu1 }
0x1493   : > { %v2743_v41 = vsel %vm2628_vm6, %v2737_v18, -inf }
0x1494   : > { %2744 = vmax.xlane.f32.xlu1 %v2743_v41  ;;  %v4931_v42 = vpop.f32.mrf.mxu1 }
0x1496   : > { %v2740_v43 = vpop.f32.mrf.mxu1 }
0x1498   : > { %v4932_v44 = vpop.f32.mrf.mxu1 }
0x14a5   : > { %2755 = vrot.lane.b32.xlu1 %v6426_v21, %s5685_s4 }
0x14a9   : > { %2896 = vrot.lane.b32.xlu1 %v6437_v34, %s5689_s22 }
0x14aa   : > { %v2631_v45 = vpop.xlane.xlu0 %2630 }
0x14ab   : > { %v2632_v46 = vsub.f32 %v2622_v37, %v2631_v45 }
0x14ad   : > { %v2633_v48 = vmul.f32 1.442695, %v2632_v46 }
0x14af   : > { %5302 = vpow2.f32 %v2633_v48 }
0x14bc   : > { %v5303_v49 = vpop.eup %5302 }
0x14bd   : > { %v2635_v50 = vsel %vm2628_vm6, %v5303_v49, 0.0 }
0x14be   : > { %2636 = vadd.xlane.f32.xlu0 %v2635_v50 }
0x151d   : > { %v2745_v9 = vpop.xlane.xlu1 %2744 }
0x151e   : > { %v2746_v52 = vsub.f32 %v2737_v18, %v2745_v9 }
0x1520   : > { %v2747_v53 = vmul.f32 1.442695, %v2746_v52 }
0x1521   : > { %v2756_v2 = vpop.permute.xlu1 %2755 }
0x1522   : > { %5304 = vpow2.f32 %v2747_v53  ;;  %v2761_v7 = vsel %vm2647_vm7, %v2756_v2, 0 }
0x1525   : > { %v2897_v32 = vpop.permute.xlu1 %2896 }
0x152f   : > { %v5305_v54 = vpop.eup %5304 }
0x1530   : > { %v2749_v55 = vsel %vm2628_vm6, %v5305_v54, 0.0 }
0x1531   : > { %2750 = vadd.xlane.f32.xlu0 %v2749_v55 }
0x1547   : > { %2642 = vrot.lane.b32.xlu0 %v6426_v21, %s5683_s1  ;;  %v2637_v56 = vpop.xlane.xlu0 %2636 }
0x1548   : > { %5306 = vrcp.f32 %v2637_v56 }
0x154b   : > { %2898 = vrot.lane.b32.xlu0 %v6426_v21, %s5689_s22 }
0x1555   : > { %v5307_v57 = vpop.eup %5306 }
0x1556   : > { %v2639_v59 = vmul.f32 %v5307_v57, %v5303_v49 }
0x1558   : > { %v2640_v4 = vpack.c.bf16 %v2639_v59, %v2639_v59  ;;  %v2509_v59 = vld [vmem:[%s6101_s10 + $0x8] sm:$0xf] }
0x15ba   : > { %v2751_v58 = vpop.xlane.xlu0 %2750 }
0x15bb   : > { %5308 = vrcp.f32 %v2751_v58 }
0x15be   : > { %v2643_v63 = vpop.permute.xlu0 %2642 }
0x15bf   : > { %v2649_v1 = vsel %vm2647_vm7, %v2643_v63, 0  ;;  %v6517_v63 = vsel %vm1196_vm5, %v2509_v59, 0 }
0x15c0   : > { %4922 = vmatpush3.bf16.msra.mxu0 %v2649_v1 }
0x15c1   : > { %4933 = vmatprep.subr.bf16.mxu0 %v5681_v3 }
0x15c2   : > { %v2899_v60 = vpop.permute.xlu0 %2898 }
0x15c3   : > { %4924 = vmatmul.mubr.msk.bf16.vlgmr.msra.gmra.mxu0 %vm2628_vm6, %v2640_v4  ;;  %v2904_v61 = vsel %vm1132_vm4, %v2899_v60, 0 }
0x15c4   : > { %4934 = vmatpush3.bf16.msra.mxu0 %v2761_v7  ;;  %4935 = vmatprep.mubr.msk.bf16.mxu0 %vm5682_vm1, %v5681_v3 }
0x15c5   : > { %4945 = vmatprep.subr.bf16.mxu0 %v5681_v3 }
0x15c8   : > { %v5309_v16 = vpop.eup %5308 }
0x15c9   : > { %v2753_v10 = vmul.f32 %v5309_v16, %v5305_v54 }
0x15cb   : > { %v2754_v11 = vpack.c.bf16 %v2753_v10, %v2753_v10 }
0x15cd   : > { %4936 = vmatmul.mubr.msk.bf16.vlgmr.msra.gmra.mxu0 %vm2628_vm6, %v2754_v11 }
0x15ce   : > { %4947 = vmatprep.mubr.msk.bf16.mxu0 %vm5682_vm1, %v5681_v3  ;;  %4946 = vmatpush3.bf16.msra.mxu0 %v6474_v13 }
0x15cf   : > { %4957 = vmatprep.subr.bf16.mxu0 %v5681_v3 }
0x1683   : > { %v2685_v19 = vpop.f32.mrf.mxu0 }
0x1684   : > { %v2691_v20 = vpack.c.bf16 %v2685_v19, %v2685_v19 }
0x1685   : > { %v4925_v23 = vpop.f32.mrf.mxu0 }
0x1686   : > { %4948 = vmatmul.mubr.msk.bf16.vlgmr.msra.gmra.mxu0 %vm1132_vm4, %v2691_v20 }
0x1687   : > { %v2688_v22 = vpop.f32.mrf.mxu0  ;;  %4959 = vmatprep.mubr.msk.bf16.mxu0 %vm5682_vm1, %v5681_v3 }
0x1689   : > { %v4926_v25 = vpop.f32.mrf.mxu0 }
0x168d   : > { %v2797_v26 = vpop.f32.mrf.mxu0 }
0x168e   : > { %v2803_v27 = vpack.c.bf16 %v2797_v26, %v2797_v26 }
0x168f   : > { %v4937_v29 = vpop.f32.mrf.mxu0 }
0x1690   : > { %4942 = vmatmul.mubr.msk.bf16.vlgmr.msra.gmra.mxu1 %vm1132_vm4, %v2803_v27 }
0x1691   : > { %4952 = vmatpush3.bf16.xpose.msra.mxu1 %v2904_v61  ;;  %v2800_v30 = vpop.f32.mrf.mxu0  ;;  %4953 = vmatprep.mubr.msk.bf16.mxu1 %vm5682_vm1, %v5681_v3 }
0x1692   : > { %4963 = vmatprep.subr.bf16.mxu1 %v5681_v3 }
0x1693   : > { %v4938_v31 = vpop.f32.mrf.mxu0 }
0x1698   : > { %4954 = vmatmul.mubr.msk.bf16.vlgmr.msra.gmra.mxu1 %vm1132_vm4, %v2897_v32 }
0x1699   : > { %4965 = vmatprep.mubr.msk.bf16.mxu1 %vm5682_vm1, %v5681_v3  ;;  %4964 = vmatpush3.bf16.msra.mxu1 %v6517_v63 }
0x169a   : > { %4975 = vmatprep.subr.bf16.mxu1 %v5681_v3 }
0x1746   : > { %v2890_v62 = vpop.f32.mrf.mxu0 }
0x1748   : > { %v4949_v33 = vpop.f32.mrf.mxu0 }
0x174a   : > { %v2893_v35 = vpop.f32.mrf.mxu0 }
0x174c   : > { %v4950_v36 = vpop.f32.mrf.mxu0 }
0x1750   : > { %v2844_v37 = vpop.f32.mrf.mxu1 }
0x1751   : > { %v6495_v38 = vadd.f32 %v2890_v62, %v2844_v37  ;;  %v2510_v37 = vld [vmem:[%s6101_s10 + $0xc] sm:$0xf] }
0x1752   : > { %v4943_v39 = vpop.f32.mrf.mxu1 }
0x1754   : > { %v2847_v40 = vpop.f32.mrf.mxu1 }
0x1756   : > { %v4944_v47 = vpop.f32.mrf.mxu1 }
0x1758   : > { %v2940_v18 = vpop.f32.mrf.mxu1 }
0x1759   : > { %v2946_v41 = vsel %vm2628_vm6, %v2940_v18, -inf }
0x175a   : > { %2947 = vmax.xlane.f32.xlu0 %v2946_v41  ;;  %v4955_v42 = vpop.f32.mrf.mxu1  ;;  %v3258_v41 = vld [vmem:[#allocation4 + $0x8] sm:$0xff] }
0x175c   : > { %v2943_v43 = vpop.f32.mrf.mxu1 }
0x175e   : > { %v4956_v44 = vpop.f32.mrf.mxu1 }
0x1770   : > { %2958 = vrot.lane.b32.xlu0 %v6426_v21, %s5688_s26 }
0x1774   : > { %3054 = vrot.lane.b32.xlu0 %v6437_v34, %s5691_s13 }
0x17e3   : > { %v2948_v45 = vpop.xlane.xlu0 %2947 }
0x17e4   : > { %v2949_v46 = vsub.f32 %v2940_v18, %v2948_v45  ;;  %v3259_v45 = vmul.f32 0.35355338, %v3258_v41 }
0x17e6   : > { %v2950_v48 = vmul.f32 1.442695, %v2949_v46 }
0x17e7   : > { %v2959_v49 = vpop.permute.xlu0 %2958 }
0x17e8   : > { %5310 = vpow2.f32 %v2950_v48  ;;  %v2964_v50 = vsel %vm2647_vm7, %v2959_v49, 0 }
0x17e9   : > { %4958 = vmatpush3.bf16.msra.mxu0 %v2964_v50  ;;  %v6558_v50 = vpack.c.bf16 %v3259_v45, %v3259_v45 }
0x17ea   : > { %4969 = vmatprep.subr.bf16.mxu0 %v5681_v3 }
0x17eb   : > { %v3055_v58 = vpop.permute.xlu0 %3054 }
0x17f5   : > { %v5311_v9 = vpop.eup %5310 }
0x17f6   : > { %v2952_v52 = vsel %vm2628_vm6, %v5311_v9, 0.0 }
0x17f7   : > { %2953 = vadd.xlane.f32.xlu1 %v2952_v52 }
0x1808   : > { %3056 = vrot.lane.b32.xlu1 %v6426_v21, %s5691_s13 }
0x1880   : > { %v2954_v53 = vpop.xlane.xlu1 %2953 }
0x1881   : > { %5312 = vrcp.f32 %v2954_v53 }
0x1884   : > { %v3057_v55 = vpop.permute.xlu1 %3056 }
0x1885   : > { %v3062_v57 = vsel %vm1132_vm4, %v3057_v55, 0 }
0x188e   : > { %v5313_v34 = vpop.eup %5312 }
0x188f   : > { %v2956_v54 = vmul.f32 %v5313_v34, %v5311_v9 }
0x1891   : > { %v2957_v56 = vpack.c.bf16 %v2956_v54, %v2956_v54 }
0x1893   : > { %4960 = vmatmul.mubr.msk.bf16.vlgmr.msra.gmra.mxu0 %vm2628_vm6, %v2957_v56 }
0x1894   : > { %4970 = vmatpush3.bf16.xpose.msra.mxu0 %v3062_v57  ;;  %4971 = vmatprep.mubr.msk.bf16.mxu0 %vm5682_vm1, %v5681_v3 }
0x1895   : > { %4981 = vmatprep.subr.bf16.mxu0 %v5681_v3 }
0x189b   : > { %4972 = vmatmul.mubr.msk.bf16.vlgmr.msra.gmra.mxu0 %vm1132_vm4, %v3055_v58 }
0x189c   : > { %4983 = vmatprep.mubr.msk.bf16.mxu0 %vm5682_vm1, %v5681_v3 }
0x1953   : > { %v3000_v1 = vpop.f32.mrf.mxu0 }
0x1954   : > { %v3006_v2 = vpack.c.bf16 %v3000_v1, %v3000_v1 }
0x1955   : > { %v4961_v4 = vpop.f32.mrf.mxu0 }
0x1956   : > { %4966 = vmatmul.mubr.msk.bf16.vlgmr.msra.gmra.mxu1 %vm1132_vm4, %v3006_v2 }
0x1957   : > { %v3003_v7 = vpop.f32.mrf.mxu0  ;;  %4977 = vmatprep.mubr.msk.bf16.mxu1 %vm5682_vm1, %v5681_v3 }
0x1959   : > { %v4962_v16 = vpop.f32.mrf.mxu0 }
0x195b   : > { %v3098_v10 = vpop.f32.mrf.mxu0 }
0x195c   : > { %v3104_v11 = vsel %vm2628_vm6, %v3098_v10, -inf }
0x195d   : > { %3105 = vmax.xlane.f32.xlu1 %v3104_v11  ;;  %v4973_v12 = vpop.f32.mrf.mxu0 }
0x195f   : > { %v3101_v5 = vpop.f32.mrf.mxu0 }
0x1961   : > { %v4974_v19 = vpop.f32.mrf.mxu0 }
0x19e6   : > { %v3106_v20 = vpop.xlane.xlu1 %3105 }
0x19e7   : > { %v3107_v23 = vsub.f32 %v3098_v10, %v3106_v20 }
0x19e9   : > { %v3108_v22 = vmul.f32 1.442695, %v3107_v23 }
0x19eb   : > { %5314 = vpow2.f32 %v3108_v22 }
0x19f8   : > { %v5315_v25 = vpop.eup %5314 }
0x19f9   : > { %v3110_v60 = vsel %vm2628_vm6, %v5315_v25, 0.0 }
0x19fa   : > { %3111 = vadd.xlane.f32.xlu0 %v3110_v60 }
0x1a10   : > { %3116 = vrot.lane.b32.xlu0 %v6426_v21, %s5690_s21  ;;  %v4585_v21 = vld [vmem:[%s6073_s5 + $0x4] sm:$0x7]  ;;  %s6893_s5 = scalar_lea.vmem [#allocation15], %s6039_s14 }
0x1a16   : > { %v3047_v26 = vpop.f32.mrf.mxu1 }
0x1a17   : > { %v3053_v27 = vadd.f32 %v3047_v26, %v6495_v38  ;;  %v6544_v38 = vsel %vm1196_vm5, %v2510_v37, 0 }
0x1a18   : > { %v4967_v29 = vpop.f32.mrf.mxu1  ;;  %4982 = vmatpush3.bf16.msra.mxu0 %v6544_v38 }
0x1a19   : > { %4995 = vmatprep.subr.bf16.mxu0 %v5681_v3 }
0x1a1a   : > { %v3050_v61 = vpop.f32.mrf.mxu1 }
0x1a1c   : > { %v4968_v30 = vpop.f32.mrf.mxu1 }
0x1a83   : > { %v3112_v31 = vpop.xlane.xlu0 %3111 }
0x1a84   : > { %5316 = vrcp.f32 %v3112_v31 }
0x1a87   : > { %v3117_v32 = vpop.permute.xlu0 %3116 }
0x1a88   : > { %v3122_v62 = vsel %vm2647_vm7, %v3117_v32, 0 }
0x1a89   : > { %4976 = vmatpush3.bf16.msra.mxu1 %v3122_v62 }
0x1a8a   : > { %4987 = vmatprep.subr.bf16.mxu1 %v5681_v3 }
0x1a91   : > { %v5317_v33 = vpop.eup %5316 }
0x1a92   : > { %v3114_v35 = vmul.f32 %v5317_v33, %v5315_v25 }
0x1a94   : > { %v3115_v36 = vpack.c.bf16 %v3114_v35, %v3114_v35 }
0x1a96   : > { %4978 = vmatmul.mubr.msk.bf16.vlgmr.msra.gmra.mxu1 %vm2628_vm6, %v3115_v36 }
0x1a97   : > { %4988 = vmatpush3.bf16.msra.mxu1 %v6384_v6  ;;  %4991 = vmatprep.mubr.msk.bf16.mxu1 %vm5682_vm1, %v5681_v3 }
0x1a98   : > { %4989 = vmatprep.subr.bf16.mxu1 %v5681_v3 }
0x1a9b   : > { %4990 = vmatpush3.bf16.msra.mxu1 %v6390_v51 }
0x1a9c   : > { %5001 = vmatprep.subr.bf16.mxu1 %v5681_v3 }
0x1a9e   : > { %4992 = vmatmul.mubr.msk.bf16.vlgmr.msra.gmra.mxu1 %vm1073_vm2, %v4585_v21 }
0x1a9f   : > { %5003 = vmatprep.mubr.msk.bf16.mxu1 %vm5682_vm1, %v5681_v3 }
0x1b56   : > { %v3158_v6 = vpop.f32.mrf.mxu1 }
0x1b57   : > { %v3164_v39 = vpack.c.bf16 %v3158_v6, %v3158_v6 }
0x1b58   : > { %v4979_v40 = vpop.f32.mrf.mxu1 }
0x1b59   : > { %4984 = vmatmul.mubr.msk.bf16.vlgmr.msra.gmra.mxu0 %vm1132_vm4, %v3164_v39 }
0x1b5a   : > { %v3161_v51 = vpop.f32.mrf.mxu1  ;;  %4997 = vmatprep.mubr.msk.bf16.mxu0 %vm5682_vm1, %v5681_v3 }
0x1b5c   : > { %v4980_v47 = vpop.f32.mrf.mxu1 }
0x1b5e   : > { %v3252_v18 = vpop.f32.mrf.mxu1 }
0x1b5f   : > { %v3253_v42 = vadd.f32 %v6423_v17, %v3252_v18 }
0x1b60   : > { %v4993_v43 = vpop.f32.mrf.mxu1 }
0x1b61   : > { %v6552_v44 = vpack.c.bf16 %v3253_v42, %v3253_v42 }
0x1b62   : > { %v3255_v46 = vpop.f32.mrf.mxu1 }
0x1b63   : > { %3373 = vrot.lane.b32.xlu1 %v6552_v44, %s5684_s3  ;;  %v3266_v48 = vsel %vm1132_vm4, %v6552_v44, 0 }
0x1b64   : > { %v4994_v49 = vpop.f32.mrf.mxu1  ;;  %4996 = vmatpush3.bf16.xpose.msra.mxu0 %v3266_v48 }
0x1b65   : > { %5007 = vmatprep.subr.bf16.mxu0 %v5681_v3 }
0x1b67   : > { %3371 = vrot.lane.b32.xlu1 %v6558_v50, %s5684_s3 }
0x1b6b   : > { %4998 = vmatmul.mubr.msk.bf16.vlgmr.msra.gmra.mxu0 %vm1132_vm4, %v6558_v50 }
0x1b6c   : > { %5009 = vmatprep.mubr.msk.bf16.mxu0 %vm5682_vm1, %v5681_v3 }
0x1bd5   : > { %v3374_v17 = vpop.permute.xlu1 %3373 }
0x1bd6   : > { %v3379_v9 = vsel %vm1132_vm4, %v3374_v17, 0 }
0x1bd7   : > { %5008 = vmatpush3.bf16.xpose.msra.mxu0 %v3379_v9 }
0x1bd8   : > { %5019 = vmatprep.subr.bf16.mxu0 %v5681_v3 }
0x1bd9   : > { %v3372_v52 = vpop.permute.xlu1 %3371 }
0x1bde   : > { %5010 = vmatmul.mubr.msk.bf16.vlgmr.msra.gmra.mxu0 %vm1132_vm4, %v3372_v52 }
0x1bdf   : > { %5020 = vmatpush3.bf16.msra.mxu0 %v6480_v24  ;;  %5021 = vmatprep.mubr.msk.bf16.mxu0 %vm5682_vm1, %v5681_v3 }
0x1be0   : > { %5031 = vmatprep.subr.bf16.mxu0 %v5681_v3 }
0x1c19   : > { %v3205_v53 = vpop.f32.mrf.mxu0 }
0x1c1a   : > { %v3211_v34 = vadd.f32 %v3205_v53, %v3053_v27 }
0x1c1b   : > { %v4985_v54 = vpop.f32.mrf.mxu0 }
0x1c1c   : > { %3212 = vst.msk [vmem:[#allocation5] sm:$0xff] %vm1073_vm2, %v3211_v34 }
0x1c1d   : > { %v3208_v55 = vpop.f32.mrf.mxu0 }
0x1c1f   : > { %v4986_v56 = vpop.f32.mrf.mxu0 }
0x1c2b   : > { %v3302_v57 = vpop.f32.mrf.mxu0 }
0x1c2c   : > { %v3308_v58 = vsel %vm2628_vm6, %v3302_v57, -inf }
0x1c2d   : > { %3309 = vmax.xlane.f32.xlu0 %v3308_v58  ;;  %v4999_v59 = vpop.f32.mrf.mxu0 }
0x1c2f   : > { %v3305_v1 = vpop.f32.mrf.mxu0 }
0x1c31   : > { %v5000_v2 = vpop.f32.mrf.mxu0 }
0x1c9e   : > { %v3415_v24 = vpop.f32.mrf.mxu0 }
0x1c9f   : > { %v3421_v4 = vsel %vm2628_vm6, %v3415_v24, -inf }
0x1ca0   : > { %3422 = vmax.xlane.f32.xlu1 %v3421_v4  ;;  %v5011_v7 = vpop.f32.mrf.mxu0 }
0x1ca2   : > { %v3418_v16 = vpop.f32.mrf.mxu0 }
0x1ca4   : > { %v5012_v10 = vpop.f32.mrf.mxu0 }
0x1cb1   : > { %3321 = vrot.lane.b32.xlu1 %v6552_v44, %s5683_s1 }
0x1cb5   : > { %3570 = vrot.lane.b32.xlu1 %v6552_v44, %s5689_s22 }
0x1cb6   : > { %v3310_v11 = vpop.xlane.xlu0 %3309 }
0x1cb7   : > { %v3311_v12 = vsub.f32 %v3302_v57, %v3310_v11 }
0x1cb9   : > { %v3312_v5 = vmul.f32 1.442695, %v3311_v12  ;;  %3568 = vrot.lane.b32.xlu1 %v6558_v50, %s5689_s22 }
0x1cbb   : > { %5318 = vpow2.f32 %v3312_v5 }
0x1cc8   : > { %v5319_v19 = vpop.eup %5318 }
0x1cc9   : > { %v3314_v20 = vsel %vm2628_vm6, %v5319_v19, 0.0 }
0x1cca   : > { %3315 = vadd.xlane.f32.xlu0 %v3314_v20 }
0x1d29   : > { %v3423_v23 = vpop.xlane.xlu1 %3422 }
0x1d2a   : > { %v3424_v22 = vsub.f32 %v3415_v24, %v3423_v23 }
0x1d2c   : > { %v3425_v25 = vmul.f32 1.442695, %v3424_v22 }
0x1d2d   : > { %v3322_v60 = vpop.permute.xlu1 %3321 }
0x1d2e   : > { %5320 = vpow2.f32 %v3425_v25  ;;  %v3327_v26 = vsel %vm2647_vm7, %v3322_v60, 0 }
0x1d2f   : > { %5002 = vmatpush3.bf16.msra.mxu1 %v3327_v26  ;;  %v3879_v26 = vld [vmem:[#allocation5] sm:$0xff] }
0x1d30   : > { %5013 = vmatprep.subr.bf16.mxu1 %v5681_v3 }
0x1d31   : > { %v3571_v18 = vpop.permute.xlu1 %3570 }
0x1d35   : > { %v3569_v48 = vpop.permute.xlu1 %3568 }
0x1d3b   : > { %v5321_v27 = vpop.eup %5320 }
0x1d3c   : > { %v3427_v29 = vsel %vm2628_vm6, %v5321_v27, 0.0 }
0x1d3d   : > { %3428 = vadd.xlane.f32.xlu0 %v3427_v29  ;;  %v3881_v29 = vadd.f32 %v3879_v26, %v6412_v14 }
0x1d53   : > { %v3316_v61 = vpop.xlane.xlu0 %3315  ;;  %3433 = vrot.lane.b32.xlu0 %v6552_v44, %s5685_s4 }
0x1d54   : > { %5322 = vrcp.f32 %v3316_v61 }
0x1d61   : > { %v5323_v30 = vpop.eup %5322 }
0x1d62   : > { %v3318_v31 = vmul.f32 %v5323_v30, %v5319_v19 }
0x1d64   : > { %v3319_v32 = vpack.c.bf16 %v3318_v31, %v3318_v31 }
0x1d66   : > { %5004 = vmatmul.mubr.msk.bf16.vlgmr.msra.gmra.mxu1 %vm2628_vm6, %v3319_v32 }
0x1d67   : > { %5015 = vmatprep.mubr.msk.bf16.mxu1 %vm5682_vm1, %v5681_v3 }
0x1dc6   : > { %v3429_v62 = vpop.xlane.xlu0 %3428 }
0x1dc7   : > { %5324 = vrcp.f32 %v3429_v62 }
0x1dca   : > { %v3434_v33 = vpop.permute.xlu0 %3433 }
0x1dcb   : > { %v3439_v35 = vsel %vm2647_vm7, %v3434_v33, 0 }
0x1dcc   : > { %5014 = vmatpush3.bf16.msra.mxu1 %v3439_v35 }
0x1dcd   : > { %5025 = vmatprep.subr.bf16.mxu1 %v5681_v3 }
0x1dd4   : > { %v5325_v36 = vpop.eup %5324 }
0x1dd5   : > { %v3431_v21 = vmul.f32 %v5325_v36, %v5321_v27 }
0x1dd7   : > { %v3432_v37 = vpack.c.bf16 %v3431_v21, %v3431_v21 }
0x1dd9   : > { %5016 = vmatmul.mubr.msk.bf16.vlgmr.msra.gmra.mxu1 %vm2628_vm6, %v3432_v37 }
0x1dda   : > { %5026 = vmatpush3.bf16.msra.mxu1 %v6474_v13  ;;  %5027 = vmatprep.mubr.msk.bf16.mxu1 %vm5682_vm1, %v5681_v3  ;;  %v3576_v13 = vsel %vm1132_vm4, %v3571_v18, 0 }
0x1ddb   : > { %5037 = vmatprep.subr.bf16.mxu1 %v5681_v3 }
0x1e26   : > { %v3363_v6 = vpop.f32.mrf.mxu1 }
0x1e27   : > { %v3369_v39 = vpack.c.bf16 %v3363_v6, %v3363_v6 }
0x1e28   : > { %v5005_v40 = vpop.f32.mrf.mxu1 }
0x1e29   : > { %5028 = vmatmul.mubr.msk.bf16.vlgmr.msra.gmra.mxu1 %vm1132_vm4, %v3369_v39 }
0x1e2a   : > { %v3366_v51 = vpop.f32.mrf.mxu1  ;;  %5039 = vmatprep.mubr.msk.bf16.mxu1 %vm5682_vm1, %v5681_v3 }
0x1e2c   : > { %v5006_v47 = vpop.f32.mrf.mxu1 }
0x1e99   : > { %v3475_v41 = vpop.f32.mrf.mxu1 }
0x1e9a   : > { %v3481_v42 = vpack.c.bf16 %v3475_v41, %v3475_v41 }
0x1e9b   : > { %v5017_v43 = vpop.f32.mrf.mxu1 }
0x1e9c   : > { %5022 = vmatmul.mubr.msk.bf16.vlgmr.msra.gmra.mxu0 %vm1132_vm4, %v3481_v42 }
0x1e9d   : > { %5032 = vmatpush3.bf16.xpose.msra.mxu0 %v3576_v13  ;;  %v3478_v45 = vpop.f32.mrf.mxu1  ;;  %5033 = vmatprep.mubr.msk.bf16.mxu0 %vm5682_vm1, %v5681_v3 }
0x1e9e   : > { %5043 = vmatprep.subr.bf16.mxu0 %v5681_v3 }
0x1e9f   : > { %v5018_v46 = vpop.f32.mrf.mxu1 }
0x1ea4   : > { %5034 = vmatmul.mubr.msk.bf16.vlgmr.msra.gmra.mxu0 %vm1132_vm4, %v3569_v48 }
0x1ea5   : > { %5044 = vmatpush3.bf16.msra.mxu0 %v6517_v63  ;;  %5045 = vmatprep.mubr.msk.bf16.mxu0 %vm5682_vm1, %v5681_v3 }
0x1ea6   : > { %5055 = vmatprep.subr.bf16.mxu0 %v5681_v3 }
0x1ee9   : > { %v6612_v49 = vpop.f32.mrf.mxu1 }
0x1eeb   : > { %v5029_v17 = vpop.f32.mrf.mxu1 }
0x1eed   : > { %v3565_v9 = vpop.f32.mrf.mxu1 }
0x1eef   : > { %v5030_v52 = vpop.f32.mrf.mxu1 }
0x1f5c   : > { %v6614_v53 = vpop.f32.mrf.mxu0 }
0x1f5d   : > { %v3563_v40 = vadd.f32 %v6612_v49, %v6614_v53 }
0x1f5e   : > { %v5023_v34 = vpop.f32.mrf.mxu0 }
0x1f60   : > { %v3522_v54 = vpop.f32.mrf.mxu0 }
0x1f62   : > { %v5024_v55 = vpop.f32.mrf.mxu0 }
0x1f64   : > { %v3612_v56 = vpop.f32.mrf.mxu0 }
0x1f65   : > { %v3618_v57 = vsel %vm2628_vm6, %v3612_v56, -inf }
0x1f66   : > { %3619 = vmax.xlane.f32.xlu0 %v3618_v57  ;;  %v5035_v63 = vpop.f32.mrf.mxu0 }
0x1f68   : > { %v3615_v58 = vpop.f32.mrf.mxu0 }
0x1f6a   : > { %v5036_v59 = vpop.f32.mrf.mxu0 }
0x1f7c   : > { %3630 = vrot.lane.b32.xlu0 %v6552_v44, %s5688_s26 }
0x1f80   : > { %3723 = vrot.lane.b32.xlu0 %v6558_v50, %s5691_s13 }
0x1fef   : > { %v3620_v1 = vpop.xlane.xlu0 %3619 }
0x1ff0   : > { %v3621_v2 = vsub.f32 %v3612_v56, %v3620_v1 }
0x1ff2   : > { %v3622_v24 = vmul.f32 1.442695, %v3621_v2 }
0x1ff3   : > { %v3631_v4 = vpop.permute.xlu0 %3630 }
0x1ff4   : > { %5326 = vpow2.f32 %v3622_v24  ;;  %v3636_v7 = vsel %vm2647_vm7, %v3631_v4, 0 }
0x1ff5   : > { %5038 = vmatpush3.bf16.msra.mxu1 %v3636_v7 }
0x1ff6   : > { %5049 = vmatprep.subr.bf16.mxu1 %v5681_v3 }
0x1ff7   : > { %v3724_v23 = vpop.permute.xlu0 %3723 }
0x2001   : > { %v5327_v16 = vpop.eup %5326 }
0x2002   : > { %v3624_v10 = vsel %vm2628_vm6, %v5327_v16, 0.0 }
0x2003   : > { %3625 = vadd.xlane.f32.xlu1 %v3624_v10 }
0x2014   : > { %3725 = vrot.lane.b32.xlu1 %v6552_v44, %s5691_s13 }
0x208c   : > { %v3626_v11 = vpop.xlane.xlu1 %3625 }
0x208d   : > { %5328 = vrcp.f32 %v3626_v11 }
0x2090   : > { %v3726_v5 = vpop.permute.xlu1 %3725 }
0x2091   : > { %v3731_v20 = vsel %vm1132_vm4, %v3726_v5, 0 }
0x209a   : > { %v5329_v50 = vpop.eup %5328 }
0x209b   : > { %v3628_v12 = vmul.f32 %v5329_v50, %v5327_v16 }
0x209d   : > { %v3629_v19 = vpack.c.bf16 %v3628_v12, %v3628_v12 }
0x209f   : > { %5040 = vmatmul.mubr.msk.bf16.vlgmr.msra.gmra.mxu1 %vm2628_vm6, %v3629_v19  ;;  %v5257_v19 = vld [vmem:[%s6124_s8] sm:$0xff]  }
0x20a0   : > { %5050 = vmatpush3.bf16.xpose.msra.mxu1 %v3731_v20  ;;  %5051 = vmatprep.mubr.msk.bf16.mxu1 %vm5682_vm1, %v5681_v3  ;;  %v5258_v20 = vld [vmem:[%s6107_s17 + $0x38] sm:$0xff]  }
0x20a1   : > { %5061 = vmatprep.subr.bf16.mxu1 %v5681_v3 }
0x20a7   : > { %5052 = vmatmul.mubr.msk.bf16.vlgmr.msra.gmra.mxu1 %vm1132_vm4, %v3724_v23  ;;  %v5259_v23 = vld [vmem:[%s6107_s17 + $0x30] sm:$0xff]  }
0x20a8   : > { %5062 = vmatpush3.bf16.msra.mxu1 %v6544_v38  ;;  %5063 = vmatprep.mubr.msk.bf16.mxu1 %vm5682_vm1, %v5681_v3  ;;  %v4599_v38 = vld [vmem:[%s6893_s5] ss:$0 sm:$0xff] }
0x20a9   : > { %5075 = vmatprep.subr.bf16.mxu1 %v5681_v3  ;;  %v3890_v32 = vadd.f32 %v4599_v38, %v3881_v29 }
0x20ab   : > { %v3892_v35 = vsel %vm1073_vm2, %v3890_v32, 0.0 }
0x215f   : > { %v3672_v22 = vpop.f32.mrf.mxu1 }
0x2160   : > { %v3678_v25 = vpack.c.bf16 %v3672_v22, %v3672_v22  ;;  %v5260_v22 = vld [vmem:[%s6107_s17 + $0x28] sm:$0xff]  }
0x2161   : > { %v5041_v60 = vpop.f32.mrf.mxu1 }
0x2162   : > { %5046 = vmatmul.mubr.msk.bf16.vlgmr.msra.gmra.mxu0 %vm1132_vm4, %v3678_v25  ;;  %v5261_v25 = vld [vmem:[%s6107_s17 + $0x20] sm:$0xff]   ;;  %v5262_v60 = vld [vmem:[%s6107_s17 + $0x18] sm:$0xff]  }
0x2163   : > { %v3675_v27 = vpop.f32.mrf.mxu1  ;;  %5057 = vmatprep.mubr.msk.bf16.mxu0 %vm5682_vm1, %v5681_v3 }
0x2165   : > { %v5042_v61 = vpop.f32.mrf.mxu1 }
0x2167   : > { %v3767_v30 = vpop.f32.mrf.mxu1 }
0x2168   : > { %v3773_v31 = vsel %vm2628_vm6, %v3767_v30, -inf }
0x2169   : > { %3774 = vmax.xlane.f32.xlu1 %v3773_v31  ;;  %v5053_v62 = vpop.f32.mrf.mxu1  ;;  %v3920_v31 = vsub.s32 1, %v6401_v0 }
0x216b   : > { %v3770_v33 = vpop.f32.mrf.mxu1 }
0x216c   : > { %v3921_v33 = vrot.slane %v6405_v28, %v3920_v31  ;;  %v5265_v28 = vld [vmem:[%s6107_s17] sm:$0xff]  }
0x216d   : > { %3893 = vadd.xlane.f32.xlu1 %v3892_v35  ;;  %v5054_v36 = vpop.f32.mrf.mxu1 }
0x21f2   : > { %v3775_v21 = vpop.xlane.xlu1 %3774 }
0x21f3   : > { %v3776_v37 = vsub.f32 %v3767_v30, %v3775_v21 }
0x21f5   : > { %v3777_v6 = vmul.f32 1.442695, %v3776_v37  ;;  %v3927_v37 = vrot.slane %v6409_v8, %v3920_v31  ;;  %v4600_v8 = vld [vmem:[%s6895_s23] ss:$0 sm:$0xff] }
0x21f6   : > { %v3894_v56 = vpop.xlane.xlu1 %3893 }
0x21f7   : > { %5330 = vpow2.f32 %v3777_v6  ;;  %v3898_v58 = vmul.f32 0.03125, %v3894_v56 }
0x21f9   : > { %v3900_v1 = vsub.f32 %v3890_v32, %v3898_v58 }
0x21fb   : > { %v3902_v7 = vmul.f32 %v3900_v1, %v3900_v1 }
0x21fd   : > { %v3904_v16 = vsel %vm1073_vm2, %v3902_v7, 0.0 }
0x2204   : > { %v5331_v39 = vpop.eup %5330 }
0x2205   : > { %v3779_v14 = vsel %vm2628_vm6, %v5331_v39, 0.0 }
0x2206   : > { %3780 = vadd.xlane.f32.xlu0 %v3779_v14 }
0x221c   : > { %3785 = vrot.lane.b32.xlu0 %v6552_v44, %s5690_s21 }
0x2222   : > { %v3716_v51 = vpop.f32.mrf.mxu0 }
0x2223   : > { %v3722_v47 = vadd.f32 %v3716_v51, %v3563_v40  ;;  %v5263_v51 = vld [vmem:[%s6107_s17 + $0x10] sm:$0xff]  }
0x2224   : > { %v5047_v18 = vpop.f32.mrf.mxu0 }
0x2226   : > { %v3719_v41 = vpop.f32.mrf.mxu0 }
0x2228   : > { %v5048_v42 = vpop.f32.mrf.mxu0 }
0x228f   : > { %v3781_v43 = vpop.xlane.xlu0 %3780 }
0x2290   : > { %5332 = vrcp.f32 %v3781_v43 }
0x2293   : > { %v3786_v13 = vpop.permute.xlu0 %3785 }
0x2294   : > { %v3791_v45 = vsel %vm2647_vm7, %v3786_v13, 0 }
0x2295   : > { %5056 = vmatpush3.bf16.msra.mxu0 %v3791_v45 }
0x2296   : > { %5067 = vmatprep.subr.bf16.mxu0 %v5681_v3 }
0x229d   : > { %v5333_v46 = vpop.eup %5332 }
0x229e   : > { %v3783_v48 = vmul.f32 %v5333_v46, %v5331_v39 }
0x22a0   : > { %v3784_v17 = vpack.c.bf16 %v3783_v48, %v3783_v48 }
0x22a2   : > { %5058 = vmatmul.mubr.msk.bf16.vlgmr.msra.gmra.mxu0 %vm2628_vm6, %v3784_v17 }
0x22a3   : > { %5071 = vmatprep.mubr.msk.bf16.mxu0 %vm5682_vm1, %v5681_v3 }
0x2362   : > { %v3827_v44 = vpop.f32.mrf.mxu0 }
0x2363   : > { %v3833_v49 = vpack.c.bf16 %v3827_v44, %v3827_v44 }
0x2364   : > { %v5059_v9 = vpop.f32.mrf.mxu0 }
0x2365   : > { %5064 = vmatmul.mubr.msk.bf16.vlgmr.msra.gmra.mxu1 %vm1132_vm4, %v3833_v49 }
0x2366   : > { %v3830_v52 = vpop.f32.mrf.mxu0  ;;  %5091 = vmatprep.mubr.msk.bf16.mxu1 %vm5682_vm1, %v5681_v3  ;;  %5076 = vmatpush3.bf16.msra.mxu1 %v5258_v20  ;;  %v4143_v20 = vsub.s32 2, %v6401_v0 }
0x2367   : > { %5077 = vmatprep.subr.bf16.mxu1 %v5681_v3 }
0x2368   : > { %v5060_v53 = vpop.f32.mrf.mxu0 }
0x236a   : > { %5078 = vmatpush3.bf16.msra.mxu1 %v5259_v23  ;;  %v5342_v23 = vld [vmem:[%s6117_s15] sm:$0x7] }
0x236b   : > { %5079 = vmatprep.subr.bf16.mxu1 %v5681_v3 }
0x236e   : > { %5080 = vmatpush3.bf16.msra.mxu1 %v5260_v22  ;;  %v4144_v22 = vrot.slane %v5342_v23, %v4143_v20 }
0x236f   : > { %5081 = vmatprep.subr.bf16.mxu1 %v5681_v3 }
0x2372   : > { %5082 = vmatpush3.bf16.msra.mxu1 %v5261_v25 }
0x2373   : > { %5083 = vmatprep.subr.bf16.mxu1 %v5681_v3 }
0x2376   : > { %5084 = vmatpush3.bf16.msra.mxu1 %v5262_v60  ;;  %v5343_v60 = vld [vmem:[%s6122_s2] sm:$0x7] }
0x2377   : > { %5085 = vmatprep.subr.bf16.mxu1 %v5681_v3 }
0x237a   : > { %5086 = vmatpush3.bf16.msra.mxu1 %v5263_v51 }
0x237b   : > { %5087 = vmatprep.subr.bf16.mxu1 %v5681_v3 }
0x2425   : > { %v3871_v34 = vpop.f32.mrf.mxu1 }
0x2426   : > { %v3877_v54 = vadd.f32 %v3871_v34, %v3722_v47  ;;  %v5264_v47 = vld [vmem:[%s6107_s17 + $0x8] sm:$0xff]  }
0x2427   : > { %v5065_v55 = vpop.f32.mrf.mxu1  ;;  %5088 = vmatpush3.bf16.msra.mxu1 %v5264_v47 }
0x2428   : > { %3878 = vst.msk [vmem:[#allocation5 + $0x8] sm:$0xff] %vm1073_vm2, %v3877_v54  ;;  %5089 = vmatprep.subr.bf16.mxu1 %v5681_v3 }
0x2429   : > { %v3874_v57 = vpop.f32.mrf.mxu1 }
0x242b   : > { %v5066_v63 = vpop.f32.mrf.mxu1  ;;  %5090 = vmatpush3.bf16.msra.mxu1 %v5265_v28 }
0x242f   : > { %v3880_v59 = vld [vmem:[#allocation5 + $0x8] sm:$0xff] }
0x2430   : > { %v3882_v2 = vadd.f32 %v3880_v59, %v6414_v15  ;;  %v5256_v15 = vld [vmem:[%s6124_s8 + $0x8] sm:$0xff]  }
0x2431   : > { %5068 = vmatpush3.bf16.msra.mxu0 %v5256_v15 }
0x2432   : > { %v3891_v24 = vadd.f32 %v4599_v38, %v3882_v2  ;;  %5069 = vmatprep.subr.bf16.mxu0 %v5681_v3  ;;  %v4604_v3 = vld [vmem:[%s1024_s7] ss:$0 sm:$0xff] }
0x2434   : > { %v3895_v4 = vsel %vm1073_vm2, %v3891_v24, 0.0 }
0x2435   : > { %3896 = vadd.xlane.f32.xlu1 %v3895_v4  ;;  %5070 = vmatpush3.bf16.msra.mxu0 %v5257_v19 }
0x2439   : > { %3905 = vadd.xlane.f32.xlu1 %v3904_v16 }
0x24be   : > { %v3897_v10 = vpop.xlane.xlu1 %3896 }
0x24bf   : > { %v3899_v11 = vmul.f32 0.03125, %v3897_v10 }
0x24c1   : > { %v3901_v50 = vsub.f32 %v3891_v24, %v3899_v11 }
0x24c2   : > { %v3906_v26 = vpop.xlane.xlu1 %3905 }
0x24c3   : > { %v3903_v12 = vmul.f32 %v3901_v50, %v3901_v50  ;;  %v3910_v27 = vmul.f32 0.03125, %v3906_v26  ;;  %v4150_v26 = vrot.slane %v5343_v60, %v4143_v20 }
0x24c5   : > { %v3907_v5 = vsel %vm1073_vm2, %v3903_v12, 0.0  ;;  %v3912_v29 = vadd.f32 1e-05, %v3910_v27 }
0x24c6   : > { %3908 = vadd.xlane.f32.xlu1 %v3907_v5 }
0x24c7   : > { %5334 = vrsqrt.f32 %v3912_v29 }
0x24d4   : > { %v5335_v32 = vpop.eup %5334 }
0x24d5   : > { %v3916_v62 = vmul.f32 %v5335_v32, %v3900_v1 }
0x24d7   : > { %v3922_v21 = vmul.f32 %v3921_v33, %v3916_v62 }
0x24d9   : > { %v3928_v39 = vadd.f32 %v3927_v37, %v3922_v21 }
0x254f   : > { %v3909_v61 = vpop.xlane.xlu1 %3908 }
0x2550   : > { %v3911_v38 = vmul.f32 0.03125, %v3909_v61 }
0x2552   : > { %v3913_v30 = vadd.f32 1e-05, %v3911_v38 }
0x2554   : > { %5336 = vrsqrt.f32 %v3913_v30 }
0x2561   : > { %v5337_v35 = vpop.eup %5336 }
0x2562   : > { %v3917_v36 = vmul.f32 %v5337_v35, %v3901_v50 }
0x2564   : > { %v3923_v6 = vmul.f32 %v3921_v33, %v3917_v36 }
0x2566   : > { %v3929_v14 = vadd.f32 %v3927_v37, %v3923_v6 }
0x2568   : > { %v3930_v40 = vpack.c.bf16 %v3929_v14, %v3928_v39 }
0x256a   : > { %5072 = vmatmul.mubr.msk.bf16.vlgmr.msra.gmra.mxu0 %vm1073_vm2, %v3930_v40 }
0x262a   : > { %v3991_v18 = vpop.f32.mrf.mxu0 }
0x262b   : > { %v3992_v42 = vadd.f32 %v4600_v8, %v3991_v18 }
0x262c   : > { %v5073_v41 = vpop.f32.mrf.mxu0 }
0x262d   : > { %v3998_v46 = vmax.f32 %v3992_v42, 0.0 }
0x262e   : > { %v3994_v43 = vpop.f32.mrf.mxu0 }
0x262f   : > { %v3995_v13 = vadd.f32 %v4600_v8, %v3994_v43 }
0x2630   : > { %v5074_v45 = vpop.f32.mrf.mxu0 }
0x2631   : > { %v3999_v48 = vmax.f32 %v3995_v13, 0.0 }
0x2633   : > { %v4000_v17 = vpack.c.bf16 %v3999_v48, %v3998_v46 }
0x2635   : > { %5092 = vmatmul.mubr.bf16.vlgmr.msra.gmra.mxu1 %v4000_v17 }
0x26f5   : > { %v4106_v44 = vpop.f32.mrf.mxu1 }
0x26f6   : > { %v4107_v49 = vadd.f32 %v4604_v3, %v4106_v44 }
0x26f7   : > { %v5093_v9 = vpop.f32.mrf.mxu1 }
0x26f8   : > { %v4113_v52 = vadd.f32 %v4107_v49, %v3928_v39 }
0x26f9   : > { %v4109_v53 = vpop.f32.mrf.mxu1 }
0x26fa   : > { %v4110_v34 = vadd.f32 %v4604_v3, %v4109_v53  ;;  %v4115_v54 = vsel %vm1073_vm2, %v4113_v52, 0.0 }
0x26fb   : > { %4116 = vadd.xlane.f32.xlu1 %v4115_v54  ;;  %v5094_v55 = vpop.f32.mrf.mxu1 }
0x26fc   : > { %v4114_v56 = vadd.f32 %v4110_v34, %v3929_v14 }
0x26fe   : > { %v4118_v57 = vsel %vm1073_vm2, %v4114_v56, 0.0 }
0x26ff   : > { %4119 = vadd.xlane.f32.xlu1 %v4118_v57 }
0x2784   : > { %v4117_v63 = vpop.xlane.xlu1 %4116 }
0x2785   : > { %v4121_v58 = vmul.f32 0.03125, %v4117_v63 }
0x2787   : > { %v4123_v59 = vsub.f32 %v4113_v52, %v4121_v58 }
0x2788   : > { %v4120_v1 = vpop.xlane.xlu1 %4119 }
0x2789   : > { %v4122_v2 = vmul.f32 0.03125, %v4120_v1  ;;  %v4125_v24 = vmul.f32 %v4123_v59, %v4123_v59 }
0x278b   : > { %v4124_v4 = vsub.f32 %v4114_v56, %v4122_v2  ;;  %v4127_v7 = vsel %vm1073_vm2, %v4125_v24, 0.0 }
0x278c   : > { %4128 = vadd.xlane.f32.xlu0 %v4127_v7 }
0x278d   : > { %v4126_v16 = vmul.f32 %v4124_v4, %v4124_v4 }
0x278f   : > { %v4130_v10 = vsel %vm1073_vm2, %v4126_v16, 0.0 }
0x2790   : > { %4131 = vadd.xlane.f32.xlu1 %v4130_v10 }
0x2815   : > { %v4129_v11 = vpop.xlane.xlu0 %4128 }
0x2816   : > { %v4133_v50 = vmul.f32 0.03125, %v4129_v11 }
0x2818   : > { %v4135_v12 = vadd.f32 1e-05, %v4133_v50 }
0x2819   : > { %v4132_v5 = vpop.xlane.xlu1 %4131 }
0x281a   : > { %5338 = vrsqrt.f32 %v4135_v12  ;;  %v4134_v15 = vmul.f32 0.03125, %v4132_v5 }
0x281c   : > { %v4136_v19 = vadd.f32 1e-05, %v4134_v15 }
0x281e   : > { %5340 = vrsqrt.f32 %v4136_v19 }
0x2827   : > { %v5339_v25 = vpop.eup %5338 }
0x2828   : > { %v4139_v27 = vmul.f32 %v5339_v25, %v4123_v59 }
0x282a   : > { %v4145_v29 = vmul.f32 %v4144_v22, %v4139_v27 }
0x282b   : > { %v5341_v61 = vpop.eup %5340 }
0x282c   : > { %v4151_v38 = vadd.f32 %v4150_v26, %v4145_v29  ;;  %v4140_v30 = vmul.f32 %v5341_v61, %v4124_v4 }
0x282e   : > { %4153 = vst.msk [vmem:[#allocation2] sm:$0xff] %vm1073_vm2, %v4151_v38  ;;  %v4146_v31 = vmul.f32 %v4144_v22, %v4140_v30  ;;  %4158 = sbr.rel (%p4613_p8) target bundleno = 10292 (0x2834), region = 132 }
0x2830   : > { %v4152_v32 = vadd.f32 %v4150_v26, %v4146_v31 }
0x2832   : > { %4154 = vst.msk [vmem:[#allocation2 + $0x8] sm:$0xff] %vm1073_vm2, %v4152_v32 }
0x2833   : > { %4159 = vst.msk [vmem:[%s6126_s24] sm:$0xff] %vm1073_vm2, %v4151_v38  ;;  %4160 = vst.msk [vmem:[%s6126_s24 + $0x8] sm:$0xff] %vm1073_vm2, %v4152_v32 }
0x2834 PF: > { %s6898_s17 = sld [smem:[#allocation30_spill]]  ;;  %s4175_s3 = sshll.u32 %s6126_s24, 4  ;;  %s6715_s3 = int_to_ptr.vmem [resolvable:$true] %s4175_s3 }
0x2835   : > { %s6899_s7 = sld [smem:[#allocation25_spill]]  ;;  %s5538_s26 = scalar_lea.vmem %s6715_s3, 256 }
0x2836   : > { %s6900_s15 = sld [smem:[#allocation38_spill]]  ;;  %p5539_p4 = scmp.ne.s32.totalorder %s6715_s3, %s5538_s26 }
0x2837   : > { %s6901_s30 = sld [smem:[#allocation59_spill]]  ;;  %s5694_s22 = smov [#allocation18]  }
0x2838   : > { %s5542_s21 = sshll.u32 %s5694_s22, 4  ;;  %s5543_s21 = int_to_ptr.vmem [resolvable:$false] %s5542_s21 }
0x2839   : > { %s5544_s13 = scalar_lea.vmem %s5543_s21, 512  ;;  %p5545_p3 = scmp.lt.s32.totalorder %s6715_s3, %s5543_s21 }
0x283a   : > { %s4626_s27 = sshll.u32 %s6898_s17, 8  ;;  %p5546_p9 = scmp.lt.s32.totalorder %s5544_s13, %s5538_s26 }
0x283b   : > { %s6903_s29 = sand.u32 1, %s6899_s7  }
0x283c   : > { %s6719_s12 = scalar_lea.sflag [#allocation8], %s6903_s29  ;;  %p6904_p13 = scmp.ne.s32.totalorder %s6900_s15, 0 }
0x283d   : > { %s6902_s4 = smov %s6901_s30  ;;  %s6712_s1 = scalar_lea.hbm %s6901_s30, %s4626_s27 }
0x283e   : > { %p5540_p2 = pnand %p5539_p4, %p6904_p13  ;;  %p5547_p11 = por %p5546_p9, %p5545_p3 }
0x2840   : > { %p5541_p10 = pneg %p5540_p2 }
0x2842   : > { %p5548_p1 = pnand %p5547_p11, %p5541_p10 }
0x2844   : > { %5551 = shalt.err (!%p5548_p1)
}
0x2845   : > { %s5552_s24 = scalar_lea.hbm %s6712_s1, 256  ;;  %s5556_s0 = scalar_lea.hbm %s6902_s4, 512 }
0x2846   : > { %p5553_p0 = scmp.ne.s32.totalorder %s6712_s1, %s5552_s24  ;;  %p5557_p7 = scmp.lt.s32.totalorder %s6712_s1, %s6902_s4 }
0x2847   : > { %p5558_p5 = scmp.lt.s32.totalorder %s5556_s0, %s5552_s24 }
0x2848   : > { %p5554_p12 = pnand %p5553_p0, %p6904_p13 }
0x2849   : > { %p5559_p8 = por %p5558_p5, %p5557_p7 }
0x284a   : > { %p5555_p6 = pneg %p5554_p12 }
0x284c   : > { %p5560_p4 = pnand %p5559_p8, %p5555_p6 }
0x284e   : > { %5563 = shalt.err (!%p5560_p4)
}
0x284f   : > { %s5695_s5 = smov 128   ;;  %s5696_s14 = smov 8  }
0x2850   : > { %5111 = dma.vmem_to_hbm [thread:$0]  (%p6904_p13), %s6715_s3, 256, %s6712_s1, %s6719_s12, %s5695_s5, %s5695_s5, %s5696_s14  }
0x2851 PF: > { %s6905_s10 = sld [smem:[#allocation33_spill]] }
0x2852   : > { %s6906_s28 = sld [smem:[#allocation24_spill]] }
0x2853   : > { %s6907_s23 = sld [smem:[#allocation39_spill]] }
0x2857   : > { %p5143_p2 = scmp.ge.s32.totalorder %s6905_s10, 2 }
0x2858   : > { %s4190_s18 = sand.u32 1, %s6906_s28  }
0x2859   : > { %p6908_p10 = scmp.ne.s32.totalorder %s6907_s23, 0  ;;  %s4191_s9 = scalar_lea.sflag [#allocation8], %s4190_s18 }
0x285b   : > { %p5137_p3 = pnand %p5143_p2, %p6908_p10 }
0x285d   : > { %p5138_p9 = pneg %p5137_p3 }
0x285f   : > { %5625 = dma.done.wait (%p5138_p9), %s4191_s9, 256  }
0x2860   : > { %5627 = vsyncadd (%p5138_p9), %s4191_s9, 4294967040  ;;  %s42_s3 = sadd.s32 1, %s6905_s10   ;;  %s6909_s0 = sld [smem:[#allocation25_spill]] }
0x2861   : > { %p39_p11 = scmp.ge.s32.totalorder %s42_s3, 6   ;;  %s6910_s30 = sld [smem:[#allocation26_spill]] }
0x2862   : > { %s6911_s20 = sld [smem:[#allocation37_spill]] }
0x2863   : > { %s6912_s21 = sld [smem:[#allocation27_spill]] }
0x2864   : > { %s6913_s1 = sld [smem:[#allocation28_spill]] }
0x2865   : > { %s6914_s22 = sld [smem:[#allocation35_spill]]  ;;  %41 = sbr.rel (!%p39_p11) target bundleno = 35 (0x23), region = 250 }
0x2866   : > { %s6915_s2 = sld [smem:[#allocation31_spill]] }
0x2867   : > { %s6916_s23 = sld [smem:[#allocation32_spill]] }
0x2868   : > { %s6917_s24 = sld [smem:[#allocation34_spill]] }
0x2869   : > { %s6918_s25 = sld [smem:[#allocation36_spill]] }
0x286a   :  { %4196 = vsyncpa [#allocation7], 1 }
0x286b   :  { %4198 = vsyncpa [#allocation7 + $0x1], 1 }
0x286c   :  { %4199 = vsyncpa [#allocation10], 1 }
0x286d   :  { %4201 = vsyncpa [#allocation10 + $0x1], 1 }
0x286e   :  { %4202 = vsyncpa [#allocation13], 1 }
0x286f   :  { %4204 = vsyncpa [#allocation13 + $0x1], 1 }
0x2870   :  { %4205 = vsyncpa [#allocation16], 1 }
0x2871   :  { %4207 = vsyncpa [#allocation16 + $0x1], 1 }
0x2872   :  { %4208 = vsyncpa [#allocation8], 1 }
0x2873   :  { %4210 = vsyncpa [#allocation8 + $0x1], 1 }

</bundles_post_ra>
